<compile_context>
chip_gen: v7x
topology: tpu7x:2x2x1
jax: 0.10.0
libtpu: 0.0.40
codegen_flags: <defaults>
</compile_context>

<pallas_src>
import math

import numpy as np

import jax
import jax.numpy as jnp
from jax.experimental import pallas as pl
from jax.experimental.pallas import tpu as pltpu

_EPS = 1e-5                      # nn.BatchNorm2d default eps
_MM_DTYPE = jnp.bfloat16         # conv matmul operand dtype (accumulation is f32)


# --------------------------- wrapper-side helpers ---------------------------

def _chan_fold(w, c):
    """(w*c, c) 0/1 matrix folding a (w, c)-fused lane layout to per-channel."""
    return np.kron(np.ones((w, 1), np.float32), np.eye(c, dtype=np.float32))


def _pool_col_sel(w_in, w_out, c, kw, stride, pad):
    """(w_in*c, w_out*c) 0/1 matrix: column tap kw of a k3 pool (OOB -> zero)."""
    m = np.zeros((w_in * c, w_out * c), np.float32)
    for ow in range(w_out):
        w = stride * ow + kw - pad
        if 0 <= w < w_in:
            m[w * c:(w + 1) * c, ow * c:(ow + 1) * c] = np.eye(c, dtype=np.float32)
    return m


def _pool_row_sel(h_in, h_out, kh, stride, pad):
    """(h_out, h_in) 0/1 matrix: row tap kh of a k3 pool (OOB -> zero row)."""
    m = np.zeros((h_out, h_in), np.float32)
    for oh in range(h_out):
        h = stride * oh + kh - pad
        if 0 <= h < h_in:
            m[oh, h] = 1.0
    return m


def _band_weights(w, w_in, w_out, stride, pad):
    """PyTorch conv weight (Cout, Cin, K, K) -> per-kh banded matrices
    (K, w_in*Cin, w_out*Cout): a whole output row (all ow, all cout) is a single
    matmul per (image, kh) tap; column zero-padding is folded into the band."""
    cout, cin, k, _ = w.shape
    wt = jnp.transpose(w, (2, 3, 1, 0))                       # (kh, kw, cin, cout)
    wi = jnp.arange(w_in)[:, None]
    oi = jnp.arange(w_out)[None, :]
    kw = wi + pad - stride * oi                               # (w_in, w_out)
    valid = ((kw >= 0) & (kw < k)).astype(wt.dtype)
    kwc = jnp.clip(kw, 0, k - 1)
    sel = wt[:, kwc] * valid[None, :, :, None, None]          # (k, w_in, w_out, cin, cout)
    sel = jnp.transpose(sel, (0, 1, 3, 2, 4))                 # (k, w_in, cin, w_out, cout)
    return sel.reshape(k, w_in * cin, w_out * cout)


def _row_parity_split(x3, pad, stride):
    """(N, H, W*C) -> row-parity groups of the zero ROW-padded input, each
    flattened to (N*Hs_a, W*C).  Column padding is implicit in the bands."""
    n, _, wc = x3.shape
    xp = jnp.pad(x3, ((0, 0), (pad, pad), (0, 0)))
    groups, hs = [], []
    for a in range(stride):
        g = xp[:, a::stride, :]
        hs.append(g.shape[1])
        groups.append(g.reshape(n * g.shape[1], wc))
    return groups, tuple(hs)


# ------------------------------ Pallas kernels ------------------------------

def _make_input_stage_kernel(N, C, K, s, OH, OW, PH, PW, Hs):
    """Conv7x7/s2/p3 (bias=False) + BN (batch stats, fused) + ReLU +
    MaxPool3/s2/p1 + pooled (sum, sumsq) statistics.  Whole batch per call."""
    OWC, PWC = OW * C, PW * C
    cnt = float(N * OH * OW)

    def kernel(xa0_ref, xa1_ref, bw_ref, g_ref, be_ref,
               foldc_ref, tilec_ref, selc_ref, selr_ref, foldp_ref,
               out_ref, st_ref):
        xa = [xa0_ref[...], xa1_ref[...]]
        bw = [bw_ref[k] for k in range(K)]

        # 7x7/s2 conv: one (OH, W*C) @ (W*C, OW*C) matmul per (image, kh) tap.
        ys = []
        for n in range(N):
            acc = jnp.zeros((OH, OWC), jnp.float32)
            for kh in range(K):
                a, i0 = kh % s, kh // s
                r0 = n * Hs[a] + i0
                lhs = xa[a][r0:r0 + OH, :].astype(_MM_DTYPE)
                acc = acc + jnp.dot(lhs, bw[kh], preferred_element_type=jnp.float32)
            ys.append(acc)

        # Batch statistics of the conv output -> training-mode BN affine.
        foldc = foldc_ref[...]
        rs = jnp.zeros((1, OWC), jnp.float32)
        rq = jnp.zeros((1, OWC), jnp.float32)
        for n in range(N):
            rs = rs + jnp.sum(ys[n], axis=0, keepdims=True)
            rq = rq + jnp.sum(ys[n] * ys[n], axis=0, keepdims=True)
        mean = jnp.dot(rs, foldc, preferred_element_type=jnp.float32) / cnt
        var = jnp.dot(rq, foldc, preferred_element_type=jnp.float32) / cnt - mean * mean
        scale = g_ref[...] * jax.lax.rsqrt(var + _EPS)
        shift = be_ref[...] - mean * scale
        tilec = tilec_ref[...]
        s_t = jnp.dot(scale, tilec, preferred_element_type=jnp.float32)   # (1, OW*C)
        t_t = jnp.dot(shift, tilec, preferred_element_type=jnp.float32)

        # BN -> ReLU -> 3x3/s2/p1 maxpool via exact 0/1 selection matmuls.
        # Zero padding is safe: pooled values are ReLU outputs (>= 0) and every
        # window contains at least one valid pixel (pad < kernel).
        selc = [selc_ref[k] for k in range(3)]
        selr = [selr_ref[k] for k in range(3)]
        ps = jnp.zeros((1, PWC), jnp.float32)
        pq = jnp.zeros((1, PWC), jnp.float32)
        for n in range(N):
            z = jnp.maximum(ys[n] * s_t + t_t, 0.0)
            cm = jnp.dot(z, selc[0], preferred_element_type=jnp.float32)
            for k in range(1, 3):
                cm = jnp.maximum(cm, jnp.dot(z, selc[k],
                                             preferred_element_type=jnp.float32))
            pm = jnp.dot(selr[0], cm, preferred_element_type=jnp.float32)
            for k in range(1, 3):
                pm = jnp.maximum(pm, jnp.dot(selr[k], cm,
                                             preferred_element_type=jnp.float32))
            out_ref[n * PH:(n + 1) * PH, :] = pm
            ps = ps + jnp.sum(pm, axis=0, keepdims=True)
            pq = pq + jnp.sum(pm * pm, axis=0, keepdims=True)
        foldp = foldp_ref[...]
        st_ref[0:1, :] = jnp.dot(ps, foldp, preferred_element_type=jnp.float32)
        st_ref[1:2, :] = jnp.dot(pq, foldp, preferred_element_type=jnp.float32)

    return kernel


def _make_layer_kernel(N, H, W, Cin, Cout, OH, OW, Hs):
    """Whole ConvLayer in one kernel:
       y = conv2(relu(BN2(conv1(relu(BN1(x)))))) + BN_s(conv_skip(x))
    plus fused (sum, sumsq) statistics of y for the next layer's BN1.
    conv1/conv_skip: 3x3/s2/p1; conv2: 3x3/s1/p1 (see TODO in wrapper)."""
    s, p, K = 2, 1, 3
    WC = W * Cin
    MC = OW * Cout
    cnt_in = float(N * H * W)
    cnt_mid = float(N * OH * OW)
    # per-parity range of non-pad rows inside each image's parity group
    vrange = []
    for a in range(s):
        lo = max(0, (p - a + s - 1) // s)
        hi = min(Hs[a], (p + H - 1 - a) // s + 1)
        vrange.append((lo, hi))

    def kernel(xa0_ref, xa1_ref, xst_ref, g1_ref, be1_ref, tin_ref,
               b1m_ref, b1t_ref, bsm_ref, bst_ref, foldm_ref, tilem_ref,
               g2_ref, be2_ref, gs_ref, bes_ref, b2m_ref, b2t_ref,
               y_ref, yst_ref, zp_ref):
        xa = [xa0_ref[...], xa1_ref[...]]

        # --- BN1 affine from the producer's fused (sum, sumsq) statistics ---
        mean = xst_ref[0:1, :] / cnt_in
        var = xst_ref[1:2, :] / cnt_in - mean * mean
        sc1 = g1_ref[...] * jax.lax.rsqrt(var + _EPS)
        sh1 = be1_ref[...] - mean * sc1
        tin = tin_ref[...]
        sc1_t = jnp.dot(sc1, tin, preferred_element_type=jnp.float32)    # (1, W*Cin)
        sh1_t = jnp.dot(sh1, tin, preferred_element_type=jnp.float32)

        # BN+ReLU prologue; zero the H-pad rows so padding stays exactly 0.
        xb = []
        for a in range(s):
            v = jnp.maximum(xa[a] * sc1_t + sh1_t, 0.0)
            r = jax.lax.broadcasted_iota(jnp.int32, (N * Hs[a], WC), 0)
            lo, hi = vrange[a]
            m = (r >= lo) & (r < hi)
            for n in range(1, N):
                m = m | ((r >= n * Hs[a] + lo) & (r < n * Hs[a] + hi))
            xb.append(jnp.where(m, v, 0.0))

        # --- conv1 (BN+ReLU'd x) and conv_skip (raw x), sharing one x read ---
        b1m = [b1m_ref[k] for k in range(K)]
        bsm = [bsm_ref[k] for k in range(K)]
        b1t = b1t_ref[...]
        bst = bst_ref[...]
        y1s, sks = [], []
        for n in range(N):
            acc1 = jnp.zeros((OH, MC), jnp.float32) + b1t
            accs = jnp.zeros((OH, MC), jnp.float32) + bst
            for kh in range(K):
                a, i0 = kh % s, kh // s
                r0 = n * Hs[a] + i0
                acc1 = acc1 + jnp.dot(xb[a][r0:r0 + OH, :].astype(_MM_DTYPE), b1m[kh],
                                      preferred_element_type=jnp.float32)
                accs = accs + jnp.dot(xa[a][r0:r0 + OH, :].astype(_MM_DTYPE), bsm[kh],
                                      preferred_element_type=jnp.float32)
            y1s.append(acc1)
            sks.append(accs)

        # --- BN2 / BN_skip affines from in-kernel batch statistics ----------
        foldm = foldm_ref[...]
        tilem = tilem_ref[...]
        r1 = jnp.zeros((1, MC), jnp.float32)
        q1 = jnp.zeros((1, MC), jnp.float32)
        r2 = jnp.zeros((1, MC), jnp.float32)
        q2 = jnp.zeros((1, MC), jnp.float32)
        for n in range(N):
            r1 = r1 + jnp.sum(y1s[n], axis=0, keepdims=True)
            q1 = q1 + jnp.sum(y1s[n] * y1s[n], axis=0, keepdims=True)
            r2 = r2 + jnp.sum(sks[n], axis=0, keepdims=True)
            q2 = q2 + jnp.sum(sks[n] * sks[n], axis=0, keepdims=True)

        def bn_affine(rsum, rsq, gamma, beta):
            m_ = jnp.dot(rsum, foldm, preferred_element_type=jnp.float32) / cnt_mid
            v_ = jnp.dot(rsq, foldm, preferred_element_type=jnp.float32) / cnt_mid - m_ * m_
            sc = gamma * jax.lax.rsqrt(v_ + _EPS)
            sh = beta - m_ * sc
            return (jnp.dot(sc, tilem, preferred_element_type=jnp.float32),
                    jnp.dot(sh, tilem, preferred_element_type=jnp.float32))

        sc2_t, sh2_t = bn_affine(r1, q1, g2_ref[...], be2_ref[...])
        scs_t, shs_t = bn_affine(r2, q2, gs_ref[...], bes_ref[...])

        # --- conv2 on relu(BN2(y1)) + residual add of BN_s(skip) ------------
        b2m = [b2m_ref[k] for k in range(K)]
        b2t = b2t_ref[...]
        zp_ref[0:1, :] = jnp.zeros((1, MC), jnp.float32)          # zero border rows once
        zp_ref[OH + 1:OH + 2, :] = jnp.zeros((1, MC), jnp.float32)
        osum = jnp.zeros((1, MC), jnp.float32)
        osq = jnp.zeros((1, MC), jnp.float32)
        for n in range(N):
            zp_ref[1:1 + OH, :] = jnp.maximum(y1s[n] * sc2_t + sh2_t, 0.0)
            acc = jnp.zeros((OH, MC), jnp.float32) + b2t
            for kh in range(K):
                acc = acc + jnp.dot(zp_ref[kh:kh + OH, :].astype(_MM_DTYPE), b2m[kh],
                                    preferred_element_type=jnp.float32)
            out = acc + sks[n] * scs_t + shs_t
            y_ref[n * OH:(n + 1) * OH, :] = out
            osum = osum + jnp.sum(out, axis=0, keepdims=True)
            osq = osq + jnp.sum(out * out, axis=0, keepdims=True)
        yst_ref[0:1, :] = jnp.dot(osum, foldm, preferred_element_type=jnp.float32)
        yst_ref[1:2, :] = jnp.dot(osq, foldm, preferred_element_type=jnp.float32)

    return kernel


# --------------------------- Pallas-backed stages ---------------------------

def _input_stage(x_nhwc, w_in, gamma, beta):
    """input_conv_layer (Conv7x7/s2/p3 no-bias -> BN -> ReLU) + MaxPool(3,2,1),
    one pallas_call.  Returns pooled activation (N*PH, PW*C) and its stats."""
    N, H, W, C = x_nhwc.shape
    K, s, p = 7, 2, 3
    OH = (H + 2 * p - K) // s + 1
    OW = (W + 2 * p - K) // s + 1
    PH = (OH + 2 - 3) // 2 + 1
    PW = (OW + 2 - 3) // 2 + 1
    xa, Hs = _row_parity_split(x_nhwc.reshape(N, H, W * C), p, s)
    for kh in range(K):
        assert kh // s + OH <= Hs[kh % s]
    bw = _band_weights(w_in, W, OW, s, p).astype(_MM_DTYPE)
    foldc = jnp.asarray(_chan_fold(OW, C))
    tilec = jnp.asarray(_chan_fold(OW, C).T)
    selc = jnp.asarray(np.stack([_pool_col_sel(OW, PW, C, k, 2, 1) for k in range(3)]))
    selr = jnp.asarray(np.stack([_pool_row_sel(OH, PH, k, 2, 1) for k in range(3)]))
    foldp = jnp.asarray(_chan_fold(PW, C))
    kernel = _make_input_stage_kernel(N, C, K, s, OH, OW, PH, PW, Hs)
    pooled, pst = pl.pallas_call(
        kernel,
        out_shape=(jax.ShapeDtypeStruct((N * PH, PW * C), jnp.float32),
                   jax.ShapeDtypeStruct((2, C), jnp.float32)),
    )(xa[0], xa[1], bw, gamma.reshape(1, C), beta.reshape(1, C),
      foldc, tilec, selc, selr, foldp)
    return pooled, pst, PH, PW


def _conv_layer(x_flat, x_stats, lp, N, H, W, Cin, Cout):
    """One fused ConvLayer pallas_call.  x_flat: (N*H, W*Cin); x_stats: (2, Cin)
    fused (sum, sumsq) of x from the producing kernel."""
    s, p, K = 2, 1, 3
    OH = (H + 2 * p - K) // s + 1
    OW = (W + 2 * p - K) // s + 1
    MC = OW * Cout
    xa, Hs = _row_parity_split(x_flat.reshape(N, H, W * Cin), p, s)
    for kh in range(K):
        assert kh // s + OH <= Hs[kh % s]
    b1m = _band_weights(lp["w1"], W, OW, s, p).astype(_MM_DTYPE)
    bsm = _band_weights(lp["ws"], W, OW, s, p).astype(_MM_DTYPE)
    # TODO(synk): the reference's second Conv2d omits kernel_size and would reuse
    # stride=2/padding=1 (not constructible, and shape-mismatched for the
    # residual add); the standard ResUNet choice (3x3, stride=1, pad=1) is used.
    b2m = _band_weights(lp["w2"], OW, OW, 1, 1).astype(_MM_DTYPE)
    b1t = jnp.tile(lp["b1"], OW).reshape(1, MC).astype(jnp.float32)
    bst = jnp.tile(lp["bs"], OW).reshape(1, MC).astype(jnp.float32)
    b2t = jnp.tile(lp["b2"], OW).reshape(1, MC).astype(jnp.float32)
    foldm = jnp.asarray(_chan_fold(OW, Cout))
    tilem = jnp.asarray(_chan_fold(OW, Cout).T)
    tin = jnp.asarray(_chan_fold(W, Cin).T)
    kernel = _make_layer_kernel(N, H, W, Cin, Cout, OH, OW, Hs)
    y, yst = pl.pallas_call(
        kernel,
        out_shape=(jax.ShapeDtypeStruct((N * OH, MC), jnp.float32),
                   jax.ShapeDtypeStruct((2, Cout), jnp.float32)),
        scratch_shapes=[pltpu.VMEM((OH + 2, MC), jnp.float32)],
    )(xa[0], xa[1], x_stats,
      lp["bn1_g"].reshape(1, Cin), lp["bn1_b"].reshape(1, Cin), tin,
      b1m, b1t, bsm, bst, foldm, tilem,
      lp["bn2_g"].reshape(1, Cout), lp["bn2_b"].reshape(1, Cout),
      lp["bns_g"].reshape(1, Cout), lp["bns_b"].reshape(1, Cout),
      b2m, b2t)
    return y, yst, OH, OW


# ----------------------------- model definition -----------------------------

def init_params(key, filters):
    """Deterministic synthetic parameters with the shapes implied by __init__."""
    c0 = filters[0]
    keys = iter(jax.random.split(key, 64))

    def conv_w(k, cout, cin, ks):
        return jax.random.normal(k, (cout, cin, ks, ks), jnp.float32) / math.sqrt(cin * ks * ks)

    def conv_b(k, cout):
        return 0.1 * jax.random.normal(k, (cout,), jnp.float32)

    params = {
        "in_w": conv_w(next(keys), c0, c0, 7),          # Conv2d(c0,c0,7,s=2,p=3,bias=False)
        "in_gamma": jnp.ones((c0,), jnp.float32),
        "in_beta": jnp.zeros((c0,), jnp.float32),
        "layers": [],
    }
    # forward() only ever uses conv_layer_1 .. conv_layer_{L-1}
    # TODO(synk): the reference __init__ also builds conv_layer_L with filters[L]
    # (IndexError as written); it is never used in forward, so it is omitted.
    for i in range(len(filters) - 1):
        cin, cout = filters[i], filters[i + 1]
        params["layers"].append({
            "bn1_g": jnp.ones((cin,), jnp.float32), "bn1_b": jnp.zeros((cin,), jnp.float32),
            "w1": conv_w(next(keys), cout, cin, 3), "b1": conv_b(next(keys), cout),
            "bn2_g": jnp.ones((cout,), jnp.float32), "bn2_b": jnp.zeros((cout,), jnp.float32),
            "w2": conv_w(next(keys), cout, cout, 3), "b2": conv_b(next(keys), cout),
            "ws": conv_w(next(keys), cout, cin, 3), "bs": conv_b(next(keys), cout),
            "bns_g": jnp.ones((cout,), jnp.float32), "bns_b": jnp.zeros((cout,), jnp.float32),
        })
    return params


def res_u_body_forward(params, x_nchw):
    x = jnp.transpose(x_nchw, (0, 2, 3, 1))                  # NCHW -> NHWC (API edge only)
    N, _, _, c0 = x.shape
    # input_conv_layer + maxpool (one kernel; BN uses training-mode batch stats)
    cur, cur_st, h, w = _input_stage(x, params["in_w"], params["in_gamma"],
                                     params["in_beta"])
    # TODO(synk): input_skip_layer (split=True) references an undefined `x` in the
    # reference and is never called in forward; it is omitted.
    cin = c0
    skips_meta = []
    for lp in params["layers"]:
        skips_meta.append((cur, h, w, cin))                  # keep internal layout
        cout = lp["w1"].shape[0]
        cur, cur_st, h, w = _conv_layer(cur, cur_st, lp, N, h, w, cin, cout)
        cin = cout
    out = jnp.transpose(cur.reshape(N, h, w, cin), (0, 3, 1, 2))
    skips = [jnp.transpose(t.reshape(N, hh, ww, cc), (0, 3, 1, 2))
             for (t, hh, ww, cc) in skips_meta]
    return out, skips


# ----------------------------------- main -----------------------------------

if __name__ == "__main__":
    filters = [4, 8, 16]                                     # L = 3 -> 2 ConvLayers
    key = jax.random.PRNGKey(0)
    pkey, xkey = jax.random.split(key)
    params = init_params(pkey, filters)
    x = jax.random.normal(xkey, (2, filters[0], 32, 32), jnp.float32)   # NCHW

    fwd = jax.jit(res_u_body_forward)
    out, skips = fwd(params, x)
    out = jax.block_until_ready(out)
    skips = [jax.block_until_ready(s) for s in skips]

    assert out.shape == (2, 16, 2, 2), out.shape
    assert [tuple(s.shape) for s in skips] == [(2, 4, 8, 8), (2, 8, 4, 4)]
    assert bool(jnp.all(jnp.isfinite(out)))
    print("KERNEL_OK")
</pallas_src>

<mosaic_0001>
module attributes {stable_mosaic.version = 11 : i64} {
  func.func @kernel(%arg0: memref<38x128xf32, #tpu.memory_space<vmem>>, %arg1: memref<38x128xf32, #tpu.memory_space<vmem>>, %arg2: memref<7x128x64xbf16, #tpu.memory_space<vmem>>, %arg3: memref<1x4xf32, #tpu.memory_space<vmem>>, %arg4: memref<1x4xf32, #tpu.memory_space<vmem>>, %arg5: memref<64x4xf32, #tpu.memory_space<vmem>>, %arg6: memref<4x64xf32, #tpu.memory_space<vmem>>, %arg7: memref<3x64x32xf32, #tpu.memory_space<vmem>>, %arg8: memref<3x8x16xf32, #tpu.memory_space<vmem>>, %arg9: memref<32x4xf32, #tpu.memory_space<vmem>>, %arg10: memref<16x32xf32, #tpu.memory_space<vmem>>, %arg11: memref<2x4xf32, #tpu.memory_space<vmem>>) attributes {dimension_semantics = [], scalar_prefetch = 0 : i64, scratch_operands = 0 : i64, tpu.core_type = #tpu.core_type<tc>} {
    %c0 = arith.constant 0 : index
    %c0_0 = arith.constant 0 : index
    %0 = vector.load %arg0[%c0, %c0_0] : memref<38x128xf32, #tpu.memory_space<vmem>>, vector<38x128xf32>
    %c0_1 = arith.constant 0 : index
    %c0_2 = arith.constant 0 : index
    %1 = vector.load %arg1[%c0_1, %c0_2] : memref<38x128xf32, #tpu.memory_space<vmem>>, vector<38x128xf32>
    %c0_3 = arith.constant 0 : index
    %c0_4 = arith.constant 0 : index
    %c0_5 = arith.constant 0 : index
    %2 = vector.load %arg2[%c0_3, %c0_4, %c0_5] : memref<7x128x64xbf16, #tpu.memory_space<vmem>>, vector<1x128x64xbf16>
    %3 = vector.shape_cast %2 : vector<1x128x64xbf16> to vector<128x64xbf16>
    %c1 = arith.constant 1 : index
    %c0_6 = arith.constant 0 : index
    %c0_7 = arith.constant 0 : index
    %4 = vector.load %arg2[%c1, %c0_6, %c0_7] : memref<7x128x64xbf16, #tpu.memory_space<vmem>>, vector<1x128x64xbf16>
    %5 = vector.shape_cast %4 : vector<1x128x64xbf16> to vector<128x64xbf16>
    %c2 = arith.constant 2 : index
    %c0_8 = arith.constant 0 : index
    %c0_9 = arith.constant 0 : index
    %6 = vector.load %arg2[%c2, %c0_8, %c0_9] : memref<7x128x64xbf16, #tpu.memory_space<vmem>>, vector<1x128x64xbf16>
    %7 = vector.shape_cast %6 : vector<1x128x64xbf16> to vector<128x64xbf16>
    %c3 = arith.constant 3 : index
    %c0_10 = arith.constant 0 : index
    %c0_11 = arith.constant 0 : index
    %8 = vector.load %arg2[%c3, %c0_10, %c0_11] : memref<7x128x64xbf16, #tpu.memory_space<vmem>>, vector<1x128x64xbf16>
    %9 = vector.shape_cast %8 : vector<1x128x64xbf16> to vector<128x64xbf16>
    %c4 = arith.constant 4 : index
    %c0_12 = arith.constant 0 : index
    %c0_13 = arith.constant 0 : index
    %10 = vector.load %arg2[%c4, %c0_12, %c0_13] : memref<7x128x64xbf16, #tpu.memory_space<vmem>>, vector<1x128x64xbf16>
    %11 = vector.shape_cast %10 : vector<1x128x64xbf16> to vector<128x64xbf16>
    %c5 = arith.constant 5 : index
    %c0_14 = arith.constant 0 : index
    %c0_15 = arith.constant 0 : index
    %12 = vector.load %arg2[%c5, %c0_14, %c0_15] : memref<7x128x64xbf16, #tpu.memory_space<vmem>>, vector<1x128x64xbf16>
    %13 = vector.shape_cast %12 : vector<1x128x64xbf16> to vector<128x64xbf16>
    %c6 = arith.constant 6 : index
    %c0_16 = arith.constant 0 : index
    %c0_17 = arith.constant 0 : index
    %14 = vector.load %arg2[%c6, %c0_16, %c0_17] : memref<7x128x64xbf16, #tpu.memory_space<vmem>>, vector<1x128x64xbf16>
    %15 = vector.shape_cast %14 : vector<1x128x64xbf16> to vector<128x64xbf16>
    %cst = arith.constant 0.000000e+00 : f32
    %16 = vector.broadcast %cst : f32 to vector<16x64xf32>
    %17 = vector.extract_strided_slice %0 {offsets = [0, 0], sizes = [16, 128], strides = [1, 1]} : vector<38x128xf32> to vector<16x128xf32>
    %18 = arith.truncf %17 : vector<16x128xf32> to vector<16x128xbf16>
    %cst_18 = arith.constant dense<0.000000e+00> : vector<16x64xf32>
    %19 = tpu.matmul %18, %3, %cst_18 {dimension_numbers = #tpu.dot_dimension_numbers<[1], [0], [0], [1], [0, 0, 1, 1], [], []>} : vector<16x128xbf16>, vector<128x64xbf16>, vector<16x64xf32> -> vector<16x64xf32>
    %20 = arith.addf %16, %19 : vector<16x64xf32>
    %21 = vector.extract_strided_slice %1 {offsets = [0, 0], sizes = [16, 128], strides = [1, 1]} : vector<38x128xf32> to vector<16x128xf32>
    %22 = arith.truncf %21 : vector<16x128xf32> to vector<16x128xbf16>
    %cst_19 = arith.constant dense<0.000000e+00> : vector<16x64xf32>
    %23 = tpu.matmul %22, %5, %cst_19 {dimension_numbers = #tpu.dot_dimension_numbers<[1], [0], [0], [1], [0, 0, 1, 1], [], []>} : vector<16x128xbf16>, vector<128x64xbf16>, vector<16x64xf32> -> vector<16x64xf32>
    %24 = arith.addf %20, %23 : vector<16x64xf32>
    %25 = vector.extract_strided_slice %0 {offsets = [1, 0], sizes = [16, 128], strides = [1, 1]} : vector<38x128xf32> to vector<16x128xf32>
    %26 = arith.truncf %25 : vector<16x128xf32> to vector<16x128xbf16>
    %cst_20 = arith.constant dense<0.000000e+00> : vector<16x64xf32>
    %27 = tpu.matmul %26, %7, %cst_20 {dimension_numbers = #tpu.dot_dimension_numbers<[1], [0], [0], [1], [0, 0, 1, 1], [], []>} : vector<16x128xbf16>, vector<128x64xbf16>, vector<16x64xf32> -> vector<16x64xf32>
    %28 = arith.addf %24, %27 : vector<16x64xf32>
    %29 = vector.extract_strided_slice %1 {offsets = [1, 0], sizes = [16, 128], strides = [1, 1]} : vector<38x128xf32> to vector<16x128xf32>
    %30 = arith.truncf %29 : vector<16x128xf32> to vector<16x128xbf16>
    %cst_21 = arith.constant dense<0.000000e+00> : vector<16x64xf32>
    %31 = tpu.matmul %30, %9, %cst_21 {dimension_numbers = #tpu.dot_dimension_numbers<[1], [0], [0], [1], [0, 0, 1, 1], [], []>} : vector<16x128xbf16>, vector<128x64xbf16>, vector<16x64xf32> -> vector<16x64xf32>
    %32 = arith.addf %28, %31 : vector<16x64xf32>
    %33 = vector.extract_strided_slice %0 {offsets = [2, 0], sizes = [16, 128], strides = [1, 1]} : vector<38x128xf32> to vector<16x128xf32>
    %34 = arith.truncf %33 : vector<16x128xf32> to vector<16x128xbf16>
    %cst_22 = arith.constant dense<0.000000e+00> : vector<16x64xf32>
    %35 = tpu.matmul %34, %11, %cst_22 {dimension_numbers = #tpu.dot_dimension_numbers<[1], [0], [0], [1], [0, 0, 1, 1], [], []>} : vector<16x128xbf16>, vector<128x64xbf16>, vector<16x64xf32> -> vector<16x64xf32>
    %36 = arith.addf %32, %35 : vector<16x64xf32>
    %37 = vector.extract_strided_slice %1 {offsets = [2, 0], sizes = [16, 128], strides = [1, 1]} : vector<38x128xf32> to vector<16x128xf32>
    %38 = arith.truncf %37 : vector<16x128xf32> to vector<16x128xbf16>
    %cst_23 = arith.constant dense<0.000000e+00> : vector<16x64xf32>
    %39 = tpu.matmul %38, %13, %cst_23 {dimension_numbers = #tpu.dot_dimension_numbers<[1], [0], [0], [1], [0, 0, 1, 1], [], []>} : vector<16x128xbf16>, vector<128x64xbf16>, vector<16x64xf32> -> vector<16x64xf32>
    %40 = arith.addf %36, %39 : vector<16x64xf32>
    %41 = vector.extract_strided_slice %0 {offsets = [3, 0], sizes = [16, 128], strides = [1, 1]} : vector<38x128xf32> to vector<16x128xf32>
    %42 = arith.truncf %41 : vector<16x128xf32> to vector<16x128xbf16>
    %cst_24 = arith.constant dense<0.000000e+00> : vector<16x64xf32>
    %43 = tpu.matmul %42, %15, %cst_24 {dimension_numbers = #tpu.dot_dimension_numbers<[1], [0], [0], [1], [0, 0, 1, 1], [], []>} : vector<16x128xbf16>, vector<128x64xbf16>, vector<16x64xf32> -> vector<16x64xf32>
    %44 = arith.addf %40, %43 : vector<16x64xf32>
    %cst_25 = arith.constant 0.000000e+00 : f32
    %45 = vector.broadcast %cst_25 : f32 to vector<16x64xf32>
    %46 = vector.extract_strided_slice %0 {offsets = [19, 0], sizes = [16, 128], strides = [1, 1]} : vector<38x128xf32> to vector<16x128xf32>
    %47 = arith.truncf %46 : vector<16x128xf32> to vector<16x128xbf16>
    %cst_26 = arith.constant dense<0.000000e+00> : vector<16x64xf32>
    %48 = tpu.matmul %47, %3, %cst_26 {dimension_numbers = #tpu.dot_dimension_numbers<[1], [0], [0], [1], [0, 0, 1, 1], [], []>} : vector<16x128xbf16>, vector<128x64xbf16>, vector<16x64xf32> -> vector<16x64xf32>
    %49 = arith.addf %45, %48 : vector<16x64xf32>
    %50 = vector.extract_strided_slice %1 {offsets = [19, 0], sizes = [16, 128], strides = [1, 1]} : vector<38x128xf32> to vector<16x128xf32>
    %51 = arith.truncf %50 : vector<16x128xf32> to vector<16x128xbf16>
    %cst_27 = arith.constant dense<0.000000e+00> : vector<16x64xf32>
    %52 = tpu.matmul %51, %5, %cst_27 {dimension_numbers = #tpu.dot_dimension_numbers<[1], [0], [0], [1], [0, 0, 1, 1], [], []>} : vector<16x128xbf16>, vector<128x64xbf16>, vector<16x64xf32> -> vector<16x64xf32>
    %53 = arith.addf %49, %52 : vector<16x64xf32>
    %54 = vector.extract_strided_slice %0 {offsets = [20, 0], sizes = [16, 128], strides = [1, 1]} : vector<38x128xf32> to vector<16x128xf32>
    %55 = arith.truncf %54 : vector<16x128xf32> to vector<16x128xbf16>
    %cst_28 = arith.constant dense<0.000000e+00> : vector<16x64xf32>
    %56 = tpu.matmul %55, %7, %cst_28 {dimension_numbers = #tpu.dot_dimension_numbers<[1], [0], [0], [1], [0, 0, 1, 1], [], []>} : vector<16x128xbf16>, vector<128x64xbf16>, vector<16x64xf32> -> vector<16x64xf32>
    %57 = arith.addf %53, %56 : vector<16x64xf32>
    %58 = vector.extract_strided_slice %1 {offsets = [20, 0], sizes = [16, 128], strides = [1, 1]} : vector<38x128xf32> to vector<16x128xf32>
    %59 = arith.truncf %58 : vector<16x128xf32> to vector<16x128xbf16>
    %cst_29 = arith.constant dense<0.000000e+00> : vector<16x64xf32>
    %60 = tpu.matmul %59, %9, %cst_29 {dimension_numbers = #tpu.dot_dimension_numbers<[1], [0], [0], [1], [0, 0, 1, 1], [], []>} : vector<16x128xbf16>, vector<128x64xbf16>, vector<16x64xf32> -> vector<16x64xf32>
    %61 = arith.addf %57, %60 : vector<16x64xf32>
    %62 = vector.extract_strided_slice %0 {offsets = [21, 0], sizes = [16, 128], strides = [1, 1]} : vector<38x128xf32> to vector<16x128xf32>
    %63 = arith.truncf %62 : vector<16x128xf32> to vector<16x128xbf16>
    %cst_30 = arith.constant dense<0.000000e+00> : vector<16x64xf32>
    %64 = tpu.matmul %63, %11, %cst_30 {dimension_numbers = #tpu.dot_dimension_numbers<[1], [0], [0], [1], [0, 0, 1, 1], [], []>} : vector<16x128xbf16>, vector<128x64xbf16>, vector<16x64xf32> -> vector<16x64xf32>
    %65 = arith.addf %61, %64 : vector<16x64xf32>
    %66 = vector.extract_strided_slice %1 {offsets = [21, 0], sizes = [16, 128], strides = [1, 1]} : vector<38x128xf32> to vector<16x128xf32>
    %67 = arith.truncf %66 : vector<16x128xf32> to vector<16x128xbf16>
    %cst_31 = arith.constant dense<0.000000e+00> : vector<16x64xf32>
    %68 = tpu.matmul %67, %13, %cst_31 {dimension_numbers = #tpu.dot_dimension_numbers<[1], [0], [0], [1], [0, 0, 1, 1], [], []>} : vector<16x128xbf16>, vector<128x64xbf16>, vector<16x64xf32> -> vector<16x64xf32>
    %69 = arith.addf %65, %68 : vector<16x64xf32>
    %70 = vector.extract_strided_slice %0 {offsets = [22, 0], sizes = [16, 128], strides = [1, 1]} : vector<38x128xf32> to vector<16x128xf32>
    %71 = arith.truncf %70 : vector<16x128xf32> to vector<16x128xbf16>
    %cst_32 = arith.constant dense<0.000000e+00> : vector<16x64xf32>
    %72 = tpu.matmul %71, %15, %cst_32 {dimension_numbers = #tpu.dot_dimension_numbers<[1], [0], [0], [1], [0, 0, 1, 1], [], []>} : vector<16x128xbf16>, vector<128x64xbf16>, vector<16x64xf32> -> vector<16x64xf32>
    %73 = arith.addf %69, %72 : vector<16x64xf32>
    %c0_33 = arith.constant 0 : index
    %c0_34 = arith.constant 0 : index
    %74 = vector.load %arg5[%c0_33, %c0_34] : memref<64x4xf32, #tpu.memory_space<vmem>>, vector<64x4xf32>
    %cst_35 = arith.constant 0.000000e+00 : f32
    %75 = vector.broadcast %cst_35 : f32 to vector<1x64xf32>
    %cst_36 = arith.constant 0.000000e+00 : f32
    %76 = vector.broadcast %cst_36 : f32 to vector<1x64xf32>
    %cst_37 = arith.constant dense<0.000000e+00> : vector<64xf32>
    %77 = vector.multi_reduction <add>, %44, %cst_37 [0] : vector<16x64xf32> to vector<64xf32>
    %78 = vector.shape_cast %77 : vector<64xf32> to vector<1x64xf32>
    %79 = arith.addf %75, %78 : vector<1x64xf32>
    %80 = arith.mulf %44, %44 : vector<16x64xf32>
    %cst_38 = arith.constant dense<0.000000e+00> : vector<64xf32>
    %81 = vector.multi_reduction <add>, %80, %cst_38 [0] : vector<16x64xf32> to vector<64xf32>
    %82 = vector.shape_cast %81 : vector<64xf32> to vector<1x64xf32>
    %83 = arith.addf %76, %82 : vector<1x64xf32>
    %cst_39 = arith.constant dense<0.000000e+00> : vector<64xf32>
    %84 = vector.multi_reduction <add>, %73, %cst_39 [0] : vector<16x64xf32> to vector<64xf32>
    %85 = vector.shape_cast %84 : vector<64xf32> to vector<1x64xf32>
    %86 = arith.addf %79, %85 : vector<1x64xf32>
    %87 = arith.mulf %73, %73 : vector<16x64xf32>
    %cst_40 = arith.constant dense<0.000000e+00> : vector<64xf32>
    %88 = vector.multi_reduction <add>, %87, %cst_40 [0] : vector<16x64xf32> to vector<64xf32>
    %89 = vector.shape_cast %88 : vector<64xf32> to vector<1x64xf32>
    %90 = arith.addf %83, %89 : vector<1x64xf32>
    %cst_41 = arith.constant dense<0.000000e+00> : vector<1x4xf32>
    %91 = tpu.matmul %86, %74, %cst_41 {dimension_numbers = #tpu.dot_dimension_numbers<[1], [0], [0], [1], [0, 0, 1, 1], [], []>} : vector<1x64xf32>, vector<64x4xf32>, vector<1x4xf32> -> vector<1x4xf32>
    %cst_42 = arith.constant 5.120000e+02 : f32
    %92 = vector.broadcast %cst_42 : f32 to vector<1x4xf32>
    %93 = arith.divf %91, %92 : vector<1x4xf32>
    %cst_43 = arith.constant dense<0.000000e+00> : vector<1x4xf32>
    %94 = tpu.matmul %90, %74, %cst_43 {dimension_numbers = #tpu.dot_dimension_numbers<[1], [0], [0], [1], [0, 0, 1, 1], [], []>} : vector<1x64xf32>, vector<64x4xf32>, vector<1x4xf32> -> vector<1x4xf32>
    %cst_44 = arith.constant 5.120000e+02 : f32
    %95 = vector.broadcast %cst_44 : f32 to vector<1x4xf32>
    %96 = arith.divf %94, %95 : vector<1x4xf32>
    %97 = arith.mulf %93, %93 : vector<1x4xf32>
    %98 = arith.subf %96, %97 : vector<1x4xf32>
    %c0_45 = arith.constant 0 : index
    %c0_46 = arith.constant 0 : index
    %99 = vector.load %arg3[%c0_45, %c0_46] : memref<1x4xf32, #tpu.memory_space<vmem>>, vector<1x4xf32>
    %cst_47 = arith.constant 9.99999974E-6 : f32
    %100 = vector.broadcast %cst_47 : f32 to vector<1x4xf32>
    %101 = arith.addf %98, %100 : vector<1x4xf32>
    %102 = math.rsqrt %101 : vector<1x4xf32>
    %103 = arith.mulf %99, %102 : vector<1x4xf32>
    %c0_48 = arith.constant 0 : index
    %c0_49 = arith.constant 0 : index
    %104 = vector.load %arg4[%c0_48, %c0_49] : memref<1x4xf32, #tpu.memory_space<vmem>>, vector<1x4xf32>
    %105 = arith.mulf %93, %103 : vector<1x4xf32>
    %106 = arith.subf %104, %105 : vector<1x4xf32>
    %c0_50 = arith.constant 0 : index
    %c0_51 = arith.constant 0 : index
    %107 = vector.load %arg6[%c0_50, %c0_51] : memref<4x64xf32, #tpu.memory_space<vmem>>, vector<4x64xf32>
    %cst_52 = arith.constant dense<0.000000e+00> : vector<1x64xf32>
    %108 = tpu.matmul %103, %107, %cst_52 {dimension_numbers = #tpu.dot_dimension_numbers<[1], [0], [0], [1], [0, 0, 1, 1], [], []>} : vector<1x4xf32>, vector<4x64xf32>, vector<1x64xf32> -> vector<1x64xf32>
    %cst_53 = arith.constant dense<0.000000e+00> : vector<1x64xf32>
    %109 = tpu.matmul %106, %107, %cst_53 {dimension_numbers = #tpu.dot_dimension_numbers<[1], [0], [0], [1], [0, 0, 1, 1], [], []>} : vector<1x4xf32>, vector<4x64xf32>, vector<1x64xf32> -> vector<1x64xf32>
    %c0_54 = arith.constant 0 : index
    %c0_55 = arith.constant 0 : index
    %c0_56 = arith.constant 0 : index
    %110 = vector.load %arg7[%c0_54, %c0_55, %c0_56] : memref<3x64x32xf32, #tpu.memory_space<vmem>>, vector<1x64x32xf32>
    %111 = vector.shape_cast %110 : vector<1x64x32xf32> to vector<64x32xf32>
    %c1_57 = arith.constant 1 : index
    %c0_58 = arith.constant 0 : index
    %c0_59 = arith.constant 0 : index
    %112 = vector.load %arg7[%c1_57, %c0_58, %c0_59] : memref<3x64x32xf32, #tpu.memory_space<vmem>>, vector<1x64x32xf32>
    %113 = vector.shape_cast %112 : vector<1x64x32xf32> to vector<64x32xf32>
    %c2_60 = arith.constant 2 : index
    %c0_61 = arith.constant 0 : index
    %c0_62 = arith.constant 0 : index
    %114 = vector.load %arg7[%c2_60, %c0_61, %c0_62] : memref<3x64x32xf32, #tpu.memory_space<vmem>>, vector<1x64x32xf32>
    %115 = vector.shape_cast %114 : vector<1x64x32xf32> to vector<64x32xf32>
    %c0_63 = arith.constant 0 : index
    %c0_64 = arith.constant 0 : index
    %c0_65 = arith.constant 0 : index
    %116 = vector.load %arg8[%c0_63, %c0_64, %c0_65] : memref<3x8x16xf32, #tpu.memory_space<vmem>>, vector<1x8x16xf32>
    %117 = vector.shape_cast %116 : vector<1x8x16xf32> to vector<8x16xf32>
    %c1_66 = arith.constant 1 : index
    %c0_67 = arith.constant 0 : index
    %c0_68 = arith.constant 0 : index
    %118 = vector.load %arg8[%c1_66, %c0_67, %c0_68] : memref<3x8x16xf32, #tpu.memory_space<vmem>>, vector<1x8x16xf32>
    %119 = vector.shape_cast %118 : vector<1x8x16xf32> to vector<8x16xf32>
    %c2_69 = arith.constant 2 : index
    %c0_70 = arith.constant 0 : index
    %c0_71 = arith.constant 0 : index
    %120 = vector.load %arg8[%c2_69, %c0_70, %c0_71] : memref<3x8x16xf32, #tpu.memory_space<vmem>>, vector<1x8x16xf32>
    %121 = vector.shape_cast %120 : vector<1x8x16xf32> to vector<8x16xf32>
    %cst_72 = arith.constant 0.000000e+00 : f32
    %122 = vector.broadcast %cst_72 : f32 to vector<1x32xf32>
    %cst_73 = arith.constant 0.000000e+00 : f32
    %123 = vector.broadcast %cst_73 : f32 to vector<1x32xf32>
    %124 = vector.broadcast %108 : vector<1x64xf32> to vector<16x64xf32>
    %125 = arith.mulf %44, %124 : vector<16x64xf32>
    %126 = vector.broadcast %109 : vector<1x64xf32> to vector<16x64xf32>
    %127 = arith.addf %125, %126 : vector<16x64xf32>
    %cst_74 = arith.constant 0.000000e+00 : f32
    %128 = vector.broadcast %cst_74 : f32 to vector<16x64xf32>
    %129 = arith.maximumf %127, %128 : vector<16x64xf32>
    %cst_75 = arith.constant dense<0.000000e+00> : vector<16x32xf32>
    %130 = tpu.matmul %129, %111, %cst_75 {dimension_numbers = #tpu.dot_dimension_numbers<[1], [0], [0], [1], [0, 0, 1, 1], [], []>} : vector<16x64xf32>, vector<64x32xf32>, vector<16x32xf32> -> vector<16x32xf32>
    %cst_76 = arith.constant dense<0.000000e+00> : vector<16x32xf32>
    %131 = tpu.matmul %129, %113, %cst_76 {dimension_numbers = #tpu.dot_dimension_numbers<[1], [0], [0], [1], [0, 0, 1, 1], [], []>} : vector<16x64xf32>, vector<64x32xf32>, vector<16x32xf32> -> vector<16x32xf32>
    %132 = arith.maximumf %130, %131 : vector<16x32xf32>
    %cst_77 = arith.constant dense<0.000000e+00> : vector<16x32xf32>
    %133 = tpu.matmul %129, %115, %cst_77 {dimension_numbers = #tpu.dot_dimension_numbers<[1], [0], [0], [1], [0, 0, 1, 1], [], []>} : vector<16x64xf32>, vector<64x32xf32>, vector<16x32xf32> -> vector<16x32xf32>
    %134 = arith.maximumf %132, %133 : vector<16x32xf32>
    %cst_78 = arith.constant dense<0.000000e+00> : vector<8x32xf32>
    %135 = tpu.matmul %117, %134, %cst_78 {dimension_numbers = #tpu.dot_dimension_numbers<[1], [0], [0], [1], [0, 0, 1, 1], [], []>} : vector<8x16xf32>, vector<16x32xf32>, vector<8x32xf32> -> vector<8x32xf32>
    %cst_79 = arith.constant dense<0.000000e+00> : vector<8x32xf32>
    %136 = tpu.matmul %119, %134, %cst_79 {dimension_numbers = #tpu.dot_dimension_numbers<[1], [0], [0], [1], [0, 0, 1, 1], [], []>} : vector<8x16xf32>, vector<16x32xf32>, vector<8x32xf32> -> vector<8x32xf32>
    %137 = arith.maximumf %135, %136 : vector<8x32xf32>
    %cst_80 = arith.constant dense<0.000000e+00> : vector<8x32xf32>
    %138 = tpu.matmul %121, %134, %cst_80 {dimension_numbers = #tpu.dot_dimension_numbers<[1], [0], [0], [1], [0, 0, 1, 1], [], []>} : vector<8x16xf32>, vector<16x32xf32>, vector<8x32xf32> -> vector<8x32xf32>
    %139 = arith.maximumf %137, %138 : vector<8x32xf32>
    %c0_81 = arith.constant 0 : index
    %c0_82 = arith.constant 0 : index
    %140 = vector.load %arg10[%c0_81, %c0_82] : memref<16x32xf32, #tpu.memory_space<vmem>>, vector<8x32xf32>
    tpu.vector_store %arg10[%c0_81, %c0_82], %139 {strides = array<i32>} : memref<16x32xf32, #tpu.memory_space<vmem>>, vector<8x32xf32>,
    %cst_83 = arith.constant dense<0.000000e+00> : vector<32xf32>
    %141 = vector.multi_reduction <add>, %139, %cst_83 [0] : vector<8x32xf32> to vector<32xf32>
    %142 = vector.shape_cast %141 : vector<32xf32> to vector<1x32xf32>
    %143 = arith.addf %122, %142 : vector<1x32xf32>
    %144 = arith.mulf %139, %139 : vector<8x32xf32>
    %cst_84 = arith.constant dense<0.000000e+00> : vector<32xf32>
    %145 = vector.multi_reduction <add>, %144, %cst_84 [0] : vector<8x32xf32> to vector<32xf32>
    %146 = vector.shape_cast %145 : vector<32xf32> to vector<1x32xf32>
    %147 = arith.addf %123, %146 : vector<1x32xf32>
    %148 = vector.broadcast %108 : vector<1x64xf32> to vector<16x64xf32>
    %149 = arith.mulf %73, %148 : vector<16x64xf32>
    %150 = vector.broadcast %109 : vector<1x64xf32> to vector<16x64xf32>
    %151 = arith.addf %149, %150 : vector<16x64xf32>
    %cst_85 = arith.constant 0.000000e+00 : f32
    %152 = vector.broadcast %cst_85 : f32 to vector<16x64xf32>
    %153 = arith.maximumf %151, %152 : vector<16x64xf32>
    %cst_86 = arith.constant dense<0.000000e+00> : vector<16x32xf32>
    %154 = tpu.matmul %153, %111, %cst_86 {dimension_numbers = #tpu.dot_dimension_numbers<[1], [0], [0], [1], [0, 0, 1, 1], [], []>} : vector<16x64xf32>, vector<64x32xf32>, vector<16x32xf32> -> vector<16x32xf32>
    %cst_87 = arith.constant dense<0.000000e+00> : vector<16x32xf32>
    %155 = tpu.matmul %153, %113, %cst_87 {dimension_numbers = #tpu.dot_dimension_numbers<[1], [0], [0], [1], [0, 0, 1, 1], [], []>} : vector<16x64xf32>, vector<64x32xf32>, vector<16x32xf32> -> vector<16x32xf32>
    %156 = arith.maximumf %154, %155 : vector<16x32xf32>
    %cst_88 = arith.constant dense<0.000000e+00> : vector<16x32xf32>
    %157 = tpu.matmul %153, %115, %cst_88 {dimension_numbers = #tpu.dot_dimension_numbers<[1], [0], [0], [1], [0, 0, 1, 1], [], []>} : vector<16x64xf32>, vector<64x32xf32>, vector<16x32xf32> -> vector<16x32xf32>
    %158 = arith.maximumf %156, %157 : vector<16x32xf32>
    %cst_89 = arith.constant dense<0.000000e+00> : vector<8x32xf32>
    %159 = tpu.matmul %117, %158, %cst_89 {dimension_numbers = #tpu.dot_dimension_numbers<[1], [0], [0], [1], [0, 0, 1, 1], [], []>} : vector<8x16xf32>, vector<16x32xf32>, vector<8x32xf32> -> vector<8x32xf32>
    %cst_90 = arith.constant dense<0.000000e+00> : vector<8x32xf32>
    %160 = tpu.matmul %119, %158, %cst_90 {dimension_numbers = #tpu.dot_dimension_numbers<[1], [0], [0], [1], [0, 0, 1, 1], [], []>} : vector<8x16xf32>, vector<16x32xf32>, vector<8x32xf32> -> vector<8x32xf32>
    %161 = arith.maximumf %159, %160 : vector<8x32xf32>
    %cst_91 = arith.constant dense<0.000000e+00> : vector<8x32xf32>
    %162 = tpu.matmul %121, %158, %cst_91 {dimension_numbers = #tpu.dot_dimension_numbers<[1], [0], [0], [1], [0, 0, 1, 1], [], []>} : vector<8x16xf32>, vector<16x32xf32>, vector<8x32xf32> -> vector<8x32xf32>
    %163 = arith.maximumf %161, %162 : vector<8x32xf32>
    %c8 = arith.constant 8 : index
    %c0_92 = arith.constant 0 : index
    %164 = vector.load %arg10[%c8, %c0_92] : memref<16x32xf32, #tpu.memory_space<vmem>>, vector<8x32xf32>
    tpu.vector_store %arg10[%c8, %c0_92], %163 {strides = array<i32>} : memref<16x32xf32, #tpu.memory_space<vmem>>, vector<8x32xf32>,
    %cst_93 = arith.constant dense<0.000000e+00> : vector<32xf32>
    %165 = vector.multi_reduction <add>, %163, %cst_93 [0] : vector<8x32xf32> to vector<32xf32>
    %166 = vector.shape_cast %165 : vector<32xf32> to vector<1x32xf32>
    %167 = arith.addf %143, %166 : vector<1x32xf32>
    %168 = arith.mulf %163, %163 : vector<8x32xf32>
    %cst_94 = arith.constant dense<0.000000e+00> : vector<32xf32>
    %169 = vector.multi_reduction <add>, %168, %cst_94 [0] : vector<8x32xf32> to vector<32xf32>
    %170 = vector.shape_cast %169 : vector<32xf32> to vector<1x32xf32>
    %171 = arith.addf %147, %170 : vector<1x32xf32>
    %c0_95 = arith.constant 0 : index
    %c0_96 = arith.constant 0 : index
    %172 = vector.load %arg9[%c0_95, %c0_96] : memref<32x4xf32, #tpu.memory_space<vmem>>, vector<32x4xf32>
    %cst_97 = arith.constant dense<0.000000e+00> : vector<1x4xf32>
    %173 = tpu.matmul %167, %172, %cst_97 {dimension_numbers = #tpu.dot_dimension_numbers<[1], [0], [0], [1], [0, 0, 1, 1], [], []>} : vector<1x32xf32>, vector<32x4xf32>, vector<1x4xf32> -> vector<1x4xf32>
    %c0_98 = arith.constant 0 : index
    %c0_99 = arith.constant 0 : index
    %174 = vector.load %arg11[%c0_98, %c0_99] : memref<2x4xf32, #tpu.memory_space<vmem>>, vector<1x4xf32>
    tpu.vector_store %arg11[%c0_98, %c0_99], %173 {strides = array<i32>} : memref<2x4xf32, #tpu.memory_space<vmem>>, vector<1x4xf32>,
    %cst_100 = arith.constant dense<0.000000e+00> : vector<1x4xf32>
    %175 = tpu.matmul %171, %172, %cst_100 {dimension_numbers = #tpu.dot_dimension_numbers<[1], [0], [0], [1], [0, 0, 1, 1], [], []>} : vector<1x32xf32>, vector<32x4xf32>, vector<1x4xf32> -> vector<1x4xf32>
    %c1_101 = arith.constant 1 : index
    %c0_102 = arith.constant 0 : index
    %176 = vector.load %arg11[%c1_101, %c0_102] : memref<2x4xf32, #tpu.memory_space<vmem>>, vector<1x4xf32>
    tpu.vector_store %arg11[%c1_101, %c0_102], %175 {strides = array<i32>} : memref<2x4xf32, #tpu.memory_space<vmem>>, vector<1x4xf32>,
    return
  }
}

module attributes {stable_mosaic.version = 11 : i64} {
  func.func @kernel(%arg0: memref<10x32xf32, #tpu.memory_space<vmem>>, %arg1: memref<10x32xf32, #tpu.memory_space<vmem>>, %arg2: memref<2x4xf32, #tpu.memory_space<vmem>>, %arg3: memref<1x4xf32, #tpu.memory_space<vmem>>, %arg4: memref<1x4xf32, #tpu.memory_space<vmem>>, %arg5: memref<4x32xf32, #tpu.memory_space<vmem>>, %arg6: memref<3x32x32xbf16, #tpu.memory_space<vmem>>, %arg7: memref<1x32xf32, #tpu.memory_space<vmem>>, %arg8: memref<3x32x32xbf16, #tpu.memory_space<vmem>>, %arg9: memref<1x32xf32, #tpu.memory_space<vmem>>, %arg10: memref<32x8xf32, #tpu.memory_space<vmem>>, %arg11: memref<8x32xf32, #tpu.memory_space<vmem>>, %arg12: memref<1x8xf32, #tpu.memory_space<vmem>>, %arg13: memref<1x8xf32, #tpu.memory_space<vmem>>, %arg14: memref<1x8xf32, #tpu.memory_space<vmem>>, %arg15: memref<1x8xf32, #tpu.memory_space<vmem>>, %arg16: memref<3x32x32xbf16, #tpu.memory_space<vmem>>, %arg17: memref<1x32xf32, #tpu.memory_space<vmem>>, %arg18: memref<8x32xf32, #tpu.memory_space<vmem>>, %arg19: memref<2x8xf32, #tpu.memory_space<vmem>>, %arg20: memref<6x32xf32, #tpu.memory_space<vmem>>) attributes {dimension_semantics = [], scalar_prefetch = 0 : i64, scratch_operands = 1 : i64, tpu.core_type = #tpu.core_type<tc>} {
    %c0 = arith.constant 0 : index
    %c0_0 = arith.constant 0 : index
    %0 = vector.load %arg0[%c0, %c0_0] : memref<10x32xf32, #tpu.memory_space<vmem>>, vector<10x32xf32>
    %c0_1 = arith.constant 0 : index
    %c0_2 = arith.constant 0 : index
    %1 = vector.load %arg1[%c0_1, %c0_2] : memref<10x32xf32, #tpu.memory_space<vmem>>, vector<10x32xf32>
    %c0_3 = arith.constant 0 : index
    %c0_4 = arith.constant 0 : index
    %2 = vector.load %arg2[%c0_3, %c0_4] : memref<2x4xf32, #tpu.memory_space<vmem>>, vector<1x4xf32>
    %cst = arith.constant 1.280000e+02 : f32
    %3 = vector.broadcast %cst : f32 to vector<1x4xf32>
    %4 = arith.divf %2, %3 : vector<1x4xf32>
    %c1 = arith.constant 1 : index
    %c0_5 = arith.constant 0 : index
    %5 = vector.load %arg2[%c1, %c0_5] : memref<2x4xf32, #tpu.memory_space<vmem>>, vector<1x4xf32>
    %cst_6 = arith.constant 1.280000e+02 : f32
    %6 = vector.broadcast %cst_6 : f32 to vector<1x4xf32>
    %7 = arith.divf %5, %6 : vector<1x4xf32>
    %8 = arith.mulf %4, %4 : vector<1x4xf32>
    %9 = arith.subf %7, %8 : vector<1x4xf32>
    %c0_7 = arith.constant 0 : index
    %c0_8 = arith.constant 0 : index
    %10 = vector.load %arg3[%c0_7, %c0_8] : memref<1x4xf32, #tpu.memory_space<vmem>>, vector<1x4xf32>
    %cst_9 = arith.constant 9.99999974E-6 : f32
    %11 = vector.broadcast %cst_9 : f32 to vector<1x4xf32>
    %12 = arith.addf %9, %11 : vector<1x4xf32>
    %13 = math.rsqrt %12 : vector<1x4xf32>
    %14 = arith.mulf %10, %13 : vector<1x4xf32>
    %c0_10 = arith.constant 0 : index
    %c0_11 = arith.constant 0 : index
    %15 = vector.load %arg4[%c0_10, %c0_11] : memref<1x4xf32, #tpu.memory_space<vmem>>, vector<1x4xf32>
    %16 = arith.mulf %4, %14 : vector<1x4xf32>
    %17 = arith.subf %15, %16 : vector<1x4xf32>
    %c0_12 = arith.constant 0 : index
    %c0_13 = arith.constant 0 : index
    %18 = vector.load %arg5[%c0_12, %c0_13] : memref<4x32xf32, #tpu.memory_space<vmem>>, vector<4x32xf32>
    %cst_14 = arith.constant dense<0.000000e+00> : vector<1x32xf32>
    %19 = tpu.matmul %14, %18, %cst_14 {dimension_numbers = #tpu.dot_dimension_numbers<[1], [0], [0], [1], [0, 0, 1, 1], [], []>} : vector<1x4xf32>, vector<4x32xf32>, vector<1x32xf32> -> vector<1x32xf32>
    %cst_15 = arith.constant dense<0.000000e+00> : vector<1x32xf32>
    %20 = tpu.matmul %17, %18, %cst_15 {dimension_numbers = #tpu.dot_dimension_numbers<[1], [0], [0], [1], [0, 0, 1, 1], [], []>} : vector<1x4xf32>, vector<4x32xf32>, vector<1x32xf32> -> vector<1x32xf32>
    %21 = vector.broadcast %19 : vector<1x32xf32> to vector<10x32xf32>
    %22 = arith.mulf %0, %21 : vector<10x32xf32>
    %23 = vector.broadcast %20 : vector<1x32xf32> to vector<10x32xf32>
    %24 = arith.addf %22, %23 : vector<10x32xf32>
    %cst_16 = arith.constant 0.000000e+00 : f32
    %25 = vector.broadcast %cst_16 : f32 to vector<10x32xf32>
    %26 = arith.maximumf %24, %25 : vector<10x32xf32>
    %27 = tpu.iota {dimensions = array<i32: 0>} : vector<10x32xi32>
    %c1_i32 = arith.constant 1 : i32
    %28 = vector.broadcast %c1_i32 : i32 to vector<10x32xi32>
    %29 = arith.cmpi sge, %27, %28 : vector<10x32xi32>
    %c5_i32 = arith.constant 5 : i32
    %30 = vector.broadcast %c5_i32 : i32 to vector<10x32xi32>
    %31 = arith.cmpi slt, %27, %30 : vector<10x32xi32>
    %32 = arith.andi %29, %31 : vector<10x32xi1>
    %c6_i32 = arith.constant 6 : i32
    %33 = vector.broadcast %c6_i32 : i32 to vector<10x32xi32>
    %34 = arith.cmpi sge, %27, %33 : vector<10x32xi32>
    %c10_i32 = arith.constant 10 : i32
    %35 = vector.broadcast %c10_i32 : i32 to vector<10x32xi32>
    %36 = arith.cmpi slt, %27, %35 : vector<10x32xi32>
    %37 = arith.andi %34, %36 : vector<10x32xi1>
    %38 = arith.ori %32, %37 : vector<10x32xi1>
    %cst_17 = arith.constant 0.000000e+00 : f32
    %39 = vector.broadcast %cst_17 : f32 to vector<10x32xf32>
    %40 = arith.select %38, %26, %39 : vector<10x32xi1>, vector<10x32xf32>
    %41 = vector.broadcast %19 : vector<1x32xf32> to vector<10x32xf32>
    %42 = arith.mulf %1, %41 : vector<10x32xf32>
    %43 = vector.broadcast %20 : vector<1x32xf32> to vector<10x32xf32>
    %44 = arith.addf %42, %43 : vector<10x32xf32>
    %cst_18 = arith.constant 0.000000e+00 : f32
    %45 = vector.broadcast %cst_18 : f32 to vector<10x32xf32>
    %46 = arith.maximumf %44, %45 : vector<10x32xf32>
    %47 = tpu.iota {dimensions = array<i32: 0>} : vector<10x32xi32>
    %c0_i32 = arith.constant 0 : i32
    %48 = vector.broadcast %c0_i32 : i32 to vector<10x32xi32>
    %49 = arith.cmpi sge, %47, %48 : vector<10x32xi32>
    %c4_i32 = arith.constant 4 : i32
    %50 = vector.broadcast %c4_i32 : i32 to vector<10x32xi32>
    %51 = arith.cmpi slt, %47, %50 : vector<10x32xi32>
    %52 = arith.andi %49, %51 : vector<10x32xi1>
    %c5_i32_19 = arith.constant 5 : i32
    %53 = vector.broadcast %c5_i32_19 : i32 to vector<10x32xi32>
    %54 = arith.cmpi sge, %47, %53 : vector<10x32xi32>
    %c9_i32 = arith.constant 9 : i32
    %55 = vector.broadcast %c9_i32 : i32 to vector<10x32xi32>
    %56 = arith.cmpi slt, %47, %55 : vector<10x32xi32>
    %57 = arith.andi %54, %56 : vector<10x32xi1>
    %58 = arith.ori %52, %57 : vector<10x32xi1>
    %cst_20 = arith.constant 0.000000e+00 : f32
    %59 = vector.broadcast %cst_20 : f32 to vector<10x32xf32>
    %60 = arith.select %58, %46, %59 : vector<10x32xi1>, vector<10x32xf32>
    %c0_21 = arith.constant 0 : index
    %c0_22 = arith.constant 0 : index
    %c0_23 = arith.constant 0 : index
    %61 = vector.load %arg6[%c0_21, %c0_22, %c0_23] : memref<3x32x32xbf16, #tpu.memory_space<vmem>>, vector<1x32x32xbf16>
    %62 = vector.shape_cast %61 : vector<1x32x32xbf16> to vector<32x32xbf16>
    %c1_24 = arith.constant 1 : index
    %c0_25 = arith.constant 0 : index
    %c0_26 = arith.constant 0 : index
    %63 = vector.load %arg6[%c1_24, %c0_25, %c0_26] : memref<3x32x32xbf16, #tpu.memory_space<vmem>>, vector<1x32x32xbf16>
    %64 = vector.shape_cast %63 : vector<1x32x32xbf16> to vector<32x32xbf16>
    %c2 = arith.constant 2 : index
    %c0_27 = arith.constant 0 : index
    %c0_28 = arith.constant 0 : index
    %65 = vector.load %arg6[%c2, %c0_27, %c0_28] : memref<3x32x32xbf16, #tpu.memory_space<vmem>>, vector<1x32x32xbf16>
    %66 = vector.shape_cast %65 : vector<1x32x32xbf16> to vector<32x32xbf16>
    %c0_29 = arith.constant 0 : index
    %c0_30 = arith.constant 0 : index
    %c0_31 = arith.constant 0 : index
    %67 = vector.load %arg8[%c0_29, %c0_30, %c0_31] : memref<3x32x32xbf16, #tpu.memory_space<vmem>>, vector<1x32x32xbf16>
    %68 = vector.shape_cast %67 : vector<1x32x32xbf16> to vector<32x32xbf16>
    %c1_32 = arith.constant 1 : index
    %c0_33 = arith.constant 0 : index
    %c0_34 = arith.constant 0 : index
    %69 = vector.load %arg8[%c1_32, %c0_33, %c0_34] : memref<3x32x32xbf16, #tpu.memory_space<vmem>>, vector<1x32x32xbf16>
    %70 = vector.shape_cast %69 : vector<1x32x32xbf16> to vector<32x32xbf16>
    %c2_35 = arith.constant 2 : index
    %c0_36 = arith.constant 0 : index
    %c0_37 = arith.constant 0 : index
    %71 = vector.load %arg8[%c2_35, %c0_36, %c0_37] : memref<3x32x32xbf16, #tpu.memory_space<vmem>>, vector<1x32x32xbf16>
    %72 = vector.shape_cast %71 : vector<1x32x32xbf16> to vector<32x32xbf16>
    %c0_38 = arith.constant 0 : index
    %c0_39 = arith.constant 0 : index
    %73 = vector.load %arg7[%c0_38, %c0_39] : memref<1x32xf32, #tpu.memory_space<vmem>>, vector<1x32xf32>
    %c0_40 = arith.constant 0 : index
    %c0_41 = arith.constant 0 : index
    %74 = vector.load %arg9[%c0_40, %c0_41] : memref<1x32xf32, #tpu.memory_space<vmem>>, vector<1x32xf32>
    %cst_42 = arith.constant 0.000000e+00 : f32
    %75 = vector.broadcast %cst_42 : f32 to vector<4x32xf32>
    %76 = vector.broadcast %73 : vector<1x32xf32> to vector<4x32xf32>
    %77 = arith.addf %75, %76 : vector<4x32xf32>
    %cst_43 = arith.constant 0.000000e+00 : f32
    %78 = vector.broadcast %cst_43 : f32 to vector<4x32xf32>
    %79 = vector.broadcast %74 : vector<1x32xf32> to vector<4x32xf32>
    %80 = arith.addf %78, %79 : vector<4x32xf32>
    %81 = vector.extract_strided_slice %40 {offsets = [0, 0], sizes = [4, 32], strides = [1, 1]} : vector<10x32xf32> to vector<4x32xf32>
    %82 = arith.truncf %81 : vector<4x32xf32> to vector<4x32xbf16>
    %cst_44 = arith.constant dense<0.000000e+00> : vector<4x32xf32>
    %83 = tpu.matmul %82, %62, %cst_44 {dimension_numbers = #tpu.dot_dimension_numbers<[1], [0], [0], [1], [0, 0, 1, 1], [], []>} : vector<4x32xbf16>, vector<32x32xbf16>, vector<4x32xf32> -> vector<4x32xf32>
    %84 = arith.addf %77, %83 : vector<4x32xf32>
    %85 = vector.extract_strided_slice %0 {offsets = [0, 0], sizes = [4, 32], strides = [1, 1]} : vector<10x32xf32> to vector<4x32xf32>
    %86 = arith.truncf %85 : vector<4x32xf32> to vector<4x32xbf16>
    %cst_45 = arith.constant dense<0.000000e+00> : vector<4x32xf32>
    %87 = tpu.matmul %86, %68, %cst_45 {dimension_numbers = #tpu.dot_dimension_numbers<[1], [0], [0], [1], [0, 0, 1, 1], [], []>} : vector<4x32xbf16>, vector<32x32xbf16>, vector<4x32xf32> -> vector<4x32xf32>
    %88 = arith.addf %80, %87 : vector<4x32xf32>
    %89 = vector.extract_strided_slice %60 {offsets = [0, 0], sizes = [4, 32], strides = [1, 1]} : vector<10x32xf32> to vector<4x32xf32>
    %90 = arith.truncf %89 : vector<4x32xf32> to vector<4x32xbf16>
    %cst_46 = arith.constant dense<0.000000e+00> : vector<4x32xf32>
    %91 = tpu.matmul %90, %64, %cst_46 {dimension_numbers = #tpu.dot_dimension_numbers<[1], [0], [0], [1], [0, 0, 1, 1], [], []>} : vector<4x32xbf16>, vector<32x32xbf16>, vector<4x32xf32> -> vector<4x32xf32>
    %92 = arith.addf %84, %91 : vector<4x32xf32>
    %93 = vector.extract_strided_slice %1 {offsets = [0, 0], sizes = [4, 32], strides = [1, 1]} : vector<10x32xf32> to vector<4x32xf32>
    %94 = arith.truncf %93 : vector<4x32xf32> to vector<4x32xbf16>
    %cst_47 = arith.constant dense<0.000000e+00> : vector<4x32xf32>
    %95 = tpu.matmul %94, %70, %cst_47 {dimension_numbers = #tpu.dot_dimension_numbers<[1], [0], [0], [1], [0, 0, 1, 1], [], []>} : vector<4x32xbf16>, vector<32x32xbf16>, vector<4x32xf32> -> vector<4x32xf32>
    %96 = arith.addf %88, %95 : vector<4x32xf32>
    %97 = vector.extract_strided_slice %40 {offsets = [1, 0], sizes = [4, 32], strides = [1, 1]} : vector<10x32xf32> to vector<4x32xf32>
    %98 = arith.truncf %97 : vector<4x32xf32> to vector<4x32xbf16>
    %cst_48 = arith.constant dense<0.000000e+00> : vector<4x32xf32>
    %99 = tpu.matmul %98, %66, %cst_48 {dimension_numbers = #tpu.dot_dimension_numbers<[1], [0], [0], [1], [0, 0, 1, 1], [], []>} : vector<4x32xbf16>, vector<32x32xbf16>, vector<4x32xf32> -> vector<4x32xf32>
    %100 = arith.addf %92, %99 : vector<4x32xf32>
    %101 = vector.extract_strided_slice %0 {offsets = [1, 0], sizes = [4, 32], strides = [1, 1]} : vector<10x32xf32> to vector<4x32xf32>
    %102 = arith.truncf %101 : vector<4x32xf32> to vector<4x32xbf16>
    %cst_49 = arith.constant dense<0.000000e+00> : vector<4x32xf32>
    %103 = tpu.matmul %102, %72, %cst_49 {dimension_numbers = #tpu.dot_dimension_numbers<[1], [0], [0], [1], [0, 0, 1, 1], [], []>} : vector<4x32xbf16>, vector<32x32xbf16>, vector<4x32xf32> -> vector<4x32xf32>
    %104 = arith.addf %96, %103 : vector<4x32xf32>
    %cst_50 = arith.constant 0.000000e+00 : f32
    %105 = vector.broadcast %cst_50 : f32 to vector<4x32xf32>
    %106 = vector.broadcast %73 : vector<1x32xf32> to vector<4x32xf32>
    %107 = arith.addf %105, %106 : vector<4x32xf32>
    %cst_51 = arith.constant 0.000000e+00 : f32
    %108 = vector.broadcast %cst_51 : f32 to vector<4x32xf32>
    %109 = vector.broadcast %74 : vector<1x32xf32> to vector<4x32xf32>
    %110 = arith.addf %108, %109 : vector<4x32xf32>
    %111 = vector.extract_strided_slice %40 {offsets = [5, 0], sizes = [4, 32], strides = [1, 1]} : vector<10x32xf32> to vector<4x32xf32>
    %112 = arith.truncf %111 : vector<4x32xf32> to vector<4x32xbf16>
    %cst_52 = arith.constant dense<0.000000e+00> : vector<4x32xf32>
    %113 = tpu.matmul %112, %62, %cst_52 {dimension_numbers = #tpu.dot_dimension_numbers<[1], [0], [0], [1], [0, 0, 1, 1], [], []>} : vector<4x32xbf16>, vector<32x32xbf16>, vector<4x32xf32> -> vector<4x32xf32>
    %114 = arith.addf %107, %113 : vector<4x32xf32>
    %115 = vector.extract_strided_slice %0 {offsets = [5, 0], sizes = [4, 32], strides = [1, 1]} : vector<10x32xf32> to vector<4x32xf32>
    %116 = arith.truncf %115 : vector<4x32xf32> to vector<4x32xbf16>
    %cst_53 = arith.constant dense<0.000000e+00> : vector<4x32xf32>
    %117 = tpu.matmul %116, %68, %cst_53 {dimension_numbers = #tpu.dot_dimension_numbers<[1], [0], [0], [1], [0, 0, 1, 1], [], []>} : vector<4x32xbf16>, vector<32x32xbf16>, vector<4x32xf32> -> vector<4x32xf32>
    %118 = arith.addf %110, %117 : vector<4x32xf32>
    %119 = vector.extract_strided_slice %60 {offsets = [5, 0], sizes = [4, 32], strides = [1, 1]} : vector<10x32xf32> to vector<4x32xf32>
    %120 = arith.truncf %119 : vector<4x32xf32> to vector<4x32xbf16>
    %cst_54 = arith.constant dense<0.000000e+00> : vector<4x32xf32>
    %121 = tpu.matmul %120, %64, %cst_54 {dimension_numbers = #tpu.dot_dimension_numbers<[1], [0], [0], [1], [0, 0, 1, 1], [], []>} : vector<4x32xbf16>, vector<32x32xbf16>, vector<4x32xf32> -> vector<4x32xf32>
    %122 = arith.addf %114, %121 : vector<4x32xf32>
    %123 = vector.extract_strided_slice %1 {offsets = [5, 0], sizes = [4, 32], strides = [1, 1]} : vector<10x32xf32> to vector<4x32xf32>
    %124 = arith.truncf %123 : vector<4x32xf32> to vector<4x32xbf16>
    %cst_55 = arith.constant dense<0.000000e+00> : vector<4x32xf32>
    %125 = tpu.matmul %124, %70, %cst_55 {dimension_numbers = #tpu.dot_dimension_numbers<[1], [0], [0], [1], [0, 0, 1, 1], [], []>} : vector<4x32xbf16>, vector<32x32xbf16>, vector<4x32xf32> -> vector<4x32xf32>
    %126 = arith.addf %118, %125 : vector<4x32xf32>
    %127 = vector.extract_strided_slice %40 {offsets = [6, 0], sizes = [4, 32], strides = [1, 1]} : vector<10x32xf32> to vector<4x32xf32>
    %128 = arith.truncf %127 : vector<4x32xf32> to vector<4x32xbf16>
    %cst_56 = arith.constant dense<0.000000e+00> : vector<4x32xf32>
    %129 = tpu.matmul %128, %66, %cst_56 {dimension_numbers = #tpu.dot_dimension_numbers<[1], [0], [0], [1], [0, 0, 1, 1], [], []>} : vector<4x32xbf16>, vector<32x32xbf16>, vector<4x32xf32> -> vector<4x32xf32>
    %130 = arith.addf %122, %129 : vector<4x32xf32>
    %131 = vector.extract_strided_slice %0 {offsets = [6, 0], sizes = [4, 32], strides = [1, 1]} : vector<10x32xf32> to vector<4x32xf32>
    %132 = arith.truncf %131 : vector<4x32xf32> to vector<4x32xbf16>
    %cst_57 = arith.constant dense<0.000000e+00> : vector<4x32xf32>
    %133 = tpu.matmul %132, %72, %cst_57 {dimension_numbers = #tpu.dot_dimension_numbers<[1], [0], [0], [1], [0, 0, 1, 1], [], []>} : vector<4x32xbf16>, vector<32x32xbf16>, vector<4x32xf32> -> vector<4x32xf32>
    %134 = arith.addf %126, %133 : vector<4x32xf32>
    %c0_58 = arith.constant 0 : index
    %c0_59 = arith.constant 0 : index
    %135 = vector.load %arg10[%c0_58, %c0_59] : memref<32x8xf32, #tpu.memory_space<vmem>>, vector<32x8xf32>
    %c0_60 = arith.constant 0 : index
    %c0_61 = arith.constant 0 : index
    %136 = vector.load %arg11[%c0_60, %c0_61] : memref<8x32xf32, #tpu.memory_space<vmem>>, vector<8x32xf32>
    %cst_62 = arith.constant 0.000000e+00 : f32
    %137 = vector.broadcast %cst_62 : f32 to vector<1x32xf32>
    %cst_63 = arith.constant 0.000000e+00 : f32
    %138 = vector.broadcast %cst_63 : f32 to vector<1x32xf32>
    %cst_64 = arith.constant 0.000000e+00 : f32
    %139 = vector.broadcast %cst_64 : f32 to vector<1x32xf32>
    %cst_65 = arith.constant 0.000000e+00 : f32
    %140 = vector.broadcast %cst_65 : f32 to vector<1x32xf32>
    %cst_66 = arith.constant dense<0.000000e+00> : vector<32xf32>
    %141 = vector.multi_reduction <add>, %100, %cst_66 [0] : vector<4x32xf32> to vector<32xf32>
    %142 = vector.shape_cast %141 : vector<32xf32> to vector<1x32xf32>
    %143 = arith.addf %137, %142 : vector<1x32xf32>
    %144 = arith.mulf %100, %100 : vector<4x32xf32>
    %cst_67 = arith.constant dense<0.000000e+00> : vector<32xf32>
    %145 = vector.multi_reduction <add>, %144, %cst_67 [0] : vector<4x32xf32> to vector<32xf32>
    %146 = vector.shape_cast %145 : vector<32xf32> to vector<1x32xf32>
    %147 = arith.addf %138, %146 : vector<1x32xf32>
    %cst_68 = arith.constant dense<0.000000e+00> : vector<32xf32>
    %148 = vector.multi_reduction <add>, %104, %cst_68 [0] : vector<4x32xf32> to vector<32xf32>
    %149 = vector.shape_cast %148 : vector<32xf32> to vector<1x32xf32>
    %150 = arith.addf %139, %149 : vector<1x32xf32>
    %151 = arith.mulf %104, %104 : vector<4x32xf32>
    %cst_69 = arith.constant dense<0.000000e+00> : vector<32xf32>
    %152 = vector.multi_reduction <add>, %151, %cst_69 [0] : vector<4x32xf32> to vector<32xf32>
    %153 = vector.shape_cast %152 : vector<32xf32> to vector<1x32xf32>
    %154 = arith.addf %140, %153 : vector<1x32xf32>
    %cst_70 = arith.constant dense<0.000000e+00> : vector<32xf32>
    %155 = vector.multi_reduction <add>, %130, %cst_70 [0] : vector<4x32xf32> to vector<32xf32>
    %156 = vector.shape_cast %155 : vector<32xf32> to vector<1x32xf32>
    %157 = arith.addf %143, %156 : vector<1x32xf32>
    %158 = arith.mulf %130, %130 : vector<4x32xf32>
    %cst_71 = arith.constant dense<0.000000e+00> : vector<32xf32>
    %159 = vector.multi_reduction <add>, %158, %cst_71 [0] : vector<4x32xf32> to vector<32xf32>
    %160 = vector.shape_cast %159 : vector<32xf32> to vector<1x32xf32>
    %161 = arith.addf %147, %160 : vector<1x32xf32>
    %cst_72 = arith.constant dense<0.000000e+00> : vector<32xf32>
    %162 = vector.multi_reduction <add>, %134, %cst_72 [0] : vector<4x32xf32> to vector<32xf32>
    %163 = vector.shape_cast %162 : vector<32xf32> to vector<1x32xf32>
    %164 = arith.addf %150, %163 : vector<1x32xf32>
    %165 = arith.mulf %134, %134 : vector<4x32xf32>
    %cst_73 = arith.constant dense<0.000000e+00> : vector<32xf32>
    %166 = vector.multi_reduction <add>, %165, %cst_73 [0] : vector<4x32xf32> to vector<32xf32>
    %167 = vector.shape_cast %166 : vector<32xf32> to vector<1x32xf32>
    %168 = arith.addf %154, %167 : vector<1x32xf32>
    %c0_74 = arith.constant 0 : index
    %c0_75 = arith.constant 0 : index
    %169 = vector.load %arg12[%c0_74, %c0_75] : memref<1x8xf32, #tpu.memory_space<vmem>>, vector<1x8xf32>
    %c0_76 = arith.constant 0 : index
    %c0_77 = arith.constant 0 : index
    %170 = vector.load %arg13[%c0_76, %c0_77] : memref<1x8xf32, #tpu.memory_space<vmem>>, vector<1x8xf32>
    %cst_78 = arith.constant dense<0.000000e+00> : vector<1x8xf32>
    %171 = tpu.matmul %157, %135, %cst_78 {dimension_numbers = #tpu.dot_dimension_numbers<[1], [0], [0], [1], [0, 0, 1, 1], [], []>} : vector<1x32xf32>, vector<32x8xf32>, vector<1x8xf32> -> vector<1x8xf32>
    %cst_79 = arith.constant 3.200000e+01 : f32
    %172 = vector.broadcast %cst_79 : f32 to vector<1x8xf32>
    %173 = arith.divf %171, %172 : vector<1x8xf32>
    %cst_80 = arith.constant dense<0.000000e+00> : vector<1x8xf32>
    %174 = tpu.matmul %161, %135, %cst_80 {dimension_numbers = #tpu.dot_dimension_numbers<[1], [0], [0], [1], [0, 0, 1, 1], [], []>} : vector<1x32xf32>, vector<32x8xf32>, vector<1x8xf32> -> vector<1x8xf32>
    %cst_81 = arith.constant 3.200000e+01 : f32
    %175 = vector.broadcast %cst_81 : f32 to vector<1x8xf32>
    %176 = arith.divf %174, %175 : vector<1x8xf32>
    %177 = arith.mulf %173, %173 : vector<1x8xf32>
    %178 = arith.subf %176, %177 : vector<1x8xf32>
    %cst_82 = arith.constant 9.99999974E-6 : f32
    %179 = vector.broadcast %cst_82 : f32 to vector<1x8xf32>
    %180 = arith.addf %178, %179 : vector<1x8xf32>
    %181 = math.rsqrt %180 : vector<1x8xf32>
    %182 = arith.mulf %169, %181 : vector<1x8xf32>
    %183 = arith.mulf %173, %182 : vector<1x8xf32>
    %184 = arith.subf %170, %183 : vector<1x8xf32>
    %cst_83 = arith.constant dense<0.000000e+00> : vector<1x32xf32>
    %185 = tpu.matmul %182, %136, %cst_83 {dimension_numbers = #tpu.dot_dimension_numbers<[1], [0], [0], [1], [0, 0, 1, 1], [], []>} : vector<1x8xf32>, vector<8x32xf32>, vector<1x32xf32> -> vector<1x32xf32>
    %cst_84 = arith.constant dense<0.000000e+00> : vector<1x32xf32>
    %186 = tpu.matmul %184, %136, %cst_84 {dimension_numbers = #tpu.dot_dimension_numbers<[1], [0], [0], [1], [0, 0, 1, 1], [], []>} : vector<1x8xf32>, vector<8x32xf32>, vector<1x32xf32> -> vector<1x32xf32>
    %c0_85 = arith.constant 0 : index
    %c0_86 = arith.constant 0 : index
    %187 = vector.load %arg14[%c0_85, %c0_86] : memref<1x8xf32, #tpu.memory_space<vmem>>, vector<1x8xf32>
    %c0_87 = arith.constant 0 : index
    %c0_88 = arith.constant 0 : index
    %188 = vector.load %arg15[%c0_87, %c0_88] : memref<1x8xf32, #tpu.memory_space<vmem>>, vector<1x8xf32>
    %cst_89 = arith.constant dense<0.000000e+00> : vector<1x8xf32>
    %189 = tpu.matmul %164, %135, %cst_89 {dimension_numbers = #tpu.dot_dimension_numbers<[1], [0], [0], [1], [0, 0, 1, 1], [], []>} : vector<1x32xf32>, vector<32x8xf32>, vector<1x8xf32> -> vector<1x8xf32>
    %cst_90 = arith.constant 3.200000e+01 : f32
    %190 = vector.broadcast %cst_90 : f32 to vector<1x8xf32>
    %191 = arith.divf %189, %190 : vector<1x8xf32>
    %cst_91 = arith.constant dense<0.000000e+00> : vector<1x8xf32>
    %192 = tpu.matmul %168, %135, %cst_91 {dimension_numbers = #tpu.dot_dimension_numbers<[1], [0], [0], [1], [0, 0, 1, 1], [], []>} : vector<1x32xf32>, vector<32x8xf32>, vector<1x8xf32> -> vector<1x8xf32>
    %cst_92 = arith.constant 3.200000e+01 : f32
    %193 = vector.broadcast %cst_92 : f32 to vector<1x8xf32>
    %194 = arith.divf %192, %193 : vector<1x8xf32>
    %195 = arith.mulf %191, %191 : vector<1x8xf32>
    %196 = arith.subf %194, %195 : vector<1x8xf32>
    %cst_93 = arith.constant 9.99999974E-6 : f32
    %197 = vector.broadcast %cst_93 : f32 to vector<1x8xf32>
    %198 = arith.addf %196, %197 : vector<1x8xf32>
    %199 = math.rsqrt %198 : vector<1x8xf32>
    %200 = arith.mulf %187, %199 : vector<1x8xf32>
    %201 = arith.mulf %191, %200 : vector<1x8xf32>
    %202 = arith.subf %188, %201 : vector<1x8xf32>
    %cst_94 = arith.constant dense<0.000000e+00> : vector<1x32xf32>
    %203 = tpu.matmul %200, %136, %cst_94 {dimension_numbers = #tpu.dot_dimension_numbers<[1], [0], [0], [1], [0, 0, 1, 1], [], []>} : vector<1x8xf32>, vector<8x32xf32>, vector<1x32xf32> -> vector<1x32xf32>
    %cst_95 = arith.constant dense<0.000000e+00> : vector<1x32xf32>
    %204 = tpu.matmul %202, %136, %cst_95 {dimension_numbers = #tpu.dot_dimension_numbers<[1], [0], [0], [1], [0, 0, 1, 1], [], []>} : vector<1x8xf32>, vector<8x32xf32>, vector<1x32xf32> -> vector<1x32xf32>
    %c0_96 = arith.constant 0 : index
    %c0_97 = arith.constant 0 : index
    %c0_98 = arith.constant 0 : index
    %205 = vector.load %arg16[%c0_96, %c0_97, %c0_98] : memref<3x32x32xbf16, #tpu.memory_space<vmem>>, vector<1x32x32xbf16>
    %206 = vector.shape_cast %205 : vector<1x32x32xbf16> to vector<32x32xbf16>
    %c1_99 = arith.constant 1 : index
    %c0_100 = arith.constant 0 : index
    %c0_101 = arith.constant 0 : index
    %207 = vector.load %arg16[%c1_99, %c0_100, %c0_101] : memref<3x32x32xbf16, #tpu.memory_space<vmem>>, vector<1x32x32xbf16>
    %208 = vector.shape_cast %207 : vector<1x32x32xbf16> to vector<32x32xbf16>
    %c2_102 = arith.constant 2 : index
    %c0_103 = arith.constant 0 : index
    %c0_104 = arith.constant 0 : index
    %209 = vector.load %arg16[%c2_102, %c0_103, %c0_104] : memref<3x32x32xbf16, #tpu.memory_space<vmem>>, vector<1x32x32xbf16>
    %210 = vector.shape_cast %209 : vector<1x32x32xbf16> to vector<32x32xbf16>
    %c0_105 = arith.constant 0 : index
    %c0_106 = arith.constant 0 : index
    %211 = vector.load %arg17[%c0_105, %c0_106] : memref<1x32xf32, #tpu.memory_space<vmem>>, vector<1x32xf32>
    %cst_107 = arith.constant 0.000000e+00 : f32
    %212 = vector.broadcast %cst_107 : f32 to vector<1x32xf32>
    %c0_108 = arith.constant 0 : index
    %c0_109 = arith.constant 0 : index
    %213 = vector.load %arg20[%c0_108, %c0_109] : memref<6x32xf32, #tpu.memory_space<vmem>>, vector<1x32xf32>
    tpu.vector_store %arg20[%c0_108, %c0_109], %212 {strides = array<i32>} : memref<6x32xf32, #tpu.memory_space<vmem>>, vector<1x32xf32>,
    %cst_110 = arith.constant 0.000000e+00 : f32
    %214 = vector.broadcast %cst_110 : f32 to vector<1x32xf32>
    %c5 = arith.constant 5 : index
    %c0_111 = arith.constant 0 : index
    %215 = vector.load %arg20[%c5, %c0_111] : memref<6x32xf32, #tpu.memory_space<vmem>>, vector<1x32xf32>
    tpu.vector_store %arg20[%c5, %c0_111], %214 {strides = array<i32>} : memref<6x32xf32, #tpu.memory_space<vmem>>, vector<1x32xf32>,
    %cst_112 = arith.constant 0.000000e+00 : f32
    %216 = vector.broadcast %cst_112 : f32 to vector<1x32xf32>
    %cst_113 = arith.constant 0.000000e+00 : f32
    %217 = vector.broadcast %cst_113 : f32 to vector<1x32xf32>
    %218 = vector.broadcast %185 : vector<1x32xf32> to vector<4x32xf32>
    %219 = arith.mulf %100, %218 : vector<4x32xf32>
    %220 = vector.broadcast %186 : vector<1x32xf32> to vector<4x32xf32>
    %221 = arith.addf %219, %220 : vector<4x32xf32>
    %cst_114 = arith.constant 0.000000e+00 : f32
    %222 = vector.broadcast %cst_114 : f32 to vector<4x32xf32>
    %223 = arith.maximumf %221, %222 : vector<4x32xf32>
    %c1_115 = arith.constant 1 : index
    %c0_116 = arith.constant 0 : index
    %224 = vector.load %arg20[%c1_115, %c0_116] : memref<6x32xf32, #tpu.memory_space<vmem>>, vector<4x32xf32>
    tpu.vector_store %arg20[%c1_115, %c0_116], %223 {strides = array<i32>} : memref<6x32xf32, #tpu.memory_space<vmem>>, vector<4x32xf32>,
    %cst_117 = arith.constant 0.000000e+00 : f32
    %225 = vector.broadcast %cst_117 : f32 to vector<4x32xf32>
    %226 = vector.broadcast %211 : vector<1x32xf32> to vector<4x32xf32>
    %227 = arith.addf %225, %226 : vector<4x32xf32>
    %c0_118 = arith.constant 0 : index
    %c0_119 = arith.constant 0 : index
    %228 = vector.load %arg20[%c0_118, %c0_119] : memref<6x32xf32, #tpu.memory_space<vmem>>, vector<4x32xf32>
    %229 = arith.truncf %228 : vector<4x32xf32> to vector<4x32xbf16>
    %cst_120 = arith.constant dense<0.000000e+00> : vector<4x32xf32>
    %230 = tpu.matmul %229, %206, %cst_120 {dimension_numbers = #tpu.dot_dimension_numbers<[1], [0], [0], [1], [0, 0, 1, 1], [], []>} : vector<4x32xbf16>, vector<32x32xbf16>, vector<4x32xf32> -> vector<4x32xf32>
    %231 = arith.addf %227, %230 : vector<4x32xf32>
    %c1_121 = arith.constant 1 : index
    %c0_122 = arith.constant 0 : index
    %232 = vector.load %arg20[%c1_121, %c0_122] : memref<6x32xf32, #tpu.memory_space<vmem>>, vector<4x32xf32>
    %233 = arith.truncf %232 : vector<4x32xf32> to vector<4x32xbf16>
    %cst_123 = arith.constant dense<0.000000e+00> : vector<4x32xf32>
    %234 = tpu.matmul %233, %208, %cst_123 {dimension_numbers = #tpu.dot_dimension_numbers<[1], [0], [0], [1], [0, 0, 1, 1], [], []>} : vector<4x32xbf16>, vector<32x32xbf16>, vector<4x32xf32> -> vector<4x32xf32>
    %235 = arith.addf %231, %234 : vector<4x32xf32>
    %c2_124 = arith.constant 2 : index
    %c0_125 = arith.constant 0 : index
    %236 = vector.load %arg20[%c2_124, %c0_125] : memref<6x32xf32, #tpu.memory_space<vmem>>, vector<4x32xf32>
    %237 = arith.truncf %236 : vector<4x32xf32> to vector<4x32xbf16>
    %cst_126 = arith.constant dense<0.000000e+00> : vector<4x32xf32>
    %238 = tpu.matmul %237, %210, %cst_126 {dimension_numbers = #tpu.dot_dimension_numbers<[1], [0], [0], [1], [0, 0, 1, 1], [], []>} : vector<4x32xbf16>, vector<32x32xbf16>, vector<4x32xf32> -> vector<4x32xf32>
    %239 = arith.addf %235, %238 : vector<4x32xf32>
    %240 = vector.broadcast %203 : vector<1x32xf32> to vector<4x32xf32>
    %241 = arith.mulf %104, %240 : vector<4x32xf32>
    %242 = arith.addf %239, %241 : vector<4x32xf32>
    %243 = vector.broadcast %204 : vector<1x32xf32> to vector<4x32xf32>
    %244 = arith.addf %242, %243 : vector<4x32xf32>
    %c0_127 = arith.constant 0 : index
    %c0_128 = arith.constant 0 : index
    %245 = vector.load %arg18[%c0_127, %c0_128] : memref<8x32xf32, #tpu.memory_space<vmem>>, vector<4x32xf32>
    tpu.vector_store %arg18[%c0_127, %c0_128], %244 {strides = array<i32>} : memref<8x32xf32, #tpu.memory_space<vmem>>, vector<4x32xf32>,
    %cst_129 = arith.constant dense<0.000000e+00> : vector<32xf32>
    %246 = vector.multi_reduction <add>, %244, %cst_129 [0] : vector<4x32xf32> to vector<32xf32>
    %247 = vector.shape_cast %246 : vector<32xf32> to vector<1x32xf32>
    %248 = arith.addf %216, %247 : vector<1x32xf32>
    %249 = arith.mulf %244, %244 : vector<4x32xf32>
    %cst_130 = arith.constant dense<0.000000e+00> : vector<32xf32>
    %250 = vector.multi_reduction <add>, %249, %cst_130 [0] : vector<4x32xf32> to vector<32xf32>
    %251 = vector.shape_cast %250 : vector<32xf32> to vector<1x32xf32>
    %252 = arith.addf %217, %251 : vector<1x32xf32>
    %253 = vector.broadcast %185 : vector<1x32xf32> to vector<4x32xf32>
    %254 = arith.mulf %130, %253 : vector<4x32xf32>
    %255 = vector.broadcast %186 : vector<1x32xf32> to vector<4x32xf32>
    %256 = arith.addf %254, %255 : vector<4x32xf32>
    %cst_131 = arith.constant 0.000000e+00 : f32
    %257 = vector.broadcast %cst_131 : f32 to vector<4x32xf32>
    %258 = arith.maximumf %256, %257 : vector<4x32xf32>
    %c1_132 = arith.constant 1 : index
    %c0_133 = arith.constant 0 : index
    %259 = vector.load %arg20[%c1_132, %c0_133] : memref<6x32xf32, #tpu.memory_space<vmem>>, vector<4x32xf32>
    tpu.vector_store %arg20[%c1_132, %c0_133], %258 {strides = array<i32>} : memref<6x32xf32, #tpu.memory_space<vmem>>, vector<4x32xf32>,
    %cst_134 = arith.constant 0.000000e+00 : f32
    %260 = vector.broadcast %cst_134 : f32 to vector<4x32xf32>
    %261 = vector.broadcast %211 : vector<1x32xf32> to vector<4x32xf32>
    %262 = arith.addf %260, %261 : vector<4x32xf32>
    %c0_135 = arith.constant 0 : index
    %c0_136 = arith.constant 0 : index
    %263 = vector.load %arg20[%c0_135, %c0_136] : memref<6x32xf32, #tpu.memory_space<vmem>>, vector<4x32xf32>
    %264 = arith.truncf %263 : vector<4x32xf32> to vector<4x32xbf16>
    %cst_137 = arith.constant dense<0.000000e+00> : vector<4x32xf32>
    %265 = tpu.matmul %264, %206, %cst_137 {dimension_numbers = #tpu.dot_dimension_numbers<[1], [0], [0], [1], [0, 0, 1, 1], [], []>} : vector<4x32xbf16>, vector<32x32xbf16>, vector<4x32xf32> -> vector<4x32xf32>
    %266 = arith.addf %262, %265 : vector<4x32xf32>
    %c1_138 = arith.constant 1 : index
    %c0_139 = arith.constant 0 : index
    %267 = vector.load %arg20[%c1_138, %c0_139] : memref<6x32xf32, #tpu.memory_space<vmem>>, vector<4x32xf32>
    %268 = arith.truncf %267 : vector<4x32xf32> to vector<4x32xbf16>
    %cst_140 = arith.constant dense<0.000000e+00> : vector<4x32xf32>
    %269 = tpu.matmul %268, %208, %cst_140 {dimension_numbers = #tpu.dot_dimension_numbers<[1], [0], [0], [1], [0, 0, 1, 1], [], []>} : vector<4x32xbf16>, vector<32x32xbf16>, vector<4x32xf32> -> vector<4x32xf32>
    %270 = arith.addf %266, %269 : vector<4x32xf32>
    %c2_141 = arith.constant 2 : index
    %c0_142 = arith.constant 0 : index
    %271 = vector.load %arg20[%c2_141, %c0_142] : memref<6x32xf32, #tpu.memory_space<vmem>>, vector<4x32xf32>
    %272 = arith.truncf %271 : vector<4x32xf32> to vector<4x32xbf16>
    %cst_143 = arith.constant dense<0.000000e+00> : vector<4x32xf32>
    %273 = tpu.matmul %272, %210, %cst_143 {dimension_numbers = #tpu.dot_dimension_numbers<[1], [0], [0], [1], [0, 0, 1, 1], [], []>} : vector<4x32xbf16>, vector<32x32xbf16>, vector<4x32xf32> -> vector<4x32xf32>
    %274 = arith.addf %270, %273 : vector<4x32xf32>
    %275 = vector.broadcast %203 : vector<1x32xf32> to vector<4x32xf32>
    %276 = arith.mulf %134, %275 : vector<4x32xf32>
    %277 = arith.addf %274, %276 : vector<4x32xf32>
    %278 = vector.broadcast %204 : vector<1x32xf32> to vector<4x32xf32>
    %279 = arith.addf %277, %278 : vector<4x32xf32>
    %c4 = arith.constant 4 : index
    %c0_144 = arith.constant 0 : index
    %280 = vector.load %arg18[%c4, %c0_144] : memref<8x32xf32, #tpu.memory_space<vmem>>, vector<4x32xf32>
    tpu.vector_store %arg18[%c4, %c0_144], %279 {strides = array<i32>} : memref<8x32xf32, #tpu.memory_space<vmem>>, vector<4x32xf32>,
    %cst_145 = arith.constant dense<0.000000e+00> : vector<32xf32>
    %281 = vector.multi_reduction <add>, %279, %cst_145 [0] : vector<4x32xf32> to vector<32xf32>
    %282 = vector.shape_cast %281 : vector<32xf32> to vector<1x32xf32>
    %283 = arith.addf %248, %282 : vector<1x32xf32>
    %284 = arith.mulf %279, %279 : vector<4x32xf32>
    %cst_146 = arith.constant dense<0.000000e+00> : vector<32xf32>
    %285 = vector.multi_reduction <add>, %284, %cst_146 [0] : vector<4x32xf32> to vector<32xf32>
    %286 = vector.shape_cast %285 : vector<32xf32> to vector<1x32xf32>
    %287 = arith.addf %252, %286 : vector<1x32xf32>
    %cst_147 = arith.constant dense<0.000000e+00> : vector<1x8xf32>
    %288 = tpu.matmul %283, %135, %cst_147 {dimension_numbers = #tpu.dot_dimension_numbers<[1], [0], [0], [1], [0, 0, 1, 1], [], []>} : vector<1x32xf32>, vector<32x8xf32>, vector<1x8xf32> -> vector<1x8xf32>
    %c0_148 = arith.constant 0 : index
    %c0_149 = arith.constant 0 : index
    %289 = vector.load %arg19[%c0_148, %c0_149] : memref<2x8xf32, #tpu.memory_space<vmem>>, vector<1x8xf32>
    tpu.vector_store %arg19[%c0_148, %c0_149], %288 {strides = array<i32>} : memref<2x8xf32, #tpu.memory_space<vmem>>, vector<1x8xf32>,
    %cst_150 = arith.constant dense<0.000000e+00> : vector<1x8xf32>
    %290 = tpu.matmul %287, %135, %cst_150 {dimension_numbers = #tpu.dot_dimension_numbers<[1], [0], [0], [1], [0, 0, 1, 1], [], []>} : vector<1x32xf32>, vector<32x8xf32>, vector<1x8xf32> -> vector<1x8xf32>
    %c1_151 = arith.constant 1 : index
    %c0_152 = arith.constant 0 : index
    %291 = vector.load %arg19[%c1_151, %c0_152] : memref<2x8xf32, #tpu.memory_space<vmem>>, vector<1x8xf32>
    tpu.vector_store %arg19[%c1_151, %c0_152], %290 {strides = array<i32>} : memref<2x8xf32, #tpu.memory_space<vmem>>, vector<1x8xf32>,
    return
  }
}

module attributes {stable_mosaic.version = 11 : i64} {
  func.func @kernel(%arg0: memref<6x32xf32, #tpu.memory_space<vmem>>, %arg1: memref<6x32xf32, #tpu.memory_space<vmem>>, %arg2: memref<2x8xf32, #tpu.memory_space<vmem>>, %arg3: memref<1x8xf32, #tpu.memory_space<vmem>>, %arg4: memref<1x8xf32, #tpu.memory_space<vmem>>, %arg5: memref<8x32xf32, #tpu.memory_space<vmem>>, %arg6: memref<3x32x32xbf16, #tpu.memory_space<vmem>>, %arg7: memref<1x32xf32, #tpu.memory_space<vmem>>, %arg8: memref<3x32x32xbf16, #tpu.memory_space<vmem>>, %arg9: memref<1x32xf32, #tpu.memory_space<vmem>>, %arg10: memref<32x16xf32, #tpu.memory_space<vmem>>, %arg11: memref<16x32xf32, #tpu.memory_space<vmem>>, %arg12: memref<1x16xf32, #tpu.memory_space<vmem>>, %arg13: memref<1x16xf32, #tpu.memory_space<vmem>>, %arg14: memref<1x16xf32, #tpu.memory_space<vmem>>, %arg15: memref<1x16xf32, #tpu.memory_space<vmem>>, %arg16: memref<3x32x32xbf16, #tpu.memory_space<vmem>>, %arg17: memref<1x32xf32, #tpu.memory_space<vmem>>, %arg18: memref<4x32xf32, #tpu.memory_space<vmem>>, %arg19: memref<2x16xf32, #tpu.memory_space<vmem>>, %arg20: memref<4x32xf32, #tpu.memory_space<vmem>>) attributes {dimension_semantics = [], scalar_prefetch = 0 : i64, scratch_operands = 1 : i64, tpu.core_type = #tpu.core_type<tc>} {
    %c0 = arith.constant 0 : index
    %c0_0 = arith.constant 0 : index
    %0 = vector.load %arg0[%c0, %c0_0] : memref<6x32xf32, #tpu.memory_space<vmem>>, vector<6x32xf32>
    %c0_1 = arith.constant 0 : index
    %c0_2 = arith.constant 0 : index
    %1 = vector.load %arg1[%c0_1, %c0_2] : memref<6x32xf32, #tpu.memory_space<vmem>>, vector<6x32xf32>
    %c0_3 = arith.constant 0 : index
    %c0_4 = arith.constant 0 : index
    %2 = vector.load %arg2[%c0_3, %c0_4] : memref<2x8xf32, #tpu.memory_space<vmem>>, vector<1x8xf32>
    %cst = arith.constant 3.200000e+01 : f32
    %3 = vector.broadcast %cst : f32 to vector<1x8xf32>
    %4 = arith.divf %2, %3 : vector<1x8xf32>
    %c1 = arith.constant 1 : index
    %c0_5 = arith.constant 0 : index
    %5 = vector.load %arg2[%c1, %c0_5] : memref<2x8xf32, #tpu.memory_space<vmem>>, vector<1x8xf32>
    %cst_6 = arith.constant 3.200000e+01 : f32
    %6 = vector.broadcast %cst_6 : f32 to vector<1x8xf32>
    %7 = arith.divf %5, %6 : vector<1x8xf32>
    %8 = arith.mulf %4, %4 : vector<1x8xf32>
    %9 = arith.subf %7, %8 : vector<1x8xf32>
    %c0_7 = arith.constant 0 : index
    %c0_8 = arith.constant 0 : index
    %10 = vector.load %arg3[%c0_7, %c0_8] : memref<1x8xf32, #tpu.memory_space<vmem>>, vector<1x8xf32>
    %cst_9 = arith.constant 9.99999974E-6 : f32
    %11 = vector.broadcast %cst_9 : f32 to vector<1x8xf32>
    %12 = arith.addf %9, %11 : vector<1x8xf32>
    %13 = math.rsqrt %12 : vector<1x8xf32>
    %14 = arith.mulf %10, %13 : vector<1x8xf32>
    %c0_10 = arith.constant 0 : index
    %c0_11 = arith.constant 0 : index
    %15 = vector.load %arg4[%c0_10, %c0_11] : memref<1x8xf32, #tpu.memory_space<vmem>>, vector<1x8xf32>
    %16 = arith.mulf %4, %14 : vector<1x8xf32>
    %17 = arith.subf %15, %16 : vector<1x8xf32>
    %c0_12 = arith.constant 0 : index
    %c0_13 = arith.constant 0 : index
    %18 = vector.load %arg5[%c0_12, %c0_13] : memref<8x32xf32, #tpu.memory_space<vmem>>, vector<8x32xf32>
    %cst_14 = arith.constant dense<0.000000e+00> : vector<1x32xf32>
    %19 = tpu.matmul %14, %18, %cst_14 {dimension_numbers = #tpu.dot_dimension_numbers<[1], [0], [0], [1], [0, 0, 1, 1], [], []>} : vector<1x8xf32>, vector<8x32xf32>, vector<1x32xf32> -> vector<1x32xf32>
    %cst_15 = arith.constant dense<0.000000e+00> : vector<1x32xf32>
    %20 = tpu.matmul %17, %18, %cst_15 {dimension_numbers = #tpu.dot_dimension_numbers<[1], [0], [0], [1], [0, 0, 1, 1], [], []>} : vector<1x8xf32>, vector<8x32xf32>, vector<1x32xf32> -> vector<1x32xf32>
    %21 = vector.broadcast %19 : vector<1x32xf32> to vector<6x32xf32>
    %22 = arith.mulf %0, %21 : vector<6x32xf32>
    %23 = vector.broadcast %20 : vector<1x32xf32> to vector<6x32xf32>
    %24 = arith.addf %22, %23 : vector<6x32xf32>
    %cst_16 = arith.constant 0.000000e+00 : f32
    %25 = vector.broadcast %cst_16 : f32 to vector<6x32xf32>
    %26 = arith.maximumf %24, %25 : vector<6x32xf32>
    %27 = tpu.iota {dimensions = array<i32: 0>} : vector<6x32xi32>
    %c1_i32 = arith.constant 1 : i32
    %28 = vector.broadcast %c1_i32 : i32 to vector<6x32xi32>
    %29 = arith.cmpi sge, %27, %28 : vector<6x32xi32>
    %c3_i32 = arith.constant 3 : i32
    %30 = vector.broadcast %c3_i32 : i32 to vector<6x32xi32>
    %31 = arith.cmpi slt, %27, %30 : vector<6x32xi32>
    %32 = arith.andi %29, %31 : vector<6x32xi1>
    %c4_i32 = arith.constant 4 : i32
    %33 = vector.broadcast %c4_i32 : i32 to vector<6x32xi32>
    %34 = arith.cmpi sge, %27, %33 : vector<6x32xi32>
    %c6_i32 = arith.constant 6 : i32
    %35 = vector.broadcast %c6_i32 : i32 to vector<6x32xi32>
    %36 = arith.cmpi slt, %27, %35 : vector<6x32xi32>
    %37 = arith.andi %34, %36 : vector<6x32xi1>
    %38 = arith.ori %32, %37 : vector<6x32xi1>
    %cst_17 = arith.constant 0.000000e+00 : f32
    %39 = vector.broadcast %cst_17 : f32 to vector<6x32xf32>
    %40 = arith.select %38, %26, %39 : vector<6x32xi1>, vector<6x32xf32>
    %41 = vector.broadcast %19 : vector<1x32xf32> to vector<6x32xf32>
    %42 = arith.mulf %1, %41 : vector<6x32xf32>
    %43 = vector.broadcast %20 : vector<1x32xf32> to vector<6x32xf32>
    %44 = arith.addf %42, %43 : vector<6x32xf32>
    %cst_18 = arith.constant 0.000000e+00 : f32
    %45 = vector.broadcast %cst_18 : f32 to vector<6x32xf32>
    %46 = arith.maximumf %44, %45 : vector<6x32xf32>
    %47 = tpu.iota {dimensions = array<i32: 0>} : vector<6x32xi32>
    %c0_i32 = arith.constant 0 : i32
    %48 = vector.broadcast %c0_i32 : i32 to vector<6x32xi32>
    %49 = arith.cmpi sge, %47, %48 : vector<6x32xi32>
    %c2_i32 = arith.constant 2 : i32
    %50 = vector.broadcast %c2_i32 : i32 to vector<6x32xi32>
    %51 = arith.cmpi slt, %47, %50 : vector<6x32xi32>
    %52 = arith.andi %49, %51 : vector<6x32xi1>
    %c3_i32_19 = arith.constant 3 : i32
    %53 = vector.broadcast %c3_i32_19 : i32 to vector<6x32xi32>
    %54 = arith.cmpi sge, %47, %53 : vector<6x32xi32>
    %c5_i32 = arith.constant 5 : i32
    %55 = vector.broadcast %c5_i32 : i32 to vector<6x32xi32>
    %56 = arith.cmpi slt, %47, %55 : vector<6x32xi32>
    %57 = arith.andi %54, %56 : vector<6x32xi1>
    %58 = arith.ori %52, %57 : vector<6x32xi1>
    %cst_20 = arith.constant 0.000000e+00 : f32
    %59 = vector.broadcast %cst_20 : f32 to vector<6x32xf32>
    %60 = arith.select %58, %46, %59 : vector<6x32xi1>, vector<6x32xf32>
    %c0_21 = arith.constant 0 : index
    %c0_22 = arith.constant 0 : index
    %c0_23 = arith.constant 0 : index
    %61 = vector.load %arg6[%c0_21, %c0_22, %c0_23] : memref<3x32x32xbf16, #tpu.memory_space<vmem>>, vector<1x32x32xbf16>
    %62 = vector.shape_cast %61 : vector<1x32x32xbf16> to vector<32x32xbf16>
    %c1_24 = arith.constant 1 : index
    %c0_25 = arith.constant 0 : index
    %c0_26 = arith.constant 0 : index
    %63 = vector.load %arg6[%c1_24, %c0_25, %c0_26] : memref<3x32x32xbf16, #tpu.memory_space<vmem>>, vector<1x32x32xbf16>
    %64 = vector.shape_cast %63 : vector<1x32x32xbf16> to vector<32x32xbf16>
    %c2 = arith.constant 2 : index
    %c0_27 = arith.constant 0 : index
    %c0_28 = arith.constant 0 : index
    %65 = vector.load %arg6[%c2, %c0_27, %c0_28] : memref<3x32x32xbf16, #tpu.memory_space<vmem>>, vector<1x32x32xbf16>
    %66 = vector.shape_cast %65 : vector<1x32x32xbf16> to vector<32x32xbf16>
    %c0_29 = arith.constant 0 : index
    %c0_30 = arith.constant 0 : index
    %c0_31 = arith.constant 0 : index
    %67 = vector.load %arg8[%c0_29, %c0_30, %c0_31] : memref<3x32x32xbf16, #tpu.memory_space<vmem>>, vector<1x32x32xbf16>
    %68 = vector.shape_cast %67 : vector<1x32x32xbf16> to vector<32x32xbf16>
    %c1_32 = arith.constant 1 : index
    %c0_33 = arith.constant 0 : index
    %c0_34 = arith.constant 0 : index
    %69 = vector.load %arg8[%c1_32, %c0_33, %c0_34] : memref<3x32x32xbf16, #tpu.memory_space<vmem>>, vector<1x32x32xbf16>
    %70 = vector.shape_cast %69 : vector<1x32x32xbf16> to vector<32x32xbf16>
    %c2_35 = arith.constant 2 : index
    %c0_36 = arith.constant 0 : index
    %c0_37 = arith.constant 0 : index
    %71 = vector.load %arg8[%c2_35, %c0_36, %c0_37] : memref<3x32x32xbf16, #tpu.memory_space<vmem>>, vector<1x32x32xbf16>
    %72 = vector.shape_cast %71 : vector<1x32x32xbf16> to vector<32x32xbf16>
    %c0_38 = arith.constant 0 : index
    %c0_39 = arith.constant 0 : index
    %73 = vector.load %arg7[%c0_38, %c0_39] : memref<1x32xf32, #tpu.memory_space<vmem>>, vector<1x32xf32>
    %c0_40 = arith.constant 0 : index
    %c0_41 = arith.constant 0 : index
    %74 = vector.load %arg9[%c0_40, %c0_41] : memref<1x32xf32, #tpu.memory_space<vmem>>, vector<1x32xf32>
    %cst_42 = arith.constant 0.000000e+00 : f32
    %75 = vector.broadcast %cst_42 : f32 to vector<2x32xf32>
    %76 = vector.broadcast %73 : vector<1x32xf32> to vector<2x32xf32>
    %77 = arith.addf %75, %76 : vector<2x32xf32>
    %cst_43 = arith.constant 0.000000e+00 : f32
    %78 = vector.broadcast %cst_43 : f32 to vector<2x32xf32>
    %79 = vector.broadcast %74 : vector<1x32xf32> to vector<2x32xf32>
    %80 = arith.addf %78, %79 : vector<2x32xf32>
    %81 = vector.extract_strided_slice %40 {offsets = [0, 0], sizes = [2, 32], strides = [1, 1]} : vector<6x32xf32> to vector<2x32xf32>
    %82 = arith.truncf %81 : vector<2x32xf32> to vector<2x32xbf16>
    %cst_44 = arith.constant dense<0.000000e+00> : vector<2x32xf32>
    %83 = tpu.matmul %82, %62, %cst_44 {dimension_numbers = #tpu.dot_dimension_numbers<[1], [0], [0], [1], [0, 0, 1, 1], [], []>} : vector<2x32xbf16>, vector<32x32xbf16>, vector<2x32xf32> -> vector<2x32xf32>
    %84 = arith.addf %77, %83 : vector<2x32xf32>
    %85 = vector.extract_strided_slice %0 {offsets = [0, 0], sizes = [2, 32], strides = [1, 1]} : vector<6x32xf32> to vector<2x32xf32>
    %86 = arith.truncf %85 : vector<2x32xf32> to vector<2x32xbf16>
    %cst_45 = arith.constant dense<0.000000e+00> : vector<2x32xf32>
    %87 = tpu.matmul %86, %68, %cst_45 {dimension_numbers = #tpu.dot_dimension_numbers<[1], [0], [0], [1], [0, 0, 1, 1], [], []>} : vector<2x32xbf16>, vector<32x32xbf16>, vector<2x32xf32> -> vector<2x32xf32>
    %88 = arith.addf %80, %87 : vector<2x32xf32>
    %89 = vector.extract_strided_slice %60 {offsets = [0, 0], sizes = [2, 32], strides = [1, 1]} : vector<6x32xf32> to vector<2x32xf32>
    %90 = arith.truncf %89 : vector<2x32xf32> to vector<2x32xbf16>
    %cst_46 = arith.constant dense<0.000000e+00> : vector<2x32xf32>
    %91 = tpu.matmul %90, %64, %cst_46 {dimension_numbers = #tpu.dot_dimension_numbers<[1], [0], [0], [1], [0, 0, 1, 1], [], []>} : vector<2x32xbf16>, vector<32x32xbf16>, vector<2x32xf32> -> vector<2x32xf32>
    %92 = arith.addf %84, %91 : vector<2x32xf32>
    %93 = vector.extract_strided_slice %1 {offsets = [0, 0], sizes = [2, 32], strides = [1, 1]} : vector<6x32xf32> to vector<2x32xf32>
    %94 = arith.truncf %93 : vector<2x32xf32> to vector<2x32xbf16>
    %cst_47 = arith.constant dense<0.000000e+00> : vector<2x32xf32>
    %95 = tpu.matmul %94, %70, %cst_47 {dimension_numbers = #tpu.dot_dimension_numbers<[1], [0], [0], [1], [0, 0, 1, 1], [], []>} : vector<2x32xbf16>, vector<32x32xbf16>, vector<2x32xf32> -> vector<2x32xf32>
    %96 = arith.addf %88, %95 : vector<2x32xf32>
    %97 = vector.extract_strided_slice %40 {offsets = [1, 0], sizes = [2, 32], strides = [1, 1]} : vector<6x32xf32> to vector<2x32xf32>
    %98 = arith.truncf %97 : vector<2x32xf32> to vector<2x32xbf16>
    %cst_48 = arith.constant dense<0.000000e+00> : vector<2x32xf32>
    %99 = tpu.matmul %98, %66, %cst_48 {dimension_numbers = #tpu.dot_dimension_numbers<[1], [0], [0], [1], [0, 0, 1, 1], [], []>} : vector<2x32xbf16>, vector<32x32xbf16>, vector<2x32xf32> -> vector<2x32xf32>
    %100 = arith.addf %92, %99 : vector<2x32xf32>
    %101 = vector.extract_strided_slice %0 {offsets = [1, 0], sizes = [2, 32], strides = [1, 1]} : vector<6x32xf32> to vector<2x32xf32>
    %102 = arith.truncf %101 : vector<2x32xf32> to vector<2x32xbf16>
    %cst_49 = arith.constant dense<0.000000e+00> : vector<2x32xf32>
    %103 = tpu.matmul %102, %72, %cst_49 {dimension_numbers = #tpu.dot_dimension_numbers<[1], [0], [0], [1], [0, 0, 1, 1], [], []>} : vector<2x32xbf16>, vector<32x32xbf16>, vector<2x32xf32> -> vector<2x32xf32>
    %104 = arith.addf %96, %103 : vector<2x32xf32>
    %cst_50 = arith.constant 0.000000e+00 : f32
    %105 = vector.broadcast %cst_50 : f32 to vector<2x32xf32>
    %106 = vector.broadcast %73 : vector<1x32xf32> to vector<2x32xf32>
    %107 = arith.addf %105, %106 : vector<2x32xf32>
    %cst_51 = arith.constant 0.000000e+00 : f32
    %108 = vector.broadcast %cst_51 : f32 to vector<2x32xf32>
    %109 = vector.broadcast %74 : vector<1x32xf32> to vector<2x32xf32>
    %110 = arith.addf %108, %109 : vector<2x32xf32>
    %111 = vector.extract_strided_slice %40 {offsets = [3, 0], sizes = [2, 32], strides = [1, 1]} : vector<6x32xf32> to vector<2x32xf32>
    %112 = arith.truncf %111 : vector<2x32xf32> to vector<2x32xbf16>
    %cst_52 = arith.constant dense<0.000000e+00> : vector<2x32xf32>
    %113 = tpu.matmul %112, %62, %cst_52 {dimension_numbers = #tpu.dot_dimension_numbers<[1], [0], [0], [1], [0, 0, 1, 1], [], []>} : vector<2x32xbf16>, vector<32x32xbf16>, vector<2x32xf32> -> vector<2x32xf32>
    %114 = arith.addf %107, %113 : vector<2x32xf32>
    %115 = vector.extract_strided_slice %0 {offsets = [3, 0], sizes = [2, 32], strides = [1, 1]} : vector<6x32xf32> to vector<2x32xf32>
    %116 = arith.truncf %115 : vector<2x32xf32> to vector<2x32xbf16>
    %cst_53 = arith.constant dense<0.000000e+00> : vector<2x32xf32>
    %117 = tpu.matmul %116, %68, %cst_53 {dimension_numbers = #tpu.dot_dimension_numbers<[1], [0], [0], [1], [0, 0, 1, 1], [], []>} : vector<2x32xbf16>, vector<32x32xbf16>, vector<2x32xf32> -> vector<2x32xf32>
    %118 = arith.addf %110, %117 : vector<2x32xf32>
    %119 = vector.extract_strided_slice %60 {offsets = [3, 0], sizes = [2, 32], strides = [1, 1]} : vector<6x32xf32> to vector<2x32xf32>
    %120 = arith.truncf %119 : vector<2x32xf32> to vector<2x32xbf16>
    %cst_54 = arith.constant dense<0.000000e+00> : vector<2x32xf32>
    %121 = tpu.matmul %120, %64, %cst_54 {dimension_numbers = #tpu.dot_dimension_numbers<[1], [0], [0], [1], [0, 0, 1, 1], [], []>} : vector<2x32xbf16>, vector<32x32xbf16>, vector<2x32xf32> -> vector<2x32xf32>
    %122 = arith.addf %114, %121 : vector<2x32xf32>
    %123 = vector.extract_strided_slice %1 {offsets = [3, 0], sizes = [2, 32], strides = [1, 1]} : vector<6x32xf32> to vector<2x32xf32>
    %124 = arith.truncf %123 : vector<2x32xf32> to vector<2x32xbf16>
    %cst_55 = arith.constant dense<0.000000e+00> : vector<2x32xf32>
    %125 = tpu.matmul %124, %70, %cst_55 {dimension_numbers = #tpu.dot_dimension_numbers<[1], [0], [0], [1], [0, 0, 1, 1], [], []>} : vector<2x32xbf16>, vector<32x32xbf16>, vector<2x32xf32> -> vector<2x32xf32>
    %126 = arith.addf %118, %125 : vector<2x32xf32>
    %127 = vector.extract_strided_slice %40 {offsets = [4, 0], sizes = [2, 32], strides = [1, 1]} : vector<6x32xf32> to vector<2x32xf32>
    %128 = arith.truncf %127 : vector<2x32xf32> to vector<2x32xbf16>
    %cst_56 = arith.constant dense<0.000000e+00> : vector<2x32xf32>
    %129 = tpu.matmul %128, %66, %cst_56 {dimension_numbers = #tpu.dot_dimension_numbers<[1], [0], [0], [1], [0, 0, 1, 1], [], []>} : vector<2x32xbf16>, vector<32x32xbf16>, vector<2x32xf32> -> vector<2x32xf32>
    %130 = arith.addf %122, %129 : vector<2x32xf32>
    %131 = vector.extract_strided_slice %0 {offsets = [4, 0], sizes = [2, 32], strides = [1, 1]} : vector<6x32xf32> to vector<2x32xf32>
    %132 = arith.truncf %131 : vector<2x32xf32> to vector<2x32xbf16>
    %cst_57 = arith.constant dense<0.000000e+00> : vector<2x32xf32>
    %133 = tpu.matmul %132, %72, %cst_57 {dimension_numbers = #tpu.dot_dimension_numbers<[1], [0], [0], [1], [0, 0, 1, 1], [], []>} : vector<2x32xbf16>, vector<32x32xbf16>, vector<2x32xf32> -> vector<2x32xf32>
    %134 = arith.addf %126, %133 : vector<2x32xf32>
    %c0_58 = arith.constant 0 : index
    %c0_59 = arith.constant 0 : index
    %135 = vector.load %arg10[%c0_58, %c0_59] : memref<32x16xf32, #tpu.memory_space<vmem>>, vector<32x16xf32>
    %c0_60 = arith.constant 0 : index
    %c0_61 = arith.constant 0 : index
    %136 = vector.load %arg11[%c0_60, %c0_61] : memref<16x32xf32, #tpu.memory_space<vmem>>, vector<16x32xf32>
    %cst_62 = arith.constant 0.000000e+00 : f32
    %137 = vector.broadcast %cst_62 : f32 to vector<1x32xf32>
    %cst_63 = arith.constant 0.000000e+00 : f32
    %138 = vector.broadcast %cst_63 : f32 to vector<1x32xf32>
    %cst_64 = arith.constant 0.000000e+00 : f32
    %139 = vector.broadcast %cst_64 : f32 to vector<1x32xf32>
    %cst_65 = arith.constant 0.000000e+00 : f32
    %140 = vector.broadcast %cst_65 : f32 to vector<1x32xf32>
    %cst_66 = arith.constant dense<0.000000e+00> : vector<32xf32>
    %141 = vector.multi_reduction <add>, %100, %cst_66 [0] : vector<2x32xf32> to vector<32xf32>
    %142 = vector.shape_cast %141 : vector<32xf32> to vector<1x32xf32>
    %143 = arith.addf %137, %142 : vector<1x32xf32>
    %144 = arith.mulf %100, %100 : vector<2x32xf32>
    %cst_67 = arith.constant dense<0.000000e+00> : vector<32xf32>
    %145 = vector.multi_reduction <add>, %144, %cst_67 [0] : vector<2x32xf32> to vector<32xf32>
    %146 = vector.shape_cast %145 : vector<32xf32> to vector<1x32xf32>
    %147 = arith.addf %138, %146 : vector<1x32xf32>
    %cst_68 = arith.constant dense<0.000000e+00> : vector<32xf32>
    %148 = vector.multi_reduction <add>, %104, %cst_68 [0] : vector<2x32xf32> to vector<32xf32>
    %149 = vector.shape_cast %148 : vector<32xf32> to vector<1x32xf32>
    %150 = arith.addf %139, %149 : vector<1x32xf32>
    %151 = arith.mulf %104, %104 : vector<2x32xf32>
    %cst_69 = arith.constant dense<0.000000e+00> : vector<32xf32>
    %152 = vector.multi_reduction <add>, %151, %cst_69 [0] : vector<2x32xf32> to vector<32xf32>
    %153 = vector.shape_cast %152 : vector<32xf32> to vector<1x32xf32>
    %154 = arith.addf %140, %153 : vector<1x32xf32>
    %cst_70 = arith.constant dense<0.000000e+00> : vector<32xf32>
    %155 = vector.multi_reduction <add>, %130, %cst_70 [0] : vector<2x32xf32> to vector<32xf32>
    %156 = vector.shape_cast %155 : vector<32xf32> to vector<1x32xf32>
    %157 = arith.addf %143, %156 : vector<1x32xf32>
    %158 = arith.mulf %130, %130 : vector<2x32xf32>
    %cst_71 = arith.constant dense<0.000000e+00> : vector<32xf32>
    %159 = vector.multi_reduction <add>, %158, %cst_71 [0] : vector<2x32xf32> to vector<32xf32>
    %160 = vector.shape_cast %159 : vector<32xf32> to vector<1x32xf32>
    %161 = arith.addf %147, %160 : vector<1x32xf32>
    %cst_72 = arith.constant dense<0.000000e+00> : vector<32xf32>
    %162 = vector.multi_reduction <add>, %134, %cst_72 [0] : vector<2x32xf32> to vector<32xf32>
    %163 = vector.shape_cast %162 : vector<32xf32> to vector<1x32xf32>
    %164 = arith.addf %150, %163 : vector<1x32xf32>
    %165 = arith.mulf %134, %134 : vector<2x32xf32>
    %cst_73 = arith.constant dense<0.000000e+00> : vector<32xf32>
    %166 = vector.multi_reduction <add>, %165, %cst_73 [0] : vector<2x32xf32> to vector<32xf32>
    %167 = vector.shape_cast %166 : vector<32xf32> to vector<1x32xf32>
    %168 = arith.addf %154, %167 : vector<1x32xf32>
    %c0_74 = arith.constant 0 : index
    %c0_75 = arith.constant 0 : index
    %169 = vector.load %arg12[%c0_74, %c0_75] : memref<1x16xf32, #tpu.memory_space<vmem>>, vector<1x16xf32>
    %c0_76 = arith.constant 0 : index
    %c0_77 = arith.constant 0 : index
    %170 = vector.load %arg13[%c0_76, %c0_77] : memref<1x16xf32, #tpu.memory_space<vmem>>, vector<1x16xf32>
    %cst_78 = arith.constant dense<0.000000e+00> : vector<1x16xf32>
    %171 = tpu.matmul %157, %135, %cst_78 {dimension_numbers = #tpu.dot_dimension_numbers<[1], [0], [0], [1], [0, 0, 1, 1], [], []>} : vector<1x32xf32>, vector<32x16xf32>, vector<1x16xf32> -> vector<1x16xf32>
    %cst_79 = arith.constant 8.000000e+00 : f32
    %172 = vector.broadcast %cst_79 : f32 to vector<1x16xf32>
    %173 = arith.divf %171, %172 : vector<1x16xf32>
    %cst_80 = arith.constant dense<0.000000e+00> : vector<1x16xf32>
    %174 = tpu.matmul %161, %135, %cst_80 {dimension_numbers = #tpu.dot_dimension_numbers<[1], [0], [0], [1], [0, 0, 1, 1], [], []>} : vector<1x32xf32>, vector<32x16xf32>, vector<1x16xf32> -> vector<1x16xf32>
    %cst_81 = arith.constant 8.000000e+00 : f32
    %175 = vector.broadcast %cst_81 : f32 to vector<1x16xf32>
    %176 = arith.divf %174, %175 : vector<1x16xf32>
    %177 = arith.mulf %173, %173 : vector<1x16xf32>
    %178 = arith.subf %176, %177 : vector<1x16xf32>
    %cst_82 = arith.constant 9.99999974E-6 : f32
    %179 = vector.broadcast %cst_82 : f32 to vector<1x16xf32>
    %180 = arith.addf %178, %179 : vector<1x16xf32>
    %181 = math.rsqrt %180 : vector<1x16xf32>
    %182 = arith.mulf %169, %181 : vector<1x16xf32>
    %183 = arith.mulf %173, %182 : vector<1x16xf32>
    %184 = arith.subf %170, %183 : vector<1x16xf32>
    %cst_83 = arith.constant dense<0.000000e+00> : vector<1x32xf32>
    %185 = tpu.matmul %182, %136, %cst_83 {dimension_numbers = #tpu.dot_dimension_numbers<[1], [0], [0], [1], [0, 0, 1, 1], [], []>} : vector<1x16xf32>, vector<16x32xf32>, vector<1x32xf32> -> vector<1x32xf32>
    %cst_84 = arith.constant dense<0.000000e+00> : vector<1x32xf32>
    %186 = tpu.matmul %184, %136, %cst_84 {dimension_numbers = #tpu.dot_dimension_numbers<[1], [0], [0], [1], [0, 0, 1, 1], [], []>} : vector<1x16xf32>, vector<16x32xf32>, vector<1x32xf32> -> vector<1x32xf32>
    %c0_85 = arith.constant 0 : index
    %c0_86 = arith.constant 0 : index
    %187 = vector.load %arg14[%c0_85, %c0_86] : memref<1x16xf32, #tpu.memory_space<vmem>>, vector<1x16xf32>
    %c0_87 = arith.constant 0 : index
    %c0_88 = arith.constant 0 : index
    %188 = vector.load %arg15[%c0_87, %c0_88] : memref<1x16xf32, #tpu.memory_space<vmem>>, vector<1x16xf32>
    %cst_89 = arith.constant dense<0.000000e+00> : vector<1x16xf32>
    %189 = tpu.matmul %164, %135, %cst_89 {dimension_numbers = #tpu.dot_dimension_numbers<[1], [0], [0], [1], [0, 0, 1, 1], [], []>} : vector<1x32xf32>, vector<32x16xf32>, vector<1x16xf32> -> vector<1x16xf32>
    %cst_90 = arith.constant 8.000000e+00 : f32
    %190 = vector.broadcast %cst_90 : f32 to vector<1x16xf32>
    %191 = arith.divf %189, %190 : vector<1x16xf32>
    %cst_91 = arith.constant dense<0.000000e+00> : vector<1x16xf32>
    %192 = tpu.matmul %168, %135, %cst_91 {dimension_numbers = #tpu.dot_dimension_numbers<[1], [0], [0], [1], [0, 0, 1, 1], [], []>} : vector<1x32xf32>, vector<32x16xf32>, vector<1x16xf32> -> vector<1x16xf32>
    %cst_92 = arith.constant 8.000000e+00 : f32
    %193 = vector.broadcast %cst_92 : f32 to vector<1x16xf32>
    %194 = arith.divf %192, %193 : vector<1x16xf32>
    %195 = arith.mulf %191, %191 : vector<1x16xf32>
    %196 = arith.subf %194, %195 : vector<1x16xf32>
    %cst_93 = arith.constant 9.99999974E-6 : f32
    %197 = vector.broadcast %cst_93 : f32 to vector<1x16xf32>
    %198 = arith.addf %196, %197 : vector<1x16xf32>
    %199 = math.rsqrt %198 : vector<1x16xf32>
    %200 = arith.mulf %187, %199 : vector<1x16xf32>
    %201 = arith.mulf %191, %200 : vector<1x16xf32>
    %202 = arith.subf %188, %201 : vector<1x16xf32>
    %cst_94 = arith.constant dense<0.000000e+00> : vector<1x32xf32>
    %203 = tpu.matmul %200, %136, %cst_94 {dimension_numbers = #tpu.dot_dimension_numbers<[1], [0], [0], [1], [0, 0, 1, 1], [], []>} : vector<1x16xf32>, vector<16x32xf32>, vector<1x32xf32> -> vector<1x32xf32>
    %cst_95 = arith.constant dense<0.000000e+00> : vector<1x32xf32>
    %204 = tpu.matmul %202, %136, %cst_95 {dimension_numbers = #tpu.dot_dimension_numbers<[1], [0], [0], [1], [0, 0, 1, 1], [], []>} : vector<1x16xf32>, vector<16x32xf32>, vector<1x32xf32> -> vector<1x32xf32>
    %c0_96 = arith.constant 0 : index
    %c0_97 = arith.constant 0 : index
    %c0_98 = arith.constant 0 : index
    %205 = vector.load %arg16[%c0_96, %c0_97, %c0_98] : memref<3x32x32xbf16, #tpu.memory_space<vmem>>, vector<1x32x32xbf16>
    %206 = vector.shape_cast %205 : vector<1x32x32xbf16> to vector<32x32xbf16>
    %c1_99 = arith.constant 1 : index
    %c0_100 = arith.constant 0 : index
    %c0_101 = arith.constant 0 : index
    %207 = vector.load %arg16[%c1_99, %c0_100, %c0_101] : memref<3x32x32xbf16, #tpu.memory_space<vmem>>, vector<1x32x32xbf16>
    %208 = vector.shape_cast %207 : vector<1x32x32xbf16> to vector<32x32xbf16>
    %c2_102 = arith.constant 2 : index
    %c0_103 = arith.constant 0 : index
    %c0_104 = arith.constant 0 : index
    %209 = vector.load %arg16[%c2_102, %c0_103, %c0_104] : memref<3x32x32xbf16, #tpu.memory_space<vmem>>, vector<1x32x32xbf16>
    %210 = vector.shape_cast %209 : vector<1x32x32xbf16> to vector<32x32xbf16>
    %c0_105 = arith.constant 0 : index
    %c0_106 = arith.constant 0 : index
    %211 = vector.load %arg17[%c0_105, %c0_106] : memref<1x32xf32, #tpu.memory_space<vmem>>, vector<1x32xf32>
    %cst_107 = arith.constant 0.000000e+00 : f32
    %212 = vector.broadcast %cst_107 : f32 to vector<1x32xf32>
    %c0_108 = arith.constant 0 : index
    %c0_109 = arith.constant 0 : index
    %213 = vector.load %arg20[%c0_108, %c0_109] : memref<4x32xf32, #tpu.memory_space<vmem>>, vector<1x32xf32>
    tpu.vector_store %arg20[%c0_108, %c0_109], %212 {strides = array<i32>} : memref<4x32xf32, #tpu.memory_space<vmem>>, vector<1x32xf32>,
    %cst_110 = arith.constant 0.000000e+00 : f32
    %214 = vector.broadcast %cst_110 : f32 to vector<1x32xf32>
    %c3 = arith.constant 3 : index
    %c0_111 = arith.constant 0 : index
    %215 = vector.load %arg20[%c3, %c0_111] : memref<4x32xf32, #tpu.memory_space<vmem>>, vector<1x32xf32>
    tpu.vector_store %arg20[%c3, %c0_111], %214 {strides = array<i32>} : memref<4x32xf32, #tpu.memory_space<vmem>>, vector<1x32xf32>,
    %cst_112 = arith.constant 0.000000e+00 : f32
    %216 = vector.broadcast %cst_112 : f32 to vector<1x32xf32>
    %cst_113 = arith.constant 0.000000e+00 : f32
    %217 = vector.broadcast %cst_113 : f32 to vector<1x32xf32>
    %218 = vector.broadcast %185 : vector<1x32xf32> to vector<2x32xf32>
    %219 = arith.mulf %100, %218 : vector<2x32xf32>
    %220 = vector.broadcast %186 : vector<1x32xf32> to vector<2x32xf32>
    %221 = arith.addf %219, %220 : vector<2x32xf32>
    %cst_114 = arith.constant 0.000000e+00 : f32
    %222 = vector.broadcast %cst_114 : f32 to vector<2x32xf32>
    %223 = arith.maximumf %221, %222 : vector<2x32xf32>
    %c1_115 = arith.constant 1 : index
    %c0_116 = arith.constant 0 : index
    %224 = vector.load %arg20[%c1_115, %c0_116] : memref<4x32xf32, #tpu.memory_space<vmem>>, vector<2x32xf32>
    tpu.vector_store %arg20[%c1_115, %c0_116], %223 {strides = array<i32>} : memref<4x32xf32, #tpu.memory_space<vmem>>, vector<2x32xf32>,
    %cst_117 = arith.constant 0.000000e+00 : f32
    %225 = vector.broadcast %cst_117 : f32 to vector<2x32xf32>
    %226 = vector.broadcast %211 : vector<1x32xf32> to vector<2x32xf32>
    %227 = arith.addf %225, %226 : vector<2x32xf32>
    %c0_118 = arith.constant 0 : index
    %c0_119 = arith.constant 0 : index
    %228 = vector.load %arg20[%c0_118, %c0_119] : memref<4x32xf32, #tpu.memory_space<vmem>>, vector<2x32xf32>
    %229 = arith.truncf %228 : vector<2x32xf32> to vector<2x32xbf16>
    %cst_120 = arith.constant dense<0.000000e+00> : vector<2x32xf32>
    %230 = tpu.matmul %229, %206, %cst_120 {dimension_numbers = #tpu.dot_dimension_numbers<[1], [0], [0], [1], [0, 0, 1, 1], [], []>} : vector<2x32xbf16>, vector<32x32xbf16>, vector<2x32xf32> -> vector<2x32xf32>
    %231 = arith.addf %227, %230 : vector<2x32xf32>
    %c1_121 = arith.constant 1 : index
    %c0_122 = arith.constant 0 : index
    %232 = vector.load %arg20[%c1_121, %c0_122] : memref<4x32xf32, #tpu.memory_space<vmem>>, vector<2x32xf32>
    %233 = arith.truncf %232 : vector<2x32xf32> to vector<2x32xbf16>
    %cst_123 = arith.constant dense<0.000000e+00> : vector<2x32xf32>
    %234 = tpu.matmul %233, %208, %cst_123 {dimension_numbers = #tpu.dot_dimension_numbers<[1], [0], [0], [1], [0, 0, 1, 1], [], []>} : vector<2x32xbf16>, vector<32x32xbf16>, vector<2x32xf32> -> vector<2x32xf32>
    %235 = arith.addf %231, %234 : vector<2x32xf32>
    %c2_124 = arith.constant 2 : index
    %c0_125 = arith.constant 0 : index
    %236 = vector.load %arg20[%c2_124, %c0_125] : memref<4x32xf32, #tpu.memory_space<vmem>>, vector<2x32xf32>
    %237 = arith.truncf %236 : vector<2x32xf32> to vector<2x32xbf16>
    %cst_126 = arith.constant dense<0.000000e+00> : vector<2x32xf32>
    %238 = tpu.matmul %237, %210, %cst_126 {dimension_numbers = #tpu.dot_dimension_numbers<[1], [0], [0], [1], [0, 0, 1, 1], [], []>} : vector<2x32xbf16>, vector<32x32xbf16>, vector<2x32xf32> -> vector<2x32xf32>
    %239 = arith.addf %235, %238 : vector<2x32xf32>
    %240 = vector.broadcast %203 : vector<1x32xf32> to vector<2x32xf32>
    %241 = arith.mulf %104, %240 : vector<2x32xf32>
    %242 = arith.addf %239, %241 : vector<2x32xf32>
    %243 = vector.broadcast %204 : vector<1x32xf32> to vector<2x32xf32>
    %244 = arith.addf %242, %243 : vector<2x32xf32>
    %c0_127 = arith.constant 0 : index
    %c0_128 = arith.constant 0 : index
    %245 = vector.load %arg18[%c0_127, %c0_128] : memref<4x32xf32, #tpu.memory_space<vmem>>, vector<2x32xf32>
    tpu.vector_store %arg18[%c0_127, %c0_128], %244 {strides = array<i32>} : memref<4x32xf32, #tpu.memory_space<vmem>>, vector<2x32xf32>,
    %cst_129 = arith.constant dense<0.000000e+00> : vector<32xf32>
    %246 = vector.multi_reduction <add>, %244, %cst_129 [0] : vector<2x32xf32> to vector<32xf32>
    %247 = vector.shape_cast %246 : vector<32xf32> to vector<1x32xf32>
    %248 = arith.addf %216, %247 : vector<1x32xf32>
    %249 = arith.mulf %244, %244 : vector<2x32xf32>
    %cst_130 = arith.constant dense<0.000000e+00> : vector<32xf32>
    %250 = vector.multi_reduction <add>, %249, %cst_130 [0] : vector<2x32xf32> to vector<32xf32>
    %251 = vector.shape_cast %250 : vector<32xf32> to vector<1x32xf32>
    %252 = arith.addf %217, %251 : vector<1x32xf32>
    %253 = vector.broadcast %185 : vector<1x32xf32> to vector<2x32xf32>
    %254 = arith.mulf %130, %253 : vector<2x32xf32>
    %255 = vector.broadcast %186 : vector<1x32xf32> to vector<2x32xf32>
    %256 = arith.addf %254, %255 : vector<2x32xf32>
    %cst_131 = arith.constant 0.000000e+00 : f32
    %257 = vector.broadcast %cst_131 : f32 to vector<2x32xf32>
    %258 = arith.maximumf %256, %257 : vector<2x32xf32>
    %c1_132 = arith.constant 1 : index
    %c0_133 = arith.constant 0 : index
    %259 = vector.load %arg20[%c1_132, %c0_133] : memref<4x32xf32, #tpu.memory_space<vmem>>, vector<2x32xf32>
    tpu.vector_store %arg20[%c1_132, %c0_133], %258 {strides = array<i32>} : memref<4x32xf32, #tpu.memory_space<vmem>>, vector<2x32xf32>,
    %cst_134 = arith.constant 0.000000e+00 : f32
    %260 = vector.broadcast %cst_134 : f32 to vector<2x32xf32>
    %261 = vector.broadcast %211 : vector<1x32xf32> to vector<2x32xf32>
    %262 = arith.addf %260, %261 : vector<2x32xf32>
    %c0_135 = arith.constant 0 : index
    %c0_136 = arith.constant 0 : index
    %263 = vector.load %arg20[%c0_135, %c0_136] : memref<4x32xf32, #tpu.memory_space<vmem>>, vector<2x32xf32>
    %264 = arith.truncf %263 : vector<2x32xf32> to vector<2x32xbf16>
    %cst_137 = arith.constant dense<0.000000e+00> : vector<2x32xf32>
    %265 = tpu.matmul %264, %206, %cst_137 {dimension_numbers = #tpu.dot_dimension_numbers<[1], [0], [0], [1], [0, 0, 1, 1], [], []>} : vector<2x32xbf16>, vector<32x32xbf16>, vector<2x32xf32> -> vector<2x32xf32>
    %266 = arith.addf %262, %265 : vector<2x32xf32>
    %c1_138 = arith.constant 1 : index
    %c0_139 = arith.constant 0 : index
    %267 = vector.load %arg20[%c1_138, %c0_139] : memref<4x32xf32, #tpu.memory_space<vmem>>, vector<2x32xf32>
    %268 = arith.truncf %267 : vector<2x32xf32> to vector<2x32xbf16>
    %cst_140 = arith.constant dense<0.000000e+00> : vector<2x32xf32>
    %269 = tpu.matmul %268, %208, %cst_140 {dimension_numbers = #tpu.dot_dimension_numbers<[1], [0], [0], [1], [0, 0, 1, 1], [], []>} : vector<2x32xbf16>, vector<32x32xbf16>, vector<2x32xf32> -> vector<2x32xf32>
    %270 = arith.addf %266, %269 : vector<2x32xf32>
    %c2_141 = arith.constant 2 : index
    %c0_142 = arith.constant 0 : index
    %271 = vector.load %arg20[%c2_141, %c0_142] : memref<4x32xf32, #tpu.memory_space<vmem>>, vector<2x32xf32>
    %272 = arith.truncf %271 : vector<2x32xf32> to vector<2x32xbf16>
    %cst_143 = arith.constant dense<0.000000e+00> : vector<2x32xf32>
    %273 = tpu.matmul %272, %210, %cst_143 {dimension_numbers = #tpu.dot_dimension_numbers<[1], [0], [0], [1], [0, 0, 1, 1], [], []>} : vector<2x32xbf16>, vector<32x32xbf16>, vector<2x32xf32> -> vector<2x32xf32>
    %274 = arith.addf %270, %273 : vector<2x32xf32>
    %275 = vector.broadcast %203 : vector<1x32xf32> to vector<2x32xf32>
    %276 = arith.mulf %134, %275 : vector<2x32xf32>
    %277 = arith.addf %274, %276 : vector<2x32xf32>
    %278 = vector.broadcast %204 : vector<1x32xf32> to vector<2x32xf32>
    %279 = arith.addf %277, %278 : vector<2x32xf32>
    %c2_144 = arith.constant 2 : index
    %c0_145 = arith.constant 0 : index
    %280 = vector.load %arg18[%c2_144, %c0_145] : memref<4x32xf32, #tpu.memory_space<vmem>>, vector<2x32xf32>
    tpu.vector_store %arg18[%c2_144, %c0_145], %279 {strides = array<i32>} : memref<4x32xf32, #tpu.memory_space<vmem>>, vector<2x32xf32>,
    %cst_146 = arith.constant dense<0.000000e+00> : vector<32xf32>
    %281 = vector.multi_reduction <add>, %279, %cst_146 [0] : vector<2x32xf32> to vector<32xf32>
    %282 = vector.shape_cast %281 : vector<32xf32> to vector<1x32xf32>
    %283 = arith.addf %248, %282 : vector<1x32xf32>
    %284 = arith.mulf %279, %279 : vector<2x32xf32>
    %cst_147 = arith.constant dense<0.000000e+00> : vector<32xf32>
    %285 = vector.multi_reduction <add>, %284, %cst_147 [0] : vector<2x32xf32> to vector<32xf32>
    %286 = vector.shape_cast %285 : vector<32xf32> to vector<1x32xf32>
    %287 = arith.addf %252, %286 : vector<1x32xf32>
    %cst_148 = arith.constant dense<0.000000e+00> : vector<1x16xf32>
    %288 = tpu.matmul %283, %135, %cst_148 {dimension_numbers = #tpu.dot_dimension_numbers<[1], [0], [0], [1], [0, 0, 1, 1], [], []>} : vector<1x32xf32>, vector<32x16xf32>, vector<1x16xf32> -> vector<1x16xf32>
    %c0_149 = arith.constant 0 : index
    %c0_150 = arith.constant 0 : index
    %289 = vector.load %arg19[%c0_149, %c0_150] : memref<2x16xf32, #tpu.memory_space<vmem>>, vector<1x16xf32>
    tpu.vector_store %arg19[%c0_149, %c0_150], %288 {strides = array<i32>} : memref<2x16xf32, #tpu.memory_space<vmem>>, vector<1x16xf32>,
    %cst_151 = arith.constant dense<0.000000e+00> : vector<1x16xf32>
    %290 = tpu.matmul %287, %135, %cst_151 {dimension_numbers = #tpu.dot_dimension_numbers<[1], [0], [0], [1], [0, 0, 1, 1], [], []>} : vector<1x32xf32>, vector<32x16xf32>, vector<1x16xf32> -> vector<1x16xf32>
    %c1_152 = arith.constant 1 : index
    %c0_153 = arith.constant 0 : index
    %291 = vector.load %arg19[%c1_152, %c0_153] : memref<2x16xf32, #tpu.memory_space<vmem>>, vector<1x16xf32>
    tpu.vector_store %arg19[%c1_152, %c0_153], %290 {strides = array<i32>} : memref<2x16xf32, #tpu.memory_space<vmem>>, vector<1x16xf32>,
    return
  }
}

</mosaic_0001>

<bundles_post_ra>
// kernel: res_u_body_forward.3
= control target key start
LH: loop header
LB: loop body
LE: loop exit
PB: predicated region body
PF: predicated region fallthrough
CT: control target
= control target key end

     0   :  { %v3939_v0 = vmov 0.0   ;;  %vm3940_vm0 = vmmov 0   ;;  %vm978_vm1 = vcmask 1045504   ;;  %vm347_vm2 = vsmask.f32 7424  ;;  %s4739_s2 = inlined_call_operand.vmem [shape: bf16[7,128,64], index: 2, kind: input, shape index: {}]   ;;  %s4740_s1 = inlined_call_operand.vmem [shape: f32[38,128], index: 1, kind: input, shape index: {}]   ;;  %s4741_s0 = inlined_call_operand.vmem [shape: f32[38,128], index: 0, kind: input, shape index: {}]   ;;  %s4742_s5 = inlined_call_operand.vmem [shape: f32[64,4], index: 5, kind: input, shape index: {}]   ;;  %s4743_s6 = inlined_call_operand.vmem [shape: f32[4,64], index: 6, kind: input, shape index: {}]   ;;  %s4744_s7 = inlined_call_operand.vmem [shape: f32[3,64,32], index: 7, kind: input, shape index: {}]   ;;  %s4745_s3 = inlined_call_operand.vmem [shape: f32[1,4], index: 3, kind: input, shape index: {}]   ;;  %s4746_s4 = inlined_call_operand.vmem [shape: f32[1,4], index: 4, kind: input, shape index: {}]   ;;  %s4747_s8 = inlined_call_operand.vmem [shape: f32[3,8,16], index: 8, kind: input, shape index: {}]   ;;  %s4748_s10 = inlined_call_operand.vmem [shape: f32[16,32], index: 10, kind: output, shape index: {0}]   ;;  %s4749_s9 = inlined_call_operand.vmem [shape: f32[32,4], index: 9, kind: input, shape index: {}]   ;;  %s4750_s11 = inlined_call_operand.vmem [shape: f32[2,4], index: 11, kind: output, shape index: {1}]  }
   0x1   :  { %3174 = vmatprep.subr.bf16.mxu0 %v3939_v0  ;;  %3314 = vmatprep.subr.bf16.mxu1 %v3939_v0  ;;  %v3881_v1 = vld [vmem:[%s4739_s2 + $0x40] sm:$0xff]   ;;  %v3882_v2 = vld [vmem:[%s4739_s2 + $0x48] sm:$0xff]   ;;  %v3883_v3 = vld [vmem:[%s4739_s2 + $0x50] sm:$0xff]   ;;  %vm752_vm3 = vsmask.f32 6400  ;;  %vm559_vm4 = vcmask 1046528  }
   0x2   :  { %3190 = vmatprep.mubr.msk.bf16.mxu0 %vm3940_vm0, %v3939_v0  ;;  %3330 = vmatprep.mubr.msk.bf16.mxu1 %vm3940_vm0, %v3939_v0  ;;  %v43_v4 = vld [vmem:[%s4740_s1] sm:$0xff]  ;;  %v44_v5 = vld [vmem:[%s4740_s1 + $0x8] sm:$0xff]  ;;  %v45_v6 = vld [vmem:[%s4740_s1 + $0x10] sm:$0xff]  ;;  %vm1075_vm5 = vsmask.f32 5376  ;;  %vm1178_vm6 = vcmask 1044480  }
   0x3   :  { %3175 = vmatpush3.bf16.msra.mxu0 %v3881_v1  ;;  %3315 = vmatpush3.bf16.msra.mxu1 %v3881_v1  ;;  %v3884_v7 = vld [vmem:[%s4739_s2 + $0x58] sm:$0xff]   ;;  %v4033_v8 = vpack.c.bf16 %v44_v5, %v43_v4  ;;  %v47_v10 = vld [vmem:[%s4740_s1 + $0x20] sm:$0x3f]  ;;  %v4046_v13 = vpack.c.bf16 %v45_v6, %v45_v6  ;;  %v3886_v19 = vld [vmem:[%s4739_s2 + $0x68] sm:$0xff]   ;;  %vm1234_vm7 = vcmask 523264   ;;  %vm1442_vm8 = vcmask 1043456  }
   0x4   :  { %3176 = vmatprep.subr.bf16.mxu0 %v3939_v0  ;;  %3316 = vmatprep.subr.bf16.mxu1 %v3939_v0  ;;  %v46_v9 = vld [vmem:[%s4740_s1 + $0x18] sm:$0xff]  ;;  %v3885_v15 = vld [vmem:[%s4739_s2 + $0x60] sm:$0xff]   ;;  %v4052_v16 = vpack.c.bf16 %v47_v10, %v47_v10  ;;  %v3887_v28 = vld [vmem:[%s4739_s2 + $0x70] sm:$0xff]   ;;  %vm1438_vm9 = vcmask 31744   ;;  %vm1869_vm10 = vcmask 130048   ;;  %vm2091_vm11 = vcmask 261120  }
   0x5   :  { %v4043_v11 = vpack.c.bf16 %v46_v9, %v45_v6  ;;  %v456_v12 = vshll.u32 %v4033_v8, 16  ;;  %v454_v14 = vshrl.u32 %v4033_v8, 16  ;;  %v461_v22 = vshll.u32 %v4046_v13, 16  ;;  %v3888_v35 = vld [vmem:[%s4739_s2 + $0x78] sm:$0xff]   ;;  %v40_v36 = vld [vmem:[%s4741_s0 + $0x10] sm:$0xff]  ;;  %v38_v40 = vld [vmem:[%s4741_s0] sm:$0xff] }
   0x6   :  { %v867_v23 = vshrl.u32 %v4052_v16, 16  ;;  %v870_v24 = vshll.u32 %v4052_v16, 16  ;;  %v1029_v26 = vrot.slane %v4052_v16, 2  ;;  %v41_v37 = vld [vmem:[%s4741_s0 + $0x18] sm:$0xff]  ;;  %v39_v41 = vld [vmem:[%s4741_s0 + $0x8] sm:$0xff]  ;;  %v3889_v44 = vld [vmem:[%s4739_s2] sm:$0xff]   ;;  %v4123_v50 = vpack.c.bf16 %v40_v36, %v40_v36 }
   0x7   :  { %3177 = vmatpush3.bf16.msra.mxu0 %v3882_v2  ;;  %3317 = vmatpush3.bf16.msra.mxu1 %v3882_v2  ;;  %v458_v17 = vrot.slane %v456_v12, 1  ;;  %v859_v18 = vshrl.u32 %v4043_v11, 16  ;;  %v862_v20 = vshll.u32 %v4043_v11, 16  ;;  %v1028_v25 = vrot.slane %v4043_v11, 2  ;;  %v42_v42 = vld [vmem:[%s4741_s0 + $0x20] sm:$0x3f] }
   0x8   :  { %3178 = vmatprep.subr.bf16.mxu0 %v3939_v0  ;;  %3318 = vmatprep.subr.bf16.mxu1 %v3939_v0  ;;  %v463_v27 = vrot.slane %v461_v22, 1  ;;  %v869_v33 = vrot.slane %v867_v23, 1  ;;  %v872_v34 = vrot.slane %v870_v24, 2  ;;  %v4107_v43 = vpack.c.bf16 %v41_v37, %v40_v36  ;;  %v3890_v48 = vld [vmem:[%s4739_s2 + $0x8] sm:$0xff]   ;;  %v3891_v60 = vld [vmem:[%s4739_s2 + $0x10] sm:$0xff]   ;;  %v3892_v1 = vld [vmem:[%s4739_s2 + $0x18] sm:$0xff]  }
   0x9   :  { %v459_v21 = vor.u32 %v458_v17, %v454_v14  ;;  %v4072_v29 = vsel %vm978_vm1, %v1028_v25, %v1029_v26  ;;  %v861_v30 = vrot.slane %v859_v18, 1  ;;  %v864_v31 = vrot.slane %v862_v20, 2  ;;  %v3893_v2 = vld [vmem:[%s4739_s2 + $0x20] sm:$0xff]   ;;  %v3894_v4 = vld [vmem:[%s4739_s2 + $0x28] sm:$0xff]   ;;  %v3895_v10 = vld [vmem:[%s4739_s2 + $0x30] sm:$0xff]  }
   0xa   :  { %v873_v39 = vor.u32 %v872_v34, %v869_v33  ;;  %v4115_v46 = vpack.c.bf16 %v39_v41, %v38_v40  ;;  %v4117_v47 = vpack.c.bf16 %v42_v42, %v42_v42  ;;  %v918_v49 = vshrl.u32 %v4107_v43, 16  ;;  %v3896_v12 = vld [vmem:[%s4739_s2 + $0x38] sm:$0xff]   ;;  %v3897_v25 = vld [vmem:[%s4739_s2 + $0x80] sm:$0xff]   ;;  %v3903_v33 = vld [vmem:[%s4739_s2 + $0xb0] sm:$0xff]  }
   0xb   :  { %3179 = vmatpush3.bf16.msra.mxu0 %v3883_v3  ;;  %3319 = vmatpush3.bf16.msra.mxu1 %v3883_v3  ;;  %v4079_v32 = vsel %vm347_vm2, %v459_v21, %v463_v27  ;;  %v865_v38 = vor.u32 %v864_v31, %v861_v30  ;;  %v921_v52 = vshll.u32 %v4107_v43, 16  ;;  %v561_v53 = vrot.slane %v4123_v50, 1  ;;  %v3898_v27 = vld [vmem:[%s4739_s2 + $0x88] sm:$0xff]  }
   0xc   :  { %3180 = vmatprep.subr.bf16.mxu0 %v3939_v0  ;;  %3320 = vmatprep.subr.bf16.mxu1 %v3939_v0  ;;  %v560_v51 = vrot.slane %v4115_v46, 1  ;;  %v926_v54 = vshrl.u32 %v4117_v47, 16  ;;  %v1076_v55 = vrot.slane %v918_v49, 2  ;;  %v929_v56 = vshll.u32 %v4117_v47, 16  ;;  %v3902_v30 = vld [vmem:[%s4739_s2 + $0xa8] sm:$0xff]  }
   0xd   :  { %v874_v45 = vsel %vm752_vm3, %v865_v38, %v873_v39  ;;  %v1077_v58 = vrot.slane %v921_v52, 3  ;;  %v920_v5 = vrot.slane %v918_v49, 1  ;;  %v923_v6 = vrot.slane %v921_v52, 2  ;;  %v3904_v39 = vld [vmem:[%s4739_s2 + $0xb8] sm:$0xff]   ;;  %v3905_v52 = vld [vmem:[%s4739_s2 + $0xc0] sm:$0xff]  }
   0xe   :  { %v4138_v57 = vsel %vm559_vm4, %v560_v51, %v561_v53  ;;  %v1079_v59 = vrot.slane %v926_v54, 2  ;;  %v1080_v62 = vrot.slane %v929_v56, 3  ;;  %v931_v9 = vrot.slane %v929_v56, 2  ;;  %v3907_v56 = vld [vmem:[%s4739_s2 + $0xd0] sm:$0xff]  }
   0xf   :  { %3181 = vmatpush3.bf16.msra.mxu0 %v3884_v7  ;;  %3321 = vmatpush3.bf16.msra.mxu1 %v3884_v7  ;;  %v1078_v61 = vor.u32 %v1077_v58, %v1076_v55  ;;  %v928_v7 = vrot.slane %v926_v54, 1  ;;  %v924_v14 = vor.u32 %v923_v6, %v920_v5  ;;  %v1127_v17 = vrot.slane %v859_v18, 2  ;;  %v3906_v55 = vld [vmem:[%s4739_s2 + $0xc8] sm:$0xff]   ;;  %v3908_v58 = vld [vmem:[%s4739_s2 + $0xd8] sm:$0xff]   ;;  %v3919_v5 = vld [vmem:[%s4739_s2 + $0x130] sm:$0xff]  }
  0x10   :  { %3182 = vmatprep.subr.bf16.mxu0 %v3939_v0  ;;  %3322 = vmatprep.subr.bf16.mxu1 %v3939_v0  ;;  %v1081_v63 = vor.u32 %v1080_v62, %v1079_v59  ;;  %v1130_v21 = vrot.slane %v867_v23, 2  ;;  %v1131_v22 = vrot.slane %v870_v24, 3  ;;  %v657_v11 = vrot.slane %v4033_v8, 1  ;;  %v3909_v59 = vld [vmem:[%s4739_s2 + $0xe0] sm:$0xff]   ;;  %v3912_v62 = vld [vmem:[%s4739_s2 + $0xf8] sm:$0xff]  }
  0x11   :  { %v658_v18 = vrot.slane %v4046_v13, 1  ;;  %v3900_v13 = vld [vmem:[%s4739_s2 + $0x98] sm:$0xff]   ;;  %v351_v31 = vshll.u32 %v4115_v46, 16  ;;  %v349_v34 = vshrl.u32 %v4115_v46, 16  ;;  %v356_v36 = vshll.u32 %v4123_v50, 16 }
  0x12   :  { %v4156_v3 = vsel %vm1075_vm5, %v1078_v61, %v1081_v63  ;;  %v1132_v23 = vor.u32 %v1131_v22, %v1130_v21  ;;  %v979_v37 = vrot.slane %v4107_v43, 2  ;;  %v980_v38 = vrot.slane %v4117_v47, 2  ;;  %v3911_v61 = vld [vmem:[%s4739_s2 + $0xf0] sm:$0xff]   ;;  %v3913_v63 = vld [vmem:[%s4739_s2 + $0x100] sm:$0xff]   ;;  %v3920_v6 = vld [vmem:[%s4739_s2 + $0x138] sm:$0xff]  }
  0x13   :  { %3183 = vmatpush3.bf16.msra.mxu0 %v3885_v15  ;;  %3323 = vmatpush3.bf16.msra.mxu1 %v3885_v15  ;;  %v932_v15 = vor.u32 %v931_v9, %v928_v7  ;;  %v4191_v16 = vsel %vm559_vm4, %v657_v11, %v658_v18  ;;  %v358_v41 = vrot.slane %v356_v36, 1  ;;  %v756_v42 = vshrl.u32 %v4123_v50, 16  ;;  %v3921_v7 = vld [vmem:[%s4739_s2 + $0x140] sm:$0xff]   ;;  %v3922_v9 = vld [vmem:[%s4739_s2 + $0x148] sm:$0xff]   ;;  %v3931_v21 = vld [vmem:[%s4739_s2 + $0x190] sm:$0xff]  }
  0x14   :  { %3184 = vmatprep.subr.bf16.mxu0 %v3939_v0  ;;  %3324 = vmatprep.subr.bf16.mxu1 %v3939_v0  ;;  %v981_v49 = vsel %vm978_vm1, %v979_v37, %v980_v38  ;;  %v3932_v22 = vld [vmem:[%s4739_s2 + $0x198] sm:$0xff]   ;;  %v3935_v11 = vld [vmem:[%s4739_s2 + $0x1b0] sm:$0xff]   ;;  %vm2658_vm12 = vcmask 24576  }
  0x15   :  { %v933_v26 = vsel %vm752_vm3, %v924_v14, %v932_v15  ;;  %v3927_v14 = vld [vmem:[%s4739_s2 + $0x170] sm:$0xff]   ;;  %v3928_v15 = vld [vmem:[%s4739_s2 + $0x178] sm:$0xff]  }
  0x16   :  { %v3936_v18 = vld [vmem:[%s4739_s2 + $0x1b8] sm:$0xff]  }
  0x17   :  { %3185 = vmatpush3.bf16.msra.mxu0 %v3886_v19  ;;  %3325 = vmatpush3.bf16.msra.mxu1 %v3886_v19  ;;  %v1128_v19 = vrot.slane %v862_v20, 3 }
  0x18   :  { %3186 = vmatprep.subr.bf16.mxu0 %v3939_v0  ;;  %3326 = vmatprep.subr.bf16.mxu1 %v3939_v0 }
  0x19   :  { %v1129_v20 = vor.u32 %v1128_v19, %v1127_v17  ;;  %v3929_v17 = vld [vmem:[%s4739_s2 + $0x180] sm:$0xff]   ;;  %v3930_v19 = vld [vmem:[%s4739_s2 + $0x188] sm:$0xff]  }
  0x1b   :  { %3187 = vmatpush3.bf16.msra.mxu0 %v3887_v28  ;;  %3327 = vmatpush3.bf16.msra.mxu1 %v3887_v28  ;;  %v4194_v24 = vsel %vm1075_vm5, %v1129_v20, %v1132_v23  ;;  %v3901_v28 = vld [vmem:[%s4739_s2 + $0xa0] sm:$0xff]   ;;  %v1179_v20 = vrot.slane %v4107_v43, 3  ;;  %v1180_v23 = vrot.slane %v4117_v47, 3  ;;  %v1227_v47 = vld [vmem:[%s4742_s5 + $0x8] sm:$0xff] }
  0x1c   :  { %3188 = vmatprep.subr.bf16.mxu0 %v3939_v0  ;;  %3328 = vmatprep.subr.bf16.mxu1 %v3939_v0  ;;  %v1226_v43 = vld [vmem:[%s4742_s5] sm:$0xff] }
  0x1f   :  { %3189 = vmatpush3.bf16.msra.mxu0 %v3888_v35  ;;  %3329 = vmatpush3.bf16.msra.mxu1 %v3888_v35  ;;  %v353_v35 = vrot.slane %v351_v31, 1 }
  0x20   :  { %3194 = vmatprep.subr.bf16.mxu0 %v3939_v0  ;;  %3334 = vmatprep.subr.bf16.mxu1 %v3939_v0 }
  0x21   :  { %v354_v40 = vor.u32 %v353_v35, %v349_v34  ;;  %v1233_v35 = vld [vmem:[%s4742_s5 + $0x38] sm:$0xff] }
  0x22   :  { %3191 = vmatmul.mubr.bf16.vlgmr.msra.gmra.mrb[0].mxu0 %v4033_v8  ;;  %3331 = vmatmul.mubr.bf16.vlgmr.msra.gmra.mrb[0].mxu1 %v874_v45  ;;  %v3899_v8 = vld [vmem:[%s4739_s2 + $0x90] sm:$0xff]   ;;  %v754_v45 = vrot.slane %v351_v31, 2  ;;  %v1231_v31 = vld [vmem:[%s4742_s5 + $0x28] sm:$0xff] }
  0x23   :  { %3195 = vmatpush3.bf16.msra.mxu0 %v3889_v44  ;;  %3335 = vmatpush3.bf16.msra.mxu1 %v3889_v44  ;;  %v753_v44 = vrot.slane %v349_v34, 1  ;;  %v359_v51 = vsel %vm347_vm2, %v354_v40, %v358_v41  ;;  %v1232_v34 = vld [vmem:[%s4742_s5 + $0x30] sm:$0xff] }
  0x24   :  { %3196 = vmatprep.subr.bf16.mxu0 %v3939_v0  ;;  %3336 = vmatprep.subr.bf16.mxu1 %v3939_v0 }
  0x25   :  { %3210 = vmatprep.mubr.msk.bf16.mxu0 %vm3940_vm0, %v3939_v0  ;;  %3350 = vmatprep.mubr.msk.bf16.mxu1 %vm3940_vm0, %v3939_v0  ;;  %v755_v53 = vor.u32 %v754_v45, %v753_v44 }
  0x27   :  { %3197 = vmatpush3.bf16.msra.mxu0 %v3890_v48  ;;  %3337 = vmatpush3.bf16.msra.mxu1 %v3890_v48  ;;  %v759_v48 = vrot.slane %v356_v36, 2  ;;  %v3690_v36 = vpack.c.bf16 %v1233_v35, %v1232_v34 }
  0x28   :  { %3198 = vmatprep.subr.bf16.mxu0 %v3939_v0  ;;  %3338 = vmatprep.subr.bf16.mxu1 %v3939_v0 }
  0x2b   :  { %3199 = vmatpush3.bf16.msra.mxu0 %v3891_v60  ;;  %3339 = vmatpush3.bf16.msra.mxu1 %v3891_v60  ;;  %v3910_v60 = vld [vmem:[%s4739_s2 + $0xe8] sm:$0xff]  }
  0x2c   :  { %3200 = vmatprep.subr.bf16.mxu0 %v3939_v0  ;;  %3340 = vmatprep.subr.bf16.mxu1 %v3939_v0 }
  0x2f   :  { %3201 = vmatpush3.bf16.msra.mxu0 %v3892_v1  ;;  %3341 = vmatpush3.bf16.msra.mxu1 %v3892_v1  ;;  %v3914_v1 = vld [vmem:[%s4739_s2 + $0x108] sm:$0xff]  }
  0x30   :  { %3202 = vmatprep.subr.bf16.mxu0 %v3939_v0  ;;  %3342 = vmatprep.subr.bf16.mxu1 %v3939_v0 }
  0x33   :  { %3203 = vmatpush3.bf16.msra.mxu0 %v3893_v2  ;;  %3343 = vmatpush3.bf16.msra.mxu1 %v3893_v2  ;;  %v3917_v2 = vld [vmem:[%s4739_s2 + $0x120] sm:$0xff]  }
  0x34   :  { %3204 = vmatprep.subr.bf16.mxu0 %v3939_v0  ;;  %3344 = vmatprep.subr.bf16.mxu1 %v3939_v0 }
  0x37   :  { %3205 = vmatpush3.bf16.msra.mxu0 %v3894_v4  ;;  %3345 = vmatpush3.bf16.msra.mxu1 %v3894_v4  ;;  %v3918_v4 = vld [vmem:[%s4739_s2 + $0x128] sm:$0xff]  }
  0x38   :  { %3206 = vmatprep.subr.bf16.mxu0 %v3939_v0  ;;  %3346 = vmatprep.subr.bf16.mxu1 %v3939_v0 }
  0x3b   :  { %3207 = vmatpush3.bf16.msra.mxu0 %v3895_v10  ;;  %3347 = vmatpush3.bf16.msra.mxu1 %v3895_v10  ;;  %v3925_v10 = vld [vmem:[%s4739_s2 + $0x160] sm:$0xff]  }
  0x3c   :  { %3208 = vmatprep.subr.bf16.mxu0 %v3939_v0  ;;  %3348 = vmatprep.subr.bf16.mxu1 %v3939_v0 }
  0x3f   :  { %3209 = vmatpush3.bf16.msra.mxu0 %v3896_v12  ;;  %3349 = vmatpush3.bf16.msra.mxu1 %v3896_v12  ;;  %v3926_v12 = vld [vmem:[%s4739_s2 + $0x168] sm:$0xff]  }
  0x40   :  { %3214 = vmatprep.subr.bf16.mxu0 %v3939_v0  ;;  %3354 = vmatprep.subr.bf16.mxu1 %v3939_v0 }
  0x42   :  { %3211 = vmatmul.mubr.bf16.vlgmr.msra.gmra.mrb[0].mxu0 %v4115_v46  ;;  %3351 = vmatmul.mubr.bf16.vlgmr.msra.gmra.mrb[0].mxu1 %v933_v26  ;;  %v758_v46 = vrot.slane %v756_v42, 1  ;;  %v3934_v26 = vld [vmem:[%s4739_s2 + $0x1a8] sm:$0xff]  }
  0x43   :  { %3215 = vmatpush3.bf16.msra.mxu0 %v3897_v25  ;;  %3355 = vmatpush3.bf16.msra.mxu1 %v3897_v25  ;;  %v3933_v25 = vld [vmem:[%s4739_s2 + $0x1a0] sm:$0xff]  }
  0x44   :  { %3216 = vmatprep.subr.bf16.mxu0 %v3939_v0  ;;  %3356 = vmatprep.subr.bf16.mxu1 %v3939_v0  ;;  %v760_v50 = vor.u32 %v759_v48, %v758_v46 }
  0x45   :  { %3230 = vmatprep.mubr.msk.bf16.mxu0 %vm3940_vm0, %v3939_v0  ;;  %3370 = vmatprep.mubr.msk.bf16.mxu1 %vm3940_vm0, %v3939_v0 }
  0x46   :  { %v4249_v54 = vsel %vm752_vm3, %v755_v53, %v760_v50 }
  0x47   :  { %3217 = vmatpush3.bf16.msra.mxu0 %v3898_v27  ;;  %3357 = vmatpush3.bf16.msra.mxu1 %v3898_v27  ;;  %v3941_v27 = vmov 0.0|0.0  }
  0x48   :  { %3218 = vmatprep.subr.bf16.mxu0 %v3939_v0  ;;  %3358 = vmatprep.subr.bf16.mxu1 %v3939_v0 }
  0x4b   :  { %3219 = vmatpush3.bf16.msra.mxu0 %v3899_v8  ;;  %3359 = vmatpush3.bf16.msra.mxu1 %v3899_v8  ;;  %v1228_v8 = vld [vmem:[%s4742_s5 + $0x10] sm:$0xff] }
  0x4c   :  { %3220 = vmatprep.subr.bf16.mxu0 %v3939_v0  ;;  %3360 = vmatprep.subr.bf16.mxu1 %v3939_v0 }
  0x4f   :  { %3221 = vmatpush3.bf16.msra.mxu0 %v3900_v13  ;;  %3361 = vmatpush3.bf16.msra.mxu1 %v3900_v13  ;;  %v1229_v13 = vld [vmem:[%s4742_s5 + $0x18] sm:$0xff] }
  0x50   :  { %3222 = vmatprep.subr.bf16.mxu0 %v3939_v0  ;;  %3362 = vmatprep.subr.bf16.mxu1 %v3939_v0 }
  0x53   :  { %3223 = vmatpush3.bf16.msra.mxu0 %v3901_v28  ;;  %3363 = vmatpush3.bf16.msra.mxu1 %v3901_v28  ;;  %v3684_v28 = vpack.c.bf16 %v1229_v13, %v1228_v8  ;;  %v2900_v8 = vld [vmem:[%s4744_s7 + $0x40] sm:$0xff] }
  0x54   :  { %3224 = vmatprep.subr.bf16.mxu0 %v3939_v0  ;;  %3364 = vmatprep.subr.bf16.mxu1 %v3939_v0 }
  0x57   :  { %3225 = vmatpush3.bf16.msra.mxu0 %v3902_v30  ;;  %3365 = vmatpush3.bf16.msra.mxu1 %v3902_v30  ;;  %v1230_v30 = vld [vmem:[%s4742_s5 + $0x20] sm:$0xff] }
  0x58   :  { %3226 = vmatprep.subr.bf16.mxu0 %v3939_v0  ;;  %3366 = vmatprep.subr.bf16.mxu1 %v3939_v0 }
  0x5b   :  { %3227 = vmatpush3.bf16.msra.mxu0 %v3903_v33  ;;  %3367 = vmatpush3.bf16.msra.mxu1 %v3903_v33  ;;  %v3687_v33 = vpack.c.bf16 %v1231_v31, %v1230_v30 }
  0x5c   :  { %3228 = vmatprep.subr.bf16.mxu0 %v3939_v0  ;;  %3368 = vmatprep.subr.bf16.mxu1 %v3939_v0 }
  0x5f   :  { %3229 = vmatpush3.bf16.msra.mxu0 %v3904_v39  ;;  %3369 = vmatpush3.bf16.msra.mxu1 %v3904_v39 }
  0x60   :  { %3234 = vmatprep.subr.bf16.mxu0 %v3939_v0  ;;  %3374 = vmatprep.subr.bf16.mxu1 %v3939_v0 }
  0x62   :  { %3231 = vmatmul.mubr.bf16.vlgmr.msra.gmra.mrb[0].mxu0 %v359_v51  ;;  %3371 = vmatmul.mubr.bf16.vlgmr.msra.gmra.mrb[0].mxu1 %v981_v49 }
  0x63   :  { %3235 = vmatpush3.bf16.msra.mxu0 %v3905_v52  ;;  %3375 = vmatpush3.bf16.msra.mxu1 %v3905_v52 }
  0x64   :  { %3236 = vmatprep.subr.bf16.mxu0 %v3939_v0  ;;  %3376 = vmatprep.subr.bf16.mxu1 %v3939_v0 }
  0x65   :  { %3250 = vmatprep.mubr.msk.bf16.mxu0 %vm3940_vm0, %v3939_v0  ;;  %3390 = vmatprep.mubr.msk.bf16.mxu1 %vm3940_vm0, %v3939_v0 }
  0x67   :  { %3237 = vmatpush3.bf16.msra.mxu0 %v3906_v55  ;;  %3377 = vmatpush3.bf16.msra.mxu1 %v3906_v55 }
  0x68   :  { %3238 = vmatprep.subr.bf16.mxu0 %v3939_v0  ;;  %3378 = vmatprep.subr.bf16.mxu1 %v3939_v0 }
  0x6b   :  { %3239 = vmatpush3.bf16.msra.mxu0 %v3907_v56  ;;  %3379 = vmatpush3.bf16.msra.mxu1 %v3907_v56 }
  0x6c   :  { %3240 = vmatprep.subr.bf16.mxu0 %v3939_v0  ;;  %3380 = vmatprep.subr.bf16.mxu1 %v3939_v0 }
  0x6f   :  { %3241 = vmatpush3.bf16.msra.mxu0 %v3908_v58  ;;  %3381 = vmatpush3.bf16.msra.mxu1 %v3908_v58 }
  0x70   :  { %3242 = vmatprep.subr.bf16.mxu0 %v3939_v0  ;;  %3382 = vmatprep.subr.bf16.mxu1 %v3939_v0 }
  0x73   :  { %3243 = vmatpush3.bf16.msra.mxu0 %v3909_v59  ;;  %3383 = vmatpush3.bf16.msra.mxu1 %v3909_v59 }
  0x74   :  { %3244 = vmatprep.subr.bf16.mxu0 %v3939_v0  ;;  %3384 = vmatprep.subr.bf16.mxu1 %v3939_v0 }
  0x77   :  { %3245 = vmatpush3.bf16.msra.mxu0 %v3910_v60  ;;  %3385 = vmatpush3.bf16.msra.mxu1 %v3910_v60 }
  0x78   :  { %3246 = vmatprep.subr.bf16.mxu0 %v3939_v0  ;;  %3386 = vmatprep.subr.bf16.mxu1 %v3939_v0 }
  0x7b   :  { %3247 = vmatpush3.bf16.msra.mxu0 %v3911_v61  ;;  %3387 = vmatpush3.bf16.msra.mxu1 %v3911_v61 }
  0x7c   :  { %3248 = vmatprep.subr.bf16.mxu0 %v3939_v0  ;;  %3388 = vmatprep.subr.bf16.mxu1 %v3939_v0 }
  0x7f   :  { %3249 = vmatpush3.bf16.msra.mxu0 %v3912_v62  ;;  %3389 = vmatpush3.bf16.msra.mxu1 %v3912_v62 }
  0x80   :  { %3254 = vmatprep.subr.bf16.mxu0 %v3939_v0  ;;  %3394 = vmatprep.subr.bf16.mxu1 %v3939_v0 }
  0x82   :  { %3251 = vmatmul.mubr.bf16.vlgmr.msra.gmra.mrb[0].mxu0 %v4079_v32  ;;  %3391 = vmatmul.mubr.bf16.vlgmr.msra.gmra.mrb[0].mxu1 %v4072_v29  ;;  %v3915_v29 = vld [vmem:[%s4739_s2 + $0x110] sm:$0xff]   ;;  %v3916_v32 = vld [vmem:[%s4739_s2 + $0x118] sm:$0xff]  }
  0x83   :  { %3255 = vmatpush3.bf16.msra.mxu0 %v3913_v63  ;;  %3395 = vmatpush3.bf16.msra.mxu1 %v3913_v63 }
  0x84   :  { %3256 = vmatprep.subr.bf16.mxu0 %v3939_v0  ;;  %3396 = vmatprep.subr.bf16.mxu1 %v3939_v0 }
  0x85   :  { %3270 = vmatprep.mubr.msk.bf16.mxu0 %vm3940_vm0, %v3939_v0  ;;  %3410 = vmatprep.mubr.msk.bf16.mxu1 %vm3940_vm0, %v3939_v0 }
  0x87   :  { %3257 = vmatpush3.bf16.msra.mxu0 %v3914_v1  ;;  %3397 = vmatpush3.bf16.msra.mxu1 %v3914_v1 }
  0x88   :  { %3258 = vmatprep.subr.bf16.mxu0 %v3939_v0  ;;  %3398 = vmatprep.subr.bf16.mxu1 %v3939_v0 }
  0x8b   :  { %3259 = vmatpush3.bf16.msra.mxu0 %v3915_v29  ;;  %3399 = vmatpush3.bf16.msra.mxu1 %v3915_v29 }
  0x8c   :  { %3260 = vmatprep.subr.bf16.mxu0 %v3939_v0  ;;  %3400 = vmatprep.subr.bf16.mxu1 %v3939_v0 }
  0x8f   :  { %3261 = vmatpush3.bf16.msra.mxu0 %v3916_v32  ;;  %3401 = vmatpush3.bf16.msra.mxu1 %v3916_v32 }
  0x90   :  { %3262 = vmatprep.subr.bf16.mxu0 %v3939_v0  ;;  %3402 = vmatprep.subr.bf16.mxu1 %v3939_v0 }
  0x93   :  { %3263 = vmatpush3.bf16.msra.mxu0 %v3917_v2  ;;  %3403 = vmatpush3.bf16.msra.mxu1 %v3917_v2 }
  0x94   :  { %3264 = vmatprep.subr.bf16.mxu0 %v3939_v0  ;;  %3404 = vmatprep.subr.bf16.mxu1 %v3939_v0 }
  0x97   :  { %3265 = vmatpush3.bf16.msra.mxu0 %v3918_v4  ;;  %3405 = vmatpush3.bf16.msra.mxu1 %v3918_v4 }
  0x98   :  { %3266 = vmatprep.subr.bf16.mxu0 %v3939_v0  ;;  %3406 = vmatprep.subr.bf16.mxu1 %v3939_v0 }
  0x9b   :  { %3267 = vmatpush3.bf16.msra.mxu0 %v3919_v5  ;;  %3407 = vmatpush3.bf16.msra.mxu1 %v3919_v5 }
  0x9c   :  { %3268 = vmatprep.subr.bf16.mxu0 %v3939_v0  ;;  %3408 = vmatprep.subr.bf16.mxu1 %v3939_v0 }
  0x9f   :  { %3269 = vmatpush3.bf16.msra.mxu0 %v3920_v6  ;;  %3409 = vmatpush3.bf16.msra.mxu1 %v3920_v6 }
  0xa0   :  { %3274 = vmatprep.subr.bf16.mxu0 %v3939_v0  ;;  %3414 = vmatprep.subr.bf16.mxu1 %v3939_v0 }
  0xa2   :  { %3271 = vmatmul.mubr.bf16.vlgmr.msra.gmra.mrb[0].mxu0 %v4138_v57  ;;  %3411 = vmatmul.mubr.bf16.vlgmr.msra.gmra.mrb[0].mxu1 %v4156_v3  ;;  %v3923_v57 = vld [vmem:[%s4739_s2 + $0x150] sm:$0xff]   ;;  %v3924_v3 = vld [vmem:[%s4739_s2 + $0x158] sm:$0xff]  }
  0xa3   :  { %3275 = vmatpush3.bf16.msra.mxu0 %v3921_v7  ;;  %3415 = vmatpush3.bf16.msra.mxu1 %v3921_v7 }
  0xa4   :  { %3276 = vmatprep.subr.bf16.mxu0 %v3939_v0  ;;  %3416 = vmatprep.subr.bf16.mxu1 %v3939_v0 }
  0xa5   :  { %3290 = vmatprep.mubr.msk.bf16.mxu0 %vm3940_vm0, %v3939_v0  ;;  %3430 = vmatprep.mubr.msk.bf16.mxu1 %vm3940_vm0, %v3939_v0 }
  0xa7   :  { %3277 = vmatpush3.bf16.msra.mxu0 %v3922_v9  ;;  %3417 = vmatpush3.bf16.msra.mxu1 %v3922_v9 }
  0xa8   :  { %3278 = vmatprep.subr.bf16.mxu0 %v3939_v0  ;;  %3418 = vmatprep.subr.bf16.mxu1 %v3939_v0 }
  0xab   :  { %3279 = vmatpush3.bf16.msra.mxu0 %v3923_v57  ;;  %3419 = vmatpush3.bf16.msra.mxu1 %v3923_v57 }
  0xac   :  { %3280 = vmatprep.subr.bf16.mxu0 %v3939_v0  ;;  %3420 = vmatprep.subr.bf16.mxu1 %v3939_v0 }
  0xaf   :  { %3281 = vmatpush3.bf16.msra.mxu0 %v3924_v3  ;;  %3421 = vmatpush3.bf16.msra.mxu1 %v3924_v3 }
  0xb0   :  { %3282 = vmatprep.subr.bf16.mxu0 %v3939_v0  ;;  %3422 = vmatprep.subr.bf16.mxu1 %v3939_v0 }
  0xb3   :  { %3283 = vmatpush3.bf16.msra.mxu0 %v3925_v10  ;;  %3423 = vmatpush3.bf16.msra.mxu1 %v3925_v10 }
  0xb4   :  { %3284 = vmatprep.subr.bf16.mxu0 %v3939_v0  ;;  %3424 = vmatprep.subr.bf16.mxu1 %v3939_v0 }
  0xb7   :  { %3285 = vmatpush3.bf16.msra.mxu0 %v3926_v12  ;;  %3425 = vmatpush3.bf16.msra.mxu1 %v3926_v12 }
  0xb8   :  { %3286 = vmatprep.subr.bf16.mxu0 %v3939_v0  ;;  %3426 = vmatprep.subr.bf16.mxu1 %v3939_v0 }
  0xbb   :  { %3287 = vmatpush3.bf16.msra.mxu0 %v3927_v14  ;;  %3427 = vmatpush3.bf16.msra.mxu1 %v3927_v14 }
  0xbc   :  { %3288 = vmatprep.subr.bf16.mxu0 %v3939_v0  ;;  %3428 = vmatprep.subr.bf16.mxu1 %v3939_v0 }
  0xbf   :  { %3289 = vmatpush3.bf16.msra.mxu0 %v3928_v15  ;;  %3429 = vmatpush3.bf16.msra.mxu1 %v3928_v15 }
  0xc0   :  { %3294 = vmatprep.subr.bf16.mxu0 %v3939_v0  ;;  %3434 = vmatprep.subr.bf16.mxu1 %v3939_v0 }
  0xc2   :  { %3291 = vmatmul.mubr.bf16.vlgmr.msra.gmra.mrb[0].mxu0 %v4191_v16  ;;  %3431 = vmatmul.mubr.bf16.vlgmr.msra.gmra.mrb[0].mxu1 %v4194_v24  ;;  %v1181_v16 = vsel %vm1178_vm6, %v1179_v20, %v1180_v23  ;;  %v3681_v24 = vpack.c.bf16 %v1227_v47, %v1226_v43  ;;  %v1437_v43 = vld [vmem:[%s4743_s6] sm:$0xf] }
  0xc3   :  { %3295 = vmatpush3.bf16.msra.mxu0 %v3929_v17  ;;  %3435 = vmatpush3.bf16.msra.mxu1 %v3929_v17  ;;  %v1589_v47 = vld [vmem:[%s4744_s7] sm:$0xff] }
  0xc4   :  { %3296 = vmatprep.subr.bf16.mxu0 %v3939_v0  ;;  %3436 = vmatprep.subr.bf16.mxu1 %v3939_v0 }
  0xc5   :  { %3310 = vmatprep.mubr.msk.bf16.mxu0 %vm3940_vm0, %v3939_v0  ;;  %3450 = vmatprep.mubr.msk.bf16.mxu1 %vm3940_vm0, %v3939_v0 }
  0xc7   :  { %3297 = vmatpush3.bf16.msra.mxu0 %v3930_v19  ;;  %3437 = vmatpush3.bf16.msra.mxu1 %v3930_v19 }
  0xc8   :  { %3298 = vmatprep.subr.bf16.mxu0 %v3939_v0  ;;  %3438 = vmatprep.subr.bf16.mxu1 %v3939_v0 }
  0xcb   :  { %3299 = vmatpush3.bf16.msra.mxu0 %v3931_v21  ;;  %3439 = vmatpush3.bf16.msra.mxu1 %v3931_v21 }
  0xcc   :  { %3300 = vmatprep.subr.bf16.mxu0 %v3939_v0  ;;  %3440 = vmatprep.subr.bf16.mxu1 %v3939_v0 }
  0xcf   :  { %3301 = vmatpush3.bf16.msra.mxu0 %v3932_v22  ;;  %3441 = vmatpush3.bf16.msra.mxu1 %v3932_v22 }
  0xd0   :  { %3302 = vmatprep.subr.bf16.mxu0 %v3939_v0  ;;  %3442 = vmatprep.subr.bf16.mxu1 %v3939_v0 }
  0xd3   :  { %3303 = vmatpush3.bf16.msra.mxu0 %v3933_v25  ;;  %3443 = vmatpush3.bf16.msra.mxu1 %v3933_v25 }
  0xd4   :  { %3304 = vmatprep.subr.bf16.mxu0 %v3939_v0  ;;  %3444 = vmatprep.subr.bf16.mxu1 %v3939_v0 }
  0xd7   :  { %3305 = vmatpush3.bf16.msra.mxu0 %v3934_v26  ;;  %3445 = vmatpush3.bf16.msra.mxu1 %v3934_v26 }
  0xd8   :  { %3306 = vmatprep.subr.bf16.mxu0 %v3939_v0  ;;  %3446 = vmatprep.subr.bf16.mxu1 %v3939_v0 }
  0xdb   :  { %3307 = vmatpush3.bf16.msra.mxu0 %v3935_v11  ;;  %3447 = vmatpush3.bf16.msra.mxu1 %v3935_v11 }
  0xdc   :  { %3308 = vmatprep.subr.bf16.mxu0 %v3939_v0  ;;  %3448 = vmatprep.subr.bf16.mxu1 %v3939_v0 }
  0xdf   :  { %3309 = vmatpush3.bf16.msra.mxu0 %v3936_v18  ;;  %3449 = vmatpush3.bf16.msra.mxu1 %v3936_v18 }
  0xe0   :  { %3680 = vmatprep.subr.bf16.mxu0 %v3941_v27  ;;  %3692 = vmatprep.subr.bf16.mxu1 %v3941_v27 }
  0xe2   :  { %3311 = vmatmul.mubr.bf16.vlgmr.msra.gmra.mrb[0].mxu0 %v4249_v54  ;;  %3451 = vmatmul.mubr.bf16.vlgmr.msra.gmra.mrb[0].mxu1 %v1181_v16 }
  0xe3   :  { %3470 = vmatprep.mubr.msk.f32.mxu0 %vm3940_vm0, %v3939_v0  ;;  %3489 = vmatprep.mubr.msk.f32.mxu1 %vm3940_vm0, %v3939_v0 }
  0xe4   :  { %3682 = vmatpush3.bf16.msra.mxu0 %v3681_v24  ;;  %3694 = vmatpush3.bf16.msra.mxu1 %v3681_v24  ;;  %v1590_v24 = vld [vmem:[%s4744_s7 + $0x8] sm:$0xff] }
  0xe5   :  { %3683 = vmatprep.subr.bf16.mxu0 %v3941_v27  ;;  %3695 = vmatprep.subr.bf16.mxu1 %v3941_v27  ;;  %v4515_v13 = vpack.c.bf16 %v1590_v24, %v1589_v47  ;;  %v2910_v47 = vld [vmem:[%s4744_s7 + $0x90] sm:$0xff] }
  0xe8   :  { %3685 = vmatpush3.bf16.msra.mxu0 %v3684_v28  ;;  %3697 = vmatpush3.bf16.msra.mxu1 %v3684_v28  ;;  %v2901_v28 = vld [vmem:[%s4744_s7 + $0x48] sm:$0xff] }
  0xe9   :  { %3686 = vmatprep.subr.bf16.mxu0 %v3941_v27  ;;  %3698 = vmatprep.subr.bf16.mxu1 %v3941_v27  ;;  %v4520_v30 = vpack.c.bf16 %v2901_v28, %v2900_v8  ;;  %v2913_v28 = vld [vmem:[%s4744_s7 + $0xa8] sm:$0xff] }
  0xec   :  { %3688 = vmatpush3.bf16.msra.mxu0 %v3687_v33  ;;  %3700 = vmatpush3.bf16.msra.mxu1 %v3687_v33 }
  0xed   :  { %3689 = vmatprep.subr.bf16.mxu0 %v3941_v27  ;;  %3701 = vmatprep.subr.bf16.mxu1 %v3941_v27 }
  0xf0   :  { %3691 = vmatpush3.bf16.msra.mxu0 %v3690_v36  ;;  %3703 = vmatpush3.bf16.msra.mxu1 %v3690_v36 }
  0xf1   :  { %3492 = vmatprep.subr.mxu0 %v3939_v0  ;;  %3497 = vmatprep.subr.mxu1 %v3939_v0 }
 0x1b5   :  { %v4469_v37 = vpop.f32.mrb[0].mxu0  ;;  %v4471_v38 = vpop.f32.mrb[0].mxu1 }
 0x1b6   :  { %v1245_v39 = vmul.f32 %v4469_v37, %v4469_v37  ;;  %v3312_v40 = vpop.f32.mrb[1].mxu0  ;;  %v3452_v41 = vpop.f32.mrb[1].mxu1  ;;  %v1267_v42 = vmul.f32 %v4471_v38, %v4471_v38  ;;  %v1235_v46 = vsel %vm1234_vm7, %v4469_v37, 0.0  ;;  %v1257_v53 = vsel %vm1234_vm7, %v4471_v38, 0.0 }
 0x1b7   :  { %v4477_v44 = vpop.f32.mrb[2].mxu0  ;;  %v4479_v45 = vpop.f32.mrb[2].mxu1 }
 0x1b8   :  { %v1236_v48 = vsel %vm1234_vm7, %v4477_v44, 0.0  ;;  %v1246_v49 = vmul.f32 %v4477_v44, %v4477_v44  ;;  %v3313_v51 = vpop.f32.mrb[3].mxu0  ;;  %v3453_v52 = vpop.f32.mrb[3].mxu1  ;;  %v1258_v54 = vsel %vm1234_vm7, %v4479_v45, 0.0  ;;  %v1268_v55 = vmul.f32 %v4479_v45, %v4479_v45 }
 0x1b9   :  { %v1237_v50 = vadd.f32 %v1236_v48, %v1235_v46  ;;  %v1247_v56 = vsel %vm1234_vm7, %v1245_v39, 0.0  ;;  %v1259_v59 = vadd.f32 %v1258_v54, %v1257_v53  ;;  %v1269_v60 = vsel %vm1234_vm7, %v1267_v42, 0.0  ;;  %v1430_v46 = vld [vmem:[%s4745_s3] sm:$0x1]  ;;  %v1591_v48 = vld [vmem:[%s4744_s7 + $0x10] sm:$0xff] }
 0x1ba   :  { %v1248_v58 = vsel %vm1234_vm7, %v1246_v49, 0.0  ;;  %v1270_v63 = vsel %vm1234_vm7, %v1268_v55, 0.0  ;;  %v1592_v49 = vld [vmem:[%s4744_s7 + $0x18] sm:$0xff] }
 0x1bb   :  { %v1238_v61 = vrot.slane %v1237_v50, 4  ;;  %v1249_v62 = vadd.f32 %v1248_v58, %v1247_v56  ;;  %v1260_v1 = vrot.slane %v1259_v59, 4  ;;  %v1271_v29 = vadd.f32 %v1270_v63, %v1269_v60  ;;  %v2902_v56 = vld [vmem:[%s4744_s7 + $0x50] sm:$0xff]  ;;  %v2903_v58 = vld [vmem:[%s4744_s7 + $0x58] sm:$0xff]  ;;  %v1593_v60 = vld [vmem:[%s4744_s7 + $0x20] sm:$0xff] }
 0x1bc   :  { %v4533_v53 = vpack.c.bf16 %v1592_v49, %v1591_v48  ;;  %v2904_v63 = vld [vmem:[%s4744_s7 + $0x60] sm:$0xff] }
 0x1bd   :  { %v1239_v32 = vadd.f32 %v1238_v61, %v1237_v50  ;;  %v1250_v2 = vrot.slane %v1249_v62, 4  ;;  %v1261_v4 = vadd.f32 %v1260_v1, %v1259_v59  ;;  %v1272_v5 = vrot.slane %v1271_v29, 4  ;;  %v1434_v50 = vld [vmem:[%s4746_s4] sm:$0x1]  ;;  %v1594_v61 = vld [vmem:[%s4744_s7 + $0x28] sm:$0xff] }
 0x1be   :  { %v4548_v59 = vpack.c.bf16 %v2903_v58, %v2902_v56  ;;  %v2905_v1 = vld [vmem:[%s4744_s7 + $0x68] sm:$0xff]  ;;  %v2917_v58 = vld [vmem:[%s4747_s8 + $0x10] sm:$0xff] }
 0x1bf   :  { %v1240_v6 = vrot.slane %v1239_v32, 2  ;;  %v1251_v7 = vadd.f32 %v1250_v2, %v1249_v62  ;;  %v1262_v9 = vrot.slane %v1261_v4, 2  ;;  %v1273_v57 = vadd.f32 %v1272_v5, %v1271_v29  ;;  %v1596_v2 = vld [vmem:[%s4744_s7 + $0x38] sm:$0xff]  ;;  %v2906_v5 = vld [vmem:[%s4744_s7 + $0x70] sm:$0xff]  ;;  %v2916_v56 = vld [vmem:[%s4747_s8 + $0x8] sm:$0xff] }
 0x1c0   :  { %v4558_v62 = vpack.c.bf16 %v1594_v61, %v1593_v60  ;;  %v4566_v29 = vpack.c.bf16 %v2905_v1, %v2904_v63 }
 0x1c1   :  { %v1241_v3 = vadd.f32 %v1240_v6, %v1239_v32  ;;  %v1252_v10 = vrot.slane %v1251_v7, 2  ;;  %v1263_v12 = vadd.f32 %v1262_v9, %v1261_v4  ;;  %v1274_v14 = vrot.slane %v1273_v57, 2  ;;  %v1595_v32 = vld [vmem:[%s4744_s7 + $0x30] sm:$0xff]  ;;  %v2907_v6 = vld [vmem:[%s4744_s7 + $0x78] sm:$0xff]  ;;  %v2908_v9 = vld [vmem:[%s4744_s7 + $0x80] sm:$0xff] }
 0x1c2   :  { %v4578_v4 = vpack.c.bf16 %v1596_v2, %v1595_v32 }
 0x1c3   :  { %v1242_v15 = vrot.slane %v1241_v3, 1  ;;  %v1253_v17 = vadd.f32 %v1252_v10, %v1251_v7  ;;  %v1264_v19 = vrot.slane %v1263_v12, 1  ;;  %v1275_v21 = vadd.f32 %v1274_v14, %v1273_v57  ;;  %v2909_v57 = vld [vmem:[%s4744_s7 + $0x88] sm:$0xff] }
 0x1c4   :  { %v3732_v7 = vpack.c.bf16 %v2907_v6, %v2906_v5  ;;  %v1620_v10 = vlaneseq }
 0x1c5   :  { %v1243_v22 = vadd.f32 %v1242_v15, %v1241_v3  ;;  %v1254_v25 = vrot.slane %v1253_v17, 1  ;;  %v1265_v26 = vadd.f32 %v1264_v19, %v1263_v12  ;;  %v1276_v11 = vrot.slane %v1275_v21, 1 }
 0x1c6   :  { %v4594_v3 = vpack.c.bf16 %v2909_v57, %v2908_v9  ;;  %v1621_v12 = vshrl.u32 %v1620_v10, 7 }
 0x1c7   :  { %v1255_v18 = vadd.f32 %v1254_v25, %v1253_v17  ;;  %v1277_v20 = vadd.f32 %v1276_v11, %v1275_v21  ;;  %v1266_v23 = vadd.f32 %v1265_v26, %v1243_v22 }
 0x1c8   :  { %v1622_v14 = vsub.s32 0, %v1621_v12  ;;  %v2581_v12 = vld [vmem:[%s4749_s9] sm:$0xff] }
 0x1c9   :  { %3471 = vmatmul.mubr.msk.f32.vlgmr.msra.gmra.mrb[4].mxu0 %vm1234_vm7, %v1266_v23  ;;  %v1278_v16 = vadd.f32 %v1277_v20, %v1255_v18 }
 0x1ca   :  { %3494 = vmatprep.mubr.msk.f32.mxu0 %vm3940_vm0, %v3939_v0  ;;  %3493 = vmatpush3.msk.msra.mxu0 %vm1442_vm8, %v1437_v43 }
 0x1cb   :  { %3490 = vmatmul.mubr.msk.f32.vlgmr.msra.gmra.mrb[4].mxu1 %vm1234_vm7, %v1278_v16  ;;  %3705 = vmatprep.subr.bf16.mxu0 %v4515_v13 }
 0x1cc   :  { %3499 = vmatprep.mubr.msk.f32.mxu1 %vm3940_vm0, %v3939_v0  ;;  %3498 = vmatpush3.msk.msra.mxu1 %vm1442_vm8, %v1437_v43 }
 0x1cd   :  { %3721 = vmatprep.subr.bf16.mxu1 %v4520_v30 }
 0x29c   :  { %v1348_v31 = vpop.f32.mrb[4].mxu0 }
 0x29d   :  { %v1353_v33 = vmul.f32 0.001953125, %v1348_v31  ;;  %v3472_v34 = vpop.f32.mrb[5].mxu0 }
 0x29e   :  { %v1423_v35 = vpop.f32.mrb[4].mxu1  ;;  %v2915_v34 = vld [vmem:[%s4744_s7 + $0xb8] sm:$0xff] }
 0x29f   :  { %v1428_v36 = vmul.f32 %v1353_v33, %v1353_v33  ;;  %v1427_v39 = vmul.f32 0.001953125, %v1423_v35  ;;  %v3491_v40 = vpop.f32.mrb[5].mxu1 }
 0x2a1   :  { %v1429_v41 = vsub.f32 %v1427_v39, %v1428_v36 }
 0x2a3   :  { %v1431_v42 = vadd.f32 1e-05, %v1429_v41 }
 0x2a5   :  { %3937 = vrsqrt.f32 %v1431_v42 }
 0x2af   :  { %v3938_v51 = vpop.eup %3937 }
 0x2b0   :  { %v1433_v52 = vmul.f32 %v3938_v51, %v1430_v46 }
 0x2b2   :  { %3495 = vmatmul.mubr.msk.f32.vlgmr.msra.gmra.mrb[6].mxu0 %vm1438_vm9, %v1433_v52  ;;  %v1435_v54 = vmul.f32 %v1433_v52, %v1353_v33  ;;  %v2914_v33 = vld [vmem:[%s4744_s7 + $0xb0] sm:$0xff] }
 0x2b3   :  { %3707 = vmatpush3.bf16.msra.mxu0 %v4515_v13  ;;  %v4635_v35 = vpack.c.bf16 %v2915_v34, %v2914_v33 }
 0x2b4   :  { %v1436_v55 = vsub.f32 %v1434_v50, %v1435_v54  ;;  %3709 = vmatprep.subr.bf16.mxu0 %v4533_v53 }
 0x2b6   :  { %3500 = vmatmul.mubr.msk.f32.vlgmr.msra.gmra.mrb[6].mxu1 %vm1438_vm9, %v1436_v55  ;;  %v1615_v55 = vld [vmem:[%s4747_s8] sm:$0xff] }
 0x2b7   :  { %3723 = vmatpush3.bf16.msra.mxu1 %v4520_v30  ;;  %3711 = vmatpush3.bf16.msra.mxu0 %v4533_v53 }
 0x2b8   :  { %3725 = vmatprep.subr.bf16.mxu1 %v4548_v59  ;;  %3713 = vmatprep.subr.bf16.mxu0 %v4558_v62 }
 0x2bb   :  { %3727 = vmatpush3.bf16.msra.mxu1 %v4548_v59  ;;  %3715 = vmatpush3.bf16.msra.mxu0 %v4558_v62 }
 0x2bc   :  { %3729 = vmatprep.subr.bf16.mxu1 %v4566_v29  ;;  %3717 = vmatprep.subr.bf16.mxu0 %v4578_v4 }
 0x2bf   :  { %3731 = vmatpush3.bf16.msra.mxu1 %v4566_v29  ;;  %3719 = vmatpush3.bf16.msra.mxu0 %v4578_v4 }
 0x2c0   :  { %3733 = vmatprep.subr.bf16.mxu1 %v3732_v7  ;;  %3737 = vmatprep.subr.bf16.mxu0 %v4594_v3 }
 0x2c3   :  { %3735 = vmatpush3.bf16.msra.mxu1 %v3732_v7 }
 0x2c4   :  { %3752 = vmatprep.subr.bf16.mxu1 %v3941_v27 }
 0x385   :  { %v1512_v15 = vpop.f32.mrb[6].mxu0 }
 0x386   :  { %v1623_v17 = vrot.slane %v1512_v15, %v1622_v14  ;;  %v3496_v19 = vpop.f32.mrb[7].mxu0 }
 0x388   :  { %v1624_v21 = vmul.f32 %v1623_v17, %v4469_v37  ;;  %v1625_v22 = vmul.f32 %v1623_v17, %v4477_v44  ;;  %v2110_v25 = vmul.f32 %v1623_v17, %v4471_v38  ;;  %v2111_v26 = vmul.f32 %v1623_v17, %v4479_v45  ;;  %v2911_v37 = vld [vmem:[%s4744_s7 + $0x98] sm:$0xff]  ;;  %v2912_v45 = vld [vmem:[%s4744_s7 + $0xa0] sm:$0xff]  ;;  %v2583_v17 = vld [vmem:[%s4749_s9 + $0x10] sm:$0xff] }
 0x389   :  { %v1585_v11 = vpop.f32.mrb[6].mxu1  ;;  %v4608_v38 = vpack.c.bf16 %v2911_v37, %v2910_v47  ;;  %v4623_v31 = vpack.c.bf16 %v2913_v28, %v2912_v45 }
 0x38a   :  { %v1629_v18 = vrot.slane %v1585_v11, %v1622_v14  ;;  %v3501_v20 = vpop.f32.mrb[7].mxu1  ;;  %v2582_v14 = vld [vmem:[%s4749_s9 + $0x8] sm:$0xff] }
 0x38b   :  { %v3819_v15 = vpack.c.bf16 %v2582_v14, %v2581_v12 }
 0x38c   :  { %v1631_v23 = vadd.f32 %v1629_v18, %v1625_v22  ;;  %v2113_v16 = vadd.f32 %v2111_v26, %v1629_v18  ;;  %v1630_v43 = vadd.f32 %v1629_v18, %v1624_v21  ;;  %v2112_v24 = vadd.f32 %v2110_v25, %v1629_v18 }
 0x38e   :  { %v1633_v44 = vmax.f32 %v1631_v23, 0.0  ;;  %v1632_v8 = vmax.f32 %v1630_v43, 0.0  ;;  %v2114_v36 = vmax.f32 %v2112_v24, 0.0  ;;  %v2115_v39 = vmax.f32 %v2113_v16, 0.0 }
 0x390   :  { %3518 = vmatprep.mubr.msk.f32.mxu0 %vm1234_vm7, %v1632_v8  ;;  %3537 = vmatprep.mubr.msk.f32.mxu1 %vm1234_vm7, %v1632_v8 }
 0x391   :  { %3519 = vmatmul.mubr.msk.f32.vlgmr.msra.gmra.mrb[8].mxu0 %vm1234_vm7, %v1633_v44  ;;  %3538 = vmatmul.mubr.msk.f32.vlgmr.msra.gmra.mrb[8].mxu1 %vm1234_vm7, %v1633_v44 }
 0x392   :  { %3739 = vmatpush3.bf16.msra.mxu0 %v4594_v3  ;;  %3556 = vmatprep.mubr.msk.f32.mxu0 %vm1234_vm7, %v1632_v8 }
 0x393   :  { %3741 = vmatprep.subr.bf16.mxu0 %v4608_v38  ;;  %3563 = vmatprep.mubr.msk.f32.mxu1 %vm3940_vm0, %v3939_v0 }
 0x396   :  { %3743 = vmatpush3.bf16.msra.mxu0 %v4608_v38 }
 0x397   :  { %3745 = vmatprep.subr.bf16.mxu0 %v4623_v31 }
 0x39a   :  { %3747 = vmatpush3.bf16.msra.mxu0 %v4623_v31 }
 0x39b   :  { %3749 = vmatprep.subr.bf16.mxu0 %v4635_v35 }
 0x39e   :  { %3751 = vmatpush3.bf16.msra.mxu0 %v4635_v35 }
 0x39f   :  { %3778 = vmatprep.subr.bf16.mxu0 %v4520_v30 }
 0x3a1   :  { %3557 = vmatmul.mubr.msk.f32.vlgmr.msra.gmra.mrb[10].mxu0 %vm1234_vm7, %v1633_v44 }
 0x3a2   :  { %3780 = vmatpush3.bf16.msra.mxu0 %v4520_v30  ;;  %3615 = vmatprep.mubr.msk.f32.mxu0 %vm1234_vm7, %v2114_v36 }
 0x3a3   :  { %3782 = vmatprep.subr.bf16.mxu0 %v4548_v59 }
 0x3a6   :  { %3784 = vmatpush3.bf16.msra.mxu0 %v4548_v59 }
 0x3a7   :  { %3786 = vmatprep.subr.bf16.mxu0 %v4566_v29 }
 0x3aa   :  { %3788 = vmatpush3.bf16.msra.mxu0 %v4566_v29 }
 0x3ab   :  { %3790 = vmatprep.subr.bf16.mxu0 %v3732_v7 }
 0x3ae   :  { %3792 = vmatpush3.bf16.msra.mxu0 %v3732_v7 }
 0x3af   :  { %3809 = vmatprep.subr.bf16.mxu0 %v3941_v27 }
 0x3b1   :  { %3616 = vmatmul.mubr.msk.f32.vlgmr.msra.gmra.mrb[12].mxu0 %vm1234_vm7, %v2115_v39 }
 0x3b2   :  { %3641 = vmatprep.mubr.msk.f32.mxu0 %vm3940_vm0, %v3939_v0 }
 0x464   :  { %v3520_v30 = vpop.f32.mrb[8].mxu0  ;;  %v3539_v40 = vpop.f32.mrb[8].mxu1 }
 0x465   :  { %v1791_v41 = vmax.f32 %v3520_v30, %v3539_v40  ;;  %v1706_v42 = vpop.f32.mrb[9].mxu0  ;;  %v1781_v46 = vpop.f32.mrb[9].mxu1 }
 0x466   :  { %v1790_v48 = vmax.f32 %v1706_v42, %v1781_v46 }
 0x474   :  { %v3558_v49 = vpop.f32.mrb[10].mxu0 }
 0x475   :  { %v1868_v51 = vmax.f32 %v1791_v41, %v3558_v49  ;;  %v1858_v52 = vpop.f32.mrb[11].mxu0 }
 0x476   :  { %v1867_v50 = vmax.f32 %v1790_v48, %v1858_v52 }
 0x478   :  { %v3753_v54 = vpack.c.bf16 %v1868_v51, %v1867_v50 }
 0x47a   :  { %3754 = vmatpush3.bf16.msra.mxu1 %v3753_v54 }
 0x47b   :  { %3755 = vmatprep.subr.bf16.mxu1 %v3941_v27 }
 0x47d   :  { %3564 = vmatmul.mubr.msk.f32.vlgmr.msra.gmra.mrb[10].mxu1 %vm1869_vm10, %v1615_v55 }
 0x47e   :  { %3757 = vmatpush3.bf16.msra.mxu1 %v3753_v54  ;;  %3570 = vmatprep.mubr.msk.f32.mxu1 %vm3940_vm0, %v3939_v0 }
 0x47f   :  { %3758 = vmatprep.subr.bf16.mxu1 %v3941_v27 }
 0x481   :  { %3571 = vmatmul.mubr.msk.f32.vlgmr.msra.gmra.mrb[12].mxu1 %vm1869_vm10, %v2916_v56 }
 0x482   :  { %3760 = vmatpush3.bf16.msra.mxu1 %v3753_v54  ;;  %3577 = vmatprep.mubr.msk.f32.mxu1 %vm3940_vm0, %v3939_v0 }
 0x483   :  { %3762 = vmatprep.subr.bf16.mxu1 %v4515_v13 }
 0x484   :  { %v3617_v59 = vpop.f32.mrb[12].mxu0 }
 0x485   :  { %3578 = vmatmul.mubr.msk.f32.vlgmr.msra.gmra.mrb[14].mxu1 %vm1869_vm10, %v2917_v58  ;;  %v2263_v60 = vpop.f32.mrb[13].mxu0 }
 0x486   :  { %3764 = vmatpush3.bf16.msra.mxu1 %v4515_v13  ;;  %3596 = vmatprep.mubr.msk.f32.mxu1 %vm1234_vm7, %v2114_v36 }
 0x487   :  { %3766 = vmatprep.subr.bf16.mxu1 %v4533_v53 }
 0x48a   :  { %3768 = vmatpush3.bf16.msra.mxu1 %v4533_v53 }
 0x48b   :  { %3770 = vmatprep.subr.bf16.mxu1 %v4558_v62 }
 0x48e   :  { %3772 = vmatpush3.bf16.msra.mxu1 %v4558_v62 }
 0x48f   :  { %3774 = vmatprep.subr.bf16.mxu1 %v4578_v4 }
 0x492   :  { %3776 = vmatpush3.bf16.msra.mxu1 %v4578_v4 }
 0x493   :  { %3794 = vmatprep.subr.bf16.mxu1 %v4594_v3 }
 0x495   :  { %3597 = vmatmul.mubr.msk.f32.vlgmr.msra.gmra.mrb[16].mxu1 %vm1234_vm7, %v2115_v39 }
 0x496   :  { %3796 = vmatpush3.bf16.msra.mxu1 %v4594_v3  ;;  %3634 = vmatprep.mubr.msk.f32.mxu1 %vm1234_vm7, %v2114_v36 }
 0x497   :  { %3798 = vmatprep.subr.bf16.mxu1 %v4608_v38 }
 0x49a   :  { %3800 = vmatpush3.bf16.msra.mxu1 %v4608_v38 }
 0x49b   :  { %3802 = vmatprep.subr.bf16.mxu1 %v4623_v31 }
 0x49e   :  { %3804 = vmatpush3.bf16.msra.mxu1 %v4623_v31 }
 0x49f   :  { %3806 = vmatprep.subr.bf16.mxu1 %v4635_v35 }
 0x4a2   :  { %3808 = vmatpush3.bf16.msra.mxu1 %v4635_v35 }
 0x4a3   :  { %3824 = vmatprep.subr.bf16.mxu1 %v3941_v27 }
 0x4a5   :  { %3635 = vmatmul.mubr.msk.f32.vlgmr.msra.gmra.mrb[18].mxu1 %vm1234_vm7, %v2115_v39 }
 0x4a6   :  { %3677 = vmatprep.mubr.msk.f32.mxu1 %vm3940_vm0, %v3939_v0  ;;  %3826 = vmatpush3.bf16.msra.mxu1 %v3819_v15 }
 0x4a7   :  { %3827 = vmatprep.subr.bf16.mxu1 %v3941_v27 }
 0x550   :  { %v1939_v13 = vpop.f32.mrb[10].mxu1 }
 0x551   :  { %v3565_v53 = vpop.f32.mrb[11].mxu1 }
 0x554   :  { %v2012_v61 = vpop.f32.mrb[12].mxu1 }
 0x555   :  { %v2016_v62 = vmax.f32 %v1939_v13, %v2012_v61  ;;  %v3572_v63 = vpop.f32.mrb[13].mxu1 }
 0x558   :  { %v2086_v1 = vpop.f32.mrb[14].mxu1 }
 0x559   :  { %v2090_v29 = vmax.f32 %v2016_v62, %v2086_v1  ;;  %v3579_v32 = vpop.f32.mrb[15].mxu1 }
 0x55b   :  { %2092 = vst.msk [vmem:[%s4748_s10] sm:$0xff] %vm2091_vm11, %v2090_v29  ;;  %v2101_v21 = vmul.f32 %v2090_v29, %v2090_v29  ;;  %v2093_v22 = vsel %vm2091_vm11, %v2090_v29, 0.0 }
 0x55c   :  { %v2094_v18 = vrot.slane %v2093_v22, 4 }
 0x55d   :  { %v2102_v26 = vsel %vm2091_vm11, %v2101_v21, 0.0 }
 0x55e   :  { %v2103_v20 = vrot.slane %v2102_v26, 4  ;;  %v2095_v47 = vadd.f32 %v2094_v18, %v2093_v22 }
 0x560   :  { %v2104_v37 = vadd.f32 %v2103_v20, %v2102_v26  ;;  %v2096_v8 = vrot.slane %v2095_v47, 2 }
 0x562   :  { %v2105_v28 = vrot.slane %v2104_v37, 2  ;;  %v2097_v34 = vadd.f32 %v2096_v8, %v2095_v47 }
 0x564   :  { %v2106_v39 = vadd.f32 %v2105_v28, %v2104_v37  ;;  %v2098_v41 = vrot.slane %v2097_v34, 1 }
 0x566   :  { %v2107_v48 = vrot.slane %v2106_v39, 1  ;;  %v2099_v52 = vadd.f32 %v2098_v41, %v2097_v34 }
 0x568   :  { %v3598_v2 = vpop.f32.mrb[16].mxu1 }
 0x569   :  { %v2273_v4 = vmax.f32 %v3598_v2, %v3617_v59  ;;  %v2188_v5 = vpop.f32.mrb[17].mxu1 }
 0x56a   :  { %v2272_v6 = vmax.f32 %v2188_v5, %v2263_v60 }
 0x578   :  { %v3636_v7 = vpop.f32.mrb[18].mxu1 }
 0x579   :  { %v2350_v9 = vmax.f32 %v2273_v4, %v3636_v7  ;;  %v2340_v57 = vpop.f32.mrb[19].mxu1 }
 0x57a   :  { %v2349_v3 = vmax.f32 %v2272_v6, %v2340_v57 }
 0x57c   :  { %v3810_v10 = vpack.c.bf16 %v2350_v9, %v2349_v3 }
 0x57e   :  { %3811 = vmatpush3.bf16.msra.mxu0 %v3810_v10 }
 0x57f   :  { %3812 = vmatprep.subr.bf16.mxu0 %v3941_v27 }
 0x581   :  { %3642 = vmatmul.mubr.msk.f32.vlgmr.msra.gmra.mrb[14].mxu0 %vm1869_vm10, %v1615_v55  ;;  %v2108_v55 = vadd.f32 %v2107_v48, %v2106_v39 }
 0x582   :  { %3814 = vmatpush3.bf16.msra.mxu0 %v3810_v10  ;;  %3648 = vmatprep.mubr.msk.f32.mxu0 %vm3940_vm0, %v3939_v0 }
 0x583   :  { %3815 = vmatprep.subr.bf16.mxu0 %v3941_v27 }
 0x585   :  { %3649 = vmatmul.mubr.msk.f32.vlgmr.msra.gmra.mrb[16].mxu0 %vm1869_vm10, %v2916_v56 }
 0x586   :  { %3817 = vmatpush3.bf16.msra.mxu0 %v3810_v10  ;;  %3655 = vmatprep.mubr.msk.f32.mxu0 %vm3940_vm0, %v3939_v0 }
 0x587   :  { %3818 = vmatprep.subr.bf16.mxu0 %v3941_v27 }
 0x589   :  { %3656 = vmatmul.mubr.msk.f32.vlgmr.msra.gmra.mrb[18].mxu0 %vm1869_vm10, %v2917_v58 }
 0x58a   :  { %3666 = vmatprep.mubr.msk.f32.mxu0 %vm3940_vm0, %v3939_v0  ;;  %3820 = vmatpush3.bf16.msra.mxu0 %v3819_v15  ;;  %v2584_v0 = vld [vmem:[%s4749_s9 + $0x18] sm:$0xff] }
 0x58b   :  { %3821 = vmatprep.subr.bf16.mxu0 %v3941_v27  ;;  %v3822_v19 = vpack.c.bf16 %v2584_v0, %v2583_v17 }
 0x58d   :  { %3829 = vmatpush3.bf16.msra.mxu1 %v3822_v19 }
 0x58e   :  { %3823 = vmatpush3.bf16.msra.mxu0 %v3822_v19 }
 0x654   :  { %v2417_v25 = vpop.f32.mrb[14].mxu0 }
 0x655   :  { %v3643_v11 = vpop.f32.mrb[15].mxu0 }
 0x658   :  { %v2487_v23 = vpop.f32.mrb[16].mxu0 }
 0x659   :  { %v2491_v16 = vmax.f32 %v2417_v25, %v2487_v23  ;;  %v3650_v43 = vpop.f32.mrb[17].mxu0 }
 0x65c   :  { %v2558_v24 = vpop.f32.mrb[18].mxu0 }
 0x65d   :  { %v2562_v44 = vmax.f32 %v2491_v16, %v2558_v24  ;;  %v3657_v27 = vpop.f32.mrb[19].mxu0 }
 0x65f   :  { %2563 = vst.msk [vmem:[%s4748_s10 + $0x8] sm:$0xff] %vm2091_vm11, %v2562_v44  ;;  %v2564_v38 = vsel %vm2091_vm11, %v2562_v44, 0.0  ;;  %v2572_v45 = vmul.f32 %v2562_v44, %v2562_v44 }
 0x660   :  { %v2565_v31 = vrot.slane %v2564_v38, 4 }
 0x661   :  { %v2573_v33 = vsel %vm2091_vm11, %v2572_v45, 0.0 }
 0x662   :  { %v2566_v35 = vadd.f32 %v2565_v31, %v2564_v38  ;;  %v2574_v36 = vrot.slane %v2573_v33, 4 }
 0x664   :  { %v2567_v30 = vrot.slane %v2566_v35, 2  ;;  %v2575_v40 = vadd.f32 %v2574_v36, %v2573_v33 }
 0x666   :  { %v2568_v42 = vadd.f32 %v2567_v30, %v2566_v35  ;;  %v2576_v46 = vrot.slane %v2575_v40, 2 }
 0x668   :  { %v2569_v49 = vrot.slane %v2568_v42, 1  ;;  %v2577_v51 = vadd.f32 %v2576_v46, %v2575_v40 }
 0x66a   :  { %v2570_v50 = vadd.f32 %v2569_v49, %v2568_v42  ;;  %v2578_v54 = vrot.slane %v2577_v51, 1 }
 0x66c   :  { %v2579_v56 = vadd.f32 %v2578_v54, %v2577_v51  ;;  %v2571_v58 = vadd.f32 %v2570_v50, %v2099_v52 }
 0x66e   :  { %3667 = vmatmul.mubr.msk.f32.vlgmr.msra.gmra.mrb[20].mxu0 %vm2091_vm11, %v2571_v58  ;;  %v2580_v59 = vadd.f32 %v2579_v56, %v2108_v55 }
 0x670   :  { %3678 = vmatmul.mubr.msk.f32.vlgmr.msra.gmra.mrb[20].mxu1 %vm2091_vm11, %v2580_v59 }
 0x741   :  { %v2654_v60 = vpop.f32.mrb[20].mxu0 }
 0x742   :  { %2659 = vst.msk [vmem:[%s4750_s11] sm:$0x1] %vm2658_vm12, %v2654_v60  ;;  %v3668_v13 = vpop.f32.mrb[21].mxu0 }
 0x743   :  { %v2729_v53 = vpop.f32.mrb[20].mxu1 }
 0x744   :  { %2733 = vst.msk [vmem:[%s4750_s11 + $0x1] sm:$0x1] %vm2658_vm12, %v2729_v53  ;;  %v3679_v61 = vpop.f32.mrb[21].mxu1 }

// kernel: tile.33
= control target key start
LH: loop header
LB: loop body
LE: loop exit
PB: predicated region body
PF: predicated region fallthrough
CT: control target
= control target key end

     0   :  { %s22_s0 = inlined_call_operand.vmem [shape: f32[8], index: 0, kind: input, shape index: {}]   ;;  %s23_s1 = inlined_call_operand.vmem [shape: f32[4,8], index: 1, kind: output, shape index: {}]  }
   0x1   :  { %v4_v0 = vld [vmem:[%s22_s0] ss:$0 sm:$0xff] }
   0x2   :  { %5 = vst [vmem:[%s23_s1] sm:$0xf] %v4_v0 }

// kernel: tile.34
= control target key start
LH: loop header
LB: loop body
LE: loop exit
PB: predicated region body
PF: predicated region fallthrough
CT: control target
= control target key end

     0   :  { %vm7_vm0 = vcmask 64512   ;;  %s37_s8 = smov 8   ;;  %s38_s9 = smov 16   ;;  %vm13_vm1 = vcmask 261312   ;;  %vm19_vm2 = vcmask 195712   ;;  %vm25_vm3 = vcmask 130112   ;;  %s55_s0 = inlined_call_operand.vmem [shape: f32[4,8], index: 0, kind: input, shape index: {}]   ;;  %s56_s1 = inlined_call_operand.vmem [shape: f32[1,32], index: 1, kind: output, shape index: {}]  }
   0x1   :  { %v4_v0 = vld [vmem:[%s55_s0] sm:$0xf]  ;;  %s36_s0 = smov 24  }
   0x2   :  { %5 = vst [vmem:[#allocation1] sm:$0xf] %v4_v0 }
   0x9   :  { %v10_v1 = vld [vmem:[#allocation1 + $0x3] sm:$0x1]   ;;  %v22_v2 = vld [vmem:[#allocation1 + $0x1] sm:$0x1]   ;;  %v6_v3 = vld [vmem:[#allocation1] sm:$0x1]  }
   0xa   :  { %11 = vrot.lane.b32.xlu0 %v10_v1, %s36_s0  ;;  %23 = vrot.lane.b32.xlu1 %v22_v2, %s37_s8  ;;  %v16_v4 = vld [vmem:[#allocation1 + $0x2] sm:$0x1]   ;;  %8 = vst.msk [vmem:[#allocation0] sm:$0x1] %vm7_vm0, %v6_v3  }
   0xe   :  { %17 = vrot.lane.b32.xlu0 %v16_v4, %s38_s9 }
  0x7c   :  { %v12_v5 = vpop.permute.xlu0 %11   ;;  %v24_v6 = vpop.permute.xlu1 %23  }
  0x7d   :  { %14 = vst.msk [vmem:[#allocation0] sm:$0x1] %vm13_vm1, %v12_v5  }
  0x80   :  { %v18_v7 = vpop.permute.xlu0 %17  }
  0x81   :  { %20 = vst.msk [vmem:[#allocation0] sm:$0x1] %vm19_vm2, %v18_v7  }
  0x82   :  { %26 = vst.msk [vmem:[#allocation0] sm:$0x1] %vm25_vm3, %v24_v6  }
  0x89   :  { %v30_v8 = vld [vmem:[#allocation0] sm:$0x1] }
  0x8a   :  { %32 = vst [vmem:[%s56_s1] sm:$0x1] %v30_v8 }

// kernel: res_u_body_forward.4
= control target key start
LH: loop header
LB: loop body
LE: loop exit
PB: predicated region body
PF: predicated region fallthrough
CT: control target
= control target key end

     0   :  { %vm85_vm0 = vcmask 1043456   ;;  %v2742_v0 = vmov 0.0   ;;  %vm2743_vm1 = vmmov 0   ;;  %vm81_vm2 = vcmask 31744   ;;  %s3210_s5 = inlined_call_operand.vmem [shape: f32[4,32], index: 5, kind: input, shape index: {}]   ;;  %s3211_s2 = inlined_call_operand.vmem [shape: f32[2,4], index: 2, kind: input, shape index: {}]   ;;  %s3212_s3 = inlined_call_operand.vmem [shape: f32[1,4], index: 3, kind: input, shape index: {}]   ;;  %s3213_s4 = inlined_call_operand.vmem [shape: f32[1,4], index: 4, kind: input, shape index: {}]   ;;  %s3214_s6 = inlined_call_operand.vmem [shape: bf16[3,32,32], index: 6, kind: input, shape index: {}]   ;;  %s3215_s8 = inlined_call_operand.vmem [shape: bf16[3,32,32], index: 8, kind: input, shape index: {}]   ;;  %s3216_s0 = inlined_call_operand.vmem [shape: f32[10,32], index: 0, kind: input, shape index: {}]   ;;  %s3217_s1 = inlined_call_operand.vmem [shape: f32[10,32], index: 1, kind: input, shape index: {}]   ;;  %s3218_s10 = inlined_call_operand.vmem [shape: f32[32,8], index: 10, kind: input, shape index: {}]   ;;  %s3219_s7 = inlined_call_operand.vmem [shape: f32[1,32], index: 7, kind: input, shape index: {}]   ;;  %s3220_s11 = inlined_call_operand.vmem [shape: f32[8,32], index: 11, kind: input, shape index: {}]   ;;  %s3221_s9 = inlined_call_operand.vmem [shape: f32[1,32], index: 9, kind: input, shape index: {}]   ;;  %s3222_s12 = inlined_call_operand.vmem [shape: f32[1,8], index: 12, kind: input, shape index: {}]   ;;  %s3223_s13 = inlined_call_operand.vmem [shape: f32[1,8], index: 13, kind: input, shape index: {}]   ;;  %s3224_s16 = inlined_call_operand.vmem [shape: bf16[3,32,32], index: 16, kind: input, shape index: {}]   ;;  %s3225_s14 = inlined_call_operand.vmem [shape: f32[1,8], index: 14, kind: input, shape index: {}]   ;;  %s3226_s15 = inlined_call_operand.vmem [shape: f32[1,8], index: 15, kind: input, shape index: {}]   ;;  %s3227_s17 = inlined_call_operand.vmem [shape: f32[1,32], index: 17, kind: input, shape index: {}]   ;;  %s3228_s18 = inlined_call_operand.vmem [shape: f32[8,32], index: 18, kind: output, shape index: {0}]   ;;  %s3229_s19 = inlined_call_operand.vmem [shape: f32[2,8], index: 19, kind: output, shape index: {1}]  }
   0x1   :  { %3231 = sst [smem:[#allocation3_spill]] %s3210_s5  ;;  %2403 = vmatprep.subr.mxu0 %v2742_v0  ;;  %2405 = vmatprep.mubr.msk.f32.mxu0 %vm2743_vm1, %v2742_v0  ;;  %v2875_v15 = vld [vmem:[%s3214_s6] sm:$0xff]   ;;  %v2882_v16 = vld [vmem:[%s3214_s6 + $0x8] sm:$0xff]   ;;  %v2726_v21 = vld [vmem:[%s3215_s8 + $0x10] sm:$0xff]   ;;  %vm344_vm3 = vcmask 261120   ;;  %v232_v44 = vlaneseq  ;;  %vm993_vm14 = vcmask 257024  }
   0x2   :  { %3232 = sst [smem:[#allocation4_spill]] %s3211_s2  ;;  %s3235_s20 = sld [smem:[#allocation3_spill]]  ;;  %2408 = vmatprep.subr.mxu1 %v2742_v0  ;;  %2410 = vmatprep.mubr.msk.f32.mxu1 %vm2743_vm1, %v2742_v0  ;;  %v2724_v17 = vld [vmem:[%s3215_s8] sm:$0xff]   ;;  %v2725_v18 = vld [vmem:[%s3215_s8 + $0x8] sm:$0xff]   ;;  %v2727_v22 = vld [vmem:[%s3215_s8 + $0x18] sm:$0xff]   ;;  %vm1220_vm15 = vcmask 64512  }
   0x3   :  { %3233 = sst [smem:[#allocation5_spill]] %s3212_s3  ;;  %s3236_s22 = sld [smem:[#allocation4_spill]]  ;;  %v2896_v19 = vld [vmem:[%s3216_s0] sm:$0xff]  ;;  %v2729_v27 = vld [vmem:[%s3215_s8 + $0x28] sm:$0xff]   ;;  %v233_v46 = vshrl.u32 %v232_v44, 7 }
   0x4   :  { %3234 = sst [smem:[#allocation6_spill]] %s3213_s4  ;;  %s3237_s4 = sld [smem:[#allocation5_spill]]  ;;  %v389_v20 = vpack.c.bf16 %v2896_v19, %v2896_v19  ;;  %v64_v23 = vld [vmem:[%s3217_s1] sm:$0xff]  ;;  %v63_v28 = vld [vmem:[%s3216_s0 + $0x8] sm:$0x3] }
   0x5   :  { %s3238_s28 = sld [smem:[#allocation6_spill]]  ;;  %v503_v24 = vpack.c.bf16 %v64_v23, %v64_v23  ;;  %v2728_v25 = vld [vmem:[%s3215_s8 + $0x20] sm:$0xff]   ;;  %v2929_v29 = vpack.c.bf16 %v63_v28, %v2896_v19  ;;  %v65_v37 = vld [vmem:[%s3217_s1 + $0x8] sm:$0x3]  ;;  %v2948_v47 = vsub.s32 0, %v233_v46  ;;  %vm249_vm4 = vcmp.ge.s32.totalorder %v233_v46, 1 }
   0x6   :  { %v624_v26 = vshll.u32 %v389_v20, 16  ;;  %v622_v30 = vshrl.u32 %v389_v20, 16  ;;  %v843_v38 = vpack.c.bf16 %v65_v37, %v64_v23  ;;  %vm251_vm5 = vcmp.lt.s32.totalorder %v233_v46, 5 }
   0x7   :  { %v739_v33 = vshrl.u32 %v2929_v29, 16  ;;  %v742_v34 = vshll.u32 %v2929_v29, 16  ;;  %v248_v56 = vadd.s32 8, %v233_v46  ;;  %vm253_vm6 = vmand %vm249_vm4, %vm251_vm5  ;;  %vm255_vm7 = vcmp.ge.s32.totalorder %v233_v46, 6 }
   0x8   :  { %v80_v1 = vld [vmem:[%s3235_s20] sm:$0xf]  ;;  %v626_v31 = vrot.slane %v624_v26, 1  ;;  %v845_v40 = vshrl.u32 %v843_v38, 16  ;;  %v848_v41 = vshll.u32 %v843_v38, 16  ;;  %v943_v57 = vrot.slane %v2929_v29, 3  ;;  %vm261_vm10 = vmor %vm253_vm6, %vm255_vm7 }
   0x9   :  { %v66_v2 = vld [vmem:[%s3236_s22] sm:$0x1]  ;;  %v69_v3 = vld [vmem:[%s3236_s22 + $0x1] sm:$0x1]  ;;  %2404 = vmatpush3.msk.msra.mxu0 %vm85_vm0, %v80_v1  ;;  %2409 = vmatpush3.msk.msra.mxu1 %vm85_vm0, %v80_v1  ;;  %v741_v35 = vrot.slane %v739_v33, 2  ;;  %v744_v36 = vrot.slane %v742_v34, 3 }
   0xa   :  { %v68_v4 = vmul.f32 0.0078125, %v66_v2  ;;  %v70_v5 = vmul.f32 0.0078125, %v69_v3  ;;  %2413 = vmatprep.subr.bf16.mxu0 %v2742_v0  ;;  %2421 = vmatprep.subr.bf16.mxu1 %v2742_v0  ;;  %v73_v9 = vld [vmem:[%s3237_s4] sm:$0x1]  ;;  %v627_v32 = vor.u32 %v626_v31, %v622_v30  ;;  %v847_v42 = vrot.slane %v845_v40, 2  ;;  %v989_v33 = vld [vmem:[%s3218_s10 + $0x8] sm:$0xff] }
   0xb   :  { %v77_v12 = vld [vmem:[%s3238_s28] sm:$0x1]  ;;  %v745_v39 = vor.u32 %v744_v36, %v741_v35  ;;  %v850_v43 = vrot.slane %v848_v41, 3  ;;  %vm273_vm8 = vcmp.lt.s32.totalorder %v233_v46, 4  ;;  %vm277_vm9 = vcmp.ge.s32.totalorder %v233_v46, 5  ;;  %v990_v36 = vld [vmem:[%s3218_s10 + $0x10] sm:$0xff] }
   0xc   :  { %v71_v6 = vmul.f32 %v68_v4, %v68_v4  ;;  %vm258_vm11 = vcmp.lt.s32.totalorder %v248_v56, 10  ;;  %vm280_vm12 = vcmp.lt.s32.totalorder %v248_v56, 9  ;;  %vm283_vm13 = vmor %vm273_vm8, %vm277_vm9  ;;  %v2744_v35 = vmov 0.0|0.0  }
   0xd   :  { %v851_v45 = vor.u32 %v850_v43, %v847_v42  ;;  %vm1685_vm0 = vcmask 253952  }
   0xe   :  { %v72_v7 = vsub.f32 %v70_v5, %v71_v6  ;;  %1686 = vst.msk [vmem:[#allocation2] sm:$0x1] %vm1685_vm0, %v2742_v0  ;;  %1687 = vst.msk [vmem:[#allocation2 + $0x5] sm:$0x1] %vm1685_vm0, %v2742_v0 }
  0x10   :  { %v74_v8 = vadd.f32 1e-05, %v72_v7 }
  0x12   :  { %2736 = vrsqrt.f32 %v74_v8 }
  0x1c   :  { %v2737_v10 = vpop.eup %2736 }
  0x1d   :  { %v76_v11 = vmul.f32 %v2737_v10, %v73_v9  ;;  %v2720_v9 = vld [vmem:[%s3214_s6 + $0x10] sm:$0xff]  }
  0x1f   :  { %2406 = vmatmul.mubr.msk.f32.vlgmr.msra.gmra.mrb[0].mxu0 %vm81_vm2, %v76_v11  ;;  %v78_v13 = vmul.f32 %v76_v11, %v68_v4 }
  0x20   :  { %2417 = vmatprep.mubr.msk.bf16.mxu0 %vm2743_vm1, %v2742_v0  ;;  %2414 = vmatpush3.bf16.msra.mxu0 %v2875_v15 }
  0x21   :  { %v79_v14 = vsub.f32 %v77_v12, %v78_v13  ;;  %2415 = vmatprep.subr.bf16.mxu0 %v2742_v0  ;;  %v2721_v13 = vld [vmem:[%s3214_s6 + $0x18] sm:$0xff]  }
  0x23   :  { %2411 = vmatmul.mubr.msk.f32.vlgmr.msra.gmra.mrb[0].mxu1 %vm81_vm2, %v79_v14  ;;  %v2722_v14 = vld [vmem:[%s3214_s6 + $0x20] sm:$0xff]  }
  0x24   :  { %2425 = vmatprep.mubr.msk.bf16.mxu1 %vm2743_vm1, %v2742_v0  ;;  %2416 = vmatpush3.bf16.msra.mxu0 %v2882_v16 }
  0x25   :  { %2429 = vmatprep.subr.bf16.mxu0 %v2742_v0  ;;  %2422 = vmatpush3.bf16.msra.mxu1 %v2724_v17 }
  0x26   :  { %2423 = vmatprep.subr.bf16.mxu1 %v2742_v0 }
  0x29   :  { %2424 = vmatpush3.bf16.msra.mxu1 %v2725_v18 }
  0x2a   :  { %2437 = vmatprep.subr.bf16.mxu1 %v2742_v0 }
  0x2c   :  { %2426 = vmatmul.mubr.msk.bf16.vlgmr.msra.gmra.mrb[4].mxu1 %vm344_vm3, %v389_v20 }
  0x2d   :  { %2438 = vmatpush3.bf16.msra.mxu1 %v2726_v21  ;;  %2441 = vmatprep.mubr.msk.bf16.mxu1 %vm2743_vm1, %v2742_v0 }
  0x2e   :  { %2439 = vmatprep.subr.bf16.mxu1 %v2742_v0 }
  0x31   :  { %2440 = vmatpush3.bf16.msra.mxu1 %v2727_v22 }
  0x32   :  { %2453 = vmatprep.subr.bf16.mxu1 %v2742_v0 }
  0x38   :  { %2442 = vmatmul.mubr.msk.bf16.vlgmr.msra.gmra.mrb[4].mxu1 %vm344_vm3, %v503_v24 }
  0x39   :  { %2454 = vmatpush3.bf16.msra.mxu1 %v2728_v25  ;;  %2457 = vmatprep.mubr.msk.bf16.mxu1 %vm2743_vm1, %v2742_v0 }
  0x3a   :  { %2455 = vmatprep.subr.bf16.mxu1 %v2742_v0 }
  0x3d   :  { %2456 = vmatpush3.bf16.msra.mxu1 %v2729_v27 }
  0x3e   :  { %2469 = vmatprep.subr.bf16.mxu1 %v2742_v0 }
  0x44   :  { %2458 = vmatmul.mubr.msk.bf16.vlgmr.msra.gmra.mrb[4].mxu1 %vm344_vm3, %v627_v32  ;;  %v988_v32 = vld [vmem:[%s3218_s10] sm:$0xff] }
  0x45   :  { %2470 = vmatpush3.bf16.msra.mxu1 %v2724_v17  ;;  %2473 = vmatprep.mubr.msk.bf16.mxu1 %vm2743_vm1, %v2742_v0  ;;  %v3007_v34 = vpack.c.bf16 %v989_v33, %v988_v32 }
  0x46   :  { %2471 = vmatprep.subr.bf16.mxu1 %v2742_v0 }
  0x49   :  { %2472 = vmatpush3.bf16.msra.mxu1 %v2725_v18  ;;  %v2723_v18 = vld [vmem:[%s3214_s6 + $0x28] sm:$0xff]  }
  0x4a   :  { %2485 = vmatprep.subr.bf16.mxu1 %v2742_v0 }
  0x4c   :  { %2474 = vmatmul.mubr.msk.bf16.vlgmr.msra.gmra.mrb[8].mxu1 %vm344_vm3, %v745_v39 }
  0x4d   :  { %2486 = vmatpush3.bf16.msra.mxu1 %v2726_v21  ;;  %2489 = vmatprep.mubr.msk.bf16.mxu1 %vm2743_vm1, %v2742_v0 }
  0x4e   :  { %2487 = vmatprep.subr.bf16.mxu1 %v2742_v0 }
  0x51   :  { %2488 = vmatpush3.bf16.msra.mxu1 %v2727_v22 }
  0x52   :  { %2501 = vmatprep.subr.bf16.mxu1 %v2742_v0 }
  0x58   :  { %2490 = vmatmul.mubr.msk.bf16.vlgmr.msra.gmra.mrb[8].mxu1 %vm344_vm3, %v851_v45 }
  0x59   :  { %2502 = vmatpush3.bf16.msra.mxu1 %v2728_v25  ;;  %2505 = vmatprep.mubr.msk.bf16.mxu1 %vm2743_vm1, %v2742_v0 }
  0x5a   :  { %2503 = vmatprep.subr.bf16.mxu1 %v2742_v0 }
  0x5d   :  { %2504 = vmatpush3.bf16.msra.mxu1 %v2729_v27 }
  0x5e   :  { %2649 = vmatprep.subr.bf16.mxu1 %v2744_v35 }
  0x64   :  { %2506 = vmatmul.mubr.msk.bf16.vlgmr.msra.gmra.mrb[8].mxu1 %vm344_vm3, %v943_v57 }
  0x65   :  { %2528 = vmatprep.mubr.msk.f32.mxu1 %vm2743_vm1, %v2742_v0  ;;  %2651 = vmatpush3.bf16.msra.mxu1 %v3007_v34 }
  0x66   :  { %2652 = vmatprep.subr.bf16.mxu1 %v2744_v35 }
  0xf2   :  { %v155_v48 = vpop.f32.mrb[0].mxu0 }
  0xf3   :  { %v235_v49 = vrot.slane %v155_v48, %v2948_v47  ;;  %v2407_v50 = vpop.f32.mrb[1].mxu0 }
  0xf5   :  { %v236_v51 = vmul.f32 %v235_v49, %v2896_v19  ;;  %v237_v52 = vmul.f32 %v235_v49, %v63_v28  ;;  %v265_v53 = vmul.f32 %v235_v49, %v64_v23  ;;  %v266_v54 = vmul.f32 %v235_v49, %v65_v37  ;;  %v991_v37 = vld [vmem:[%s3218_s10 + $0x18] sm:$0xff] }
  0xf6   :  { %v228_v55 = vpop.f32.mrb[0].mxu1  ;;  %v3021_v38 = vpack.c.bf16 %v991_v37, %v990_v36 }
  0xf7   :  { %v241_v58 = vrot.slane %v228_v55, %v2948_v47  ;;  %v2412_v59 = vpop.f32.mrb[1].mxu1 }
  0xf8   :  { %2654 = vmatpush3.bf16.msra.mxu1 %v3021_v38 }
  0xf9   :  { %v242_v60 = vadd.f32 %v241_v58, %v236_v51  ;;  %v243_v61 = vadd.f32 %v241_v58, %v237_v52  ;;  %v267_v62 = vadd.f32 %v265_v53, %v241_v58  ;;  %v268_v63 = vadd.f32 %v266_v54, %v241_v58  ;;  %2536 = vmatprep.subr.mxu1 %v2742_v0  ;;  %v2250_v52 = vld [vmem:[%s3219_s7] ss:$0 sm:$0xff] }
  0xfb   :  { %v244_v1 = vmax.f32 %v242_v60, 0.0  ;;  %v245_v2 = vmax.f32 %v243_v61, 0.0  ;;  %v269_v3 = vmax.f32 %v267_v62, 0.0  ;;  %v270_v4 = vmax.f32 %v268_v63, 0.0 }
  0xfd   :  { %v263_v5 = vsel %vm261_vm10, %v244_v1, 0.0  ;;  %v264_v6 = vsel %vm258_vm11, %v245_v2, 0.0  ;;  %v285_v7 = vsel %vm283_vm13, %v269_v3, 0.0  ;;  %v286_v8 = vsel %vm280_vm12, %v270_v4, 0.0 }
  0xfe   :  { %v684_v10 = vpack.c.bf16 %v264_v6, %v263_v5  ;;  %v790_v11 = vpack.c.bf16 %v286_v8, %v285_v7  ;;  %v331_v12 = vpack.c.bf16 %v263_v5, %v263_v5  ;;  %v446_v17 = vpack.c.bf16 %v285_v7, %v285_v7 }
 0x100   :  { %2418 = vmatmul.mubr.msk.bf16.vlgmr.msra.gmra.mrb[4].mxu0 %vm344_vm3, %v331_v12  ;;  %v562_v19 = vshll.u32 %v331_v12, 16  ;;  %v560_v21 = vshrl.u32 %v331_v12, 16  ;;  %v686_v23 = vshrl.u32 %v684_v10, 16  ;;  %v689_v24 = vshll.u32 %v684_v10, 16 }
 0x101   :  { %2430 = vmatpush3.bf16.msra.mxu0 %v2720_v9  ;;  %2433 = vmatprep.mubr.msk.bf16.mxu0 %vm2743_vm1, %v2742_v0  ;;  %v792_v28 = vshrl.u32 %v790_v11, 16 }
 0x102   :  { %2431 = vmatprep.subr.bf16.mxu0 %v2742_v0  ;;  %v564_v20 = vrot.slane %v562_v19, 1  ;;  %v688_v25 = vrot.slane %v686_v23, 2  ;;  %v691_v26 = vrot.slane %v689_v24, 3 }
 0x103   :  { %v794_v29 = vrot.slane %v792_v28, 2 }
 0x104   :  { %v565_v22 = vor.u32 %v564_v20, %v560_v21  ;;  %v692_v27 = vor.u32 %v691_v26, %v688_v25 }
 0x105   :  { %2432 = vmatpush3.bf16.msra.mxu0 %v2721_v13 }
 0x106   :  { %2445 = vmatprep.subr.bf16.mxu0 %v2742_v0 }
 0x10c   :  { %2434 = vmatmul.mubr.msk.bf16.vlgmr.msra.gmra.mrb[4].mxu0 %vm344_vm3, %v446_v17 }
 0x10d   :  { %2446 = vmatpush3.bf16.msra.mxu0 %v2722_v14  ;;  %2449 = vmatprep.mubr.msk.bf16.mxu0 %vm2743_vm1, %v2742_v0 }
 0x10e   :  { %2447 = vmatprep.subr.bf16.mxu0 %v2742_v0 }
 0x111   :  { %2448 = vmatpush3.bf16.msra.mxu0 %v2723_v18 }
 0x112   :  { %2461 = vmatprep.subr.bf16.mxu0 %v2742_v0 }
 0x117   :  { %v3027_v39 = vpop.f32.mrb[4].mxu1 }
 0x118   :  { %2450 = vmatmul.mubr.msk.bf16.vlgmr.msra.gmra.mrb[4].mxu0 %vm344_vm3, %v565_v22  ;;  %v2459_v40 = vpop.f32.mrb[5].mxu1 }
 0x119   :  { %2462 = vmatpush3.bf16.msra.mxu0 %v2875_v15  ;;  %2465 = vmatprep.mubr.msk.bf16.mxu0 %vm2743_vm1, %v2742_v0  ;;  %v795_v15 = vshll.u32 %v790_v11, 16  ;;  %v680_v41 = vpop.f32.mrb[6].mxu1 }
 0x11a   :  { %2463 = vmatprep.subr.bf16.mxu0 %v2742_v0  ;;  %v2460_v42 = vpop.f32.mrb[7].mxu1 }
 0x11b   :  { %v797_v30 = vrot.slane %v795_v15, 3 }
 0x11d   :  { %2464 = vmatpush3.bf16.msra.mxu0 %v2882_v16  ;;  %v798_v31 = vor.u32 %v797_v30, %v794_v29  ;;  %v897_v16 = vrot.slane %v684_v10, 3  ;;  %v3055_v29 = vld [vmem:[%s3220_s11] sm:$0xff] }
 0x11e   :  { %2477 = vmatprep.subr.bf16.mxu0 %v2742_v0  ;;  %v2251_v30 = vld [vmem:[%s3221_s9] ss:$0 sm:$0xff] }
 0x120   :  { %2466 = vmatmul.mubr.msk.bf16.vlgmr.msra.gmra.mrb[8].mxu0 %vm344_vm3, %v692_v27 }
 0x121   :  { %2478 = vmatpush3.bf16.msra.mxu0 %v2720_v9  ;;  %2481 = vmatprep.mubr.msk.bf16.mxu0 %vm2743_vm1, %v2742_v0 }
 0x122   :  { %2479 = vmatprep.subr.bf16.mxu0 %v2742_v0 }
 0x125   :  { %2480 = vmatpush3.bf16.msra.mxu0 %v2721_v13 }
 0x126   :  { %2493 = vmatprep.subr.bf16.mxu0 %v2742_v0 }
 0x12c   :  { %2482 = vmatmul.mubr.msk.bf16.vlgmr.msra.gmra.mrb[8].mxu0 %vm344_vm3, %v798_v31  ;;  %v3065_v31 = vadd.f32 %v2251_v30, %v3027_v39 }
 0x12d   :  { %2494 = vmatpush3.bf16.msra.mxu0 %v2722_v14  ;;  %2497 = vmatprep.mubr.msk.bf16.mxu0 %vm2743_vm1, %v2742_v0 }
 0x12e   :  { %2495 = vmatprep.subr.bf16.mxu0 %v2742_v0  ;;  %v1011_v32 = vsel %vm993_vm14, %v3065_v31, 0.0  ;;  %v1019_v36 = vmul.f32 %v3065_v31, %v3065_v31 }
 0x12f   :  { %v1012_v39 = vrot.slane %v1011_v32, 4 }
 0x131   :  { %2496 = vmatpush3.bf16.msra.mxu0 %v2723_v18 }
 0x132   :  { %2643 = vmatprep.subr.bf16.mxu0 %v2744_v35 }
 0x137   :  { %v981_v43 = vpop.f32.mrb[8].mxu1 }
 0x138   :  { %2498 = vmatmul.mubr.msk.bf16.vlgmr.msra.gmra.mrb[8].mxu0 %vm344_vm3, %v897_v16  ;;  %v2507_v44 = vpop.f32.mrb[9].mxu1  ;;  %v3067_v16 = vadd.f32 %v2251_v30, %v981_v43 }
 0x139   :  { %2517 = vmatprep.mubr.msk.f32.mxu0 %vm2743_vm1, %v2742_v0  ;;  %2645 = vmatpush3.bf16.msra.mxu0 %v3007_v34  ;;  %v984_v45 = vpop.f32.mrb[10].mxu1 }
 0x13a   :  { %2646 = vmatprep.subr.bf16.mxu0 %v2744_v35  ;;  %v2508_v46 = vpop.f32.mrb[11].mxu1  ;;  %v1045_v37 = vsel %vm993_vm14, %v3067_v16, 0.0  ;;  %v1053_v40 = vmul.f32 %v3067_v16, %v3067_v16 }
 0x13d   :  { %2648 = vmatpush3.bf16.msra.mxu0 %v3021_v38 }
 0x13e   :  { %2531 = vmatprep.subr.mxu0 %v2742_v0 }
 0x1eb   :  { %v615_v48 = vpop.f32.mrb[4].mxu0 }
 0x1ec   :  { %v2451_v49 = vpop.f32.mrb[5].mxu0  ;;  %v3032_v53 = vadd.f32 %v2250_v52, %v615_v48  ;;  %v1046_v48 = vrot.slane %v1045_v37, 4 }
 0x1ed   :  { %v618_v50 = vpop.f32.mrb[6].mxu0  ;;  %v1020_v49 = vsel %vm993_vm14, %v1019_v36, 0.0 }
 0x1ee   :  { %v2452_v51 = vpop.f32.mrb[7].mxu0  ;;  %v1002_v54 = vmul.f32 %v3032_v53, %v3032_v53  ;;  %v994_v55 = vsel %vm993_vm14, %v3032_v53, 0.0  ;;  %v1054_v50 = vsel %vm993_vm14, %v1053_v40, 0.0 }
 0x1ef   :  { %v995_v57 = vrot.slane %v994_v55, 4 }
 0x1f0   :  { %v1003_v56 = vsel %vm993_vm14, %v1002_v54, 0.0 }
 0x1f1   :  { %v1004_v58 = vrot.slane %v1003_v56, 4  ;;  %v996_v59 = vadd.f32 %v995_v57, %v994_v55  ;;  %v1021_v55 = vrot.slane %v1020_v49, 4  ;;  %v1055_v57 = vrot.slane %v1054_v50, 4 }
 0x1f3   :  { %v1005_v60 = vadd.f32 %v1004_v58, %v1003_v56  ;;  %v997_v1 = vrot.slane %v996_v59, 2  ;;  %v1047_v56 = vadd.f32 %v1046_v48, %v1045_v37 }
 0x1f5   :  { %v1006_v6 = vrot.slane %v1005_v60, 2  ;;  %v998_v9 = vadd.f32 %v997_v1, %v996_v59  ;;  %v1022_v59 = vadd.f32 %v1021_v55, %v1020_v49  ;;  %v1368_v55 = vld [vmem:[%s3226_s15] sm:$0x1] }
 0x1f7   :  { %v1007_v12 = vadd.f32 %v1006_v6, %v1005_v60  ;;  %v999_v17 = vrot.slane %v998_v9, 1  ;;  %v1048_v60 = vrot.slane %v1047_v56, 2  ;;  %v1023_v1 = vrot.slane %v1022_v59, 2 }
 0x1f9   :  { %v1008_v20 = vrot.slane %v1007_v12, 1  ;;  %v1000_v23 = vadd.f32 %v999_v17, %v998_v9 }
 0x1fb   :  { %v1009_v26 = vadd.f32 %v1008_v20, %v1007_v12 }
 0x20b   :  { %v935_v61 = vpop.f32.mrb[8].mxu0 }
 0x20c   :  { %v3039_v62 = vadd.f32 %v2250_v52, %v935_v61  ;;  %v2499_v63 = vpop.f32.mrb[9].mxu0  ;;  %v1013_v52 = vadd.f32 %v1012_v39, %v1011_v32  ;;  %v1056_v61 = vadd.f32 %v1055_v57, %v1054_v50  ;;  %v1367_v50 = vld [vmem:[%s3225_s14] sm:$0x1]  ;;  %v2731_v57 = vld [vmem:[%s3224_s16 + $0x8] sm:$0xff]  }
 0x20d   :  { %v938_v2 = vpop.f32.mrb[10].mxu0 }
 0x20e   :  { %v1028_v3 = vsel %vm993_vm14, %v3039_v62, 0.0  ;;  %v1036_v4 = vmul.f32 %v3039_v62, %v3039_v62  ;;  %v2500_v5 = vpop.f32.mrb[11].mxu0  ;;  %v1014_v58 = vrot.slane %v1013_v52, 2  ;;  %v1049_v2 = vadd.f32 %v1048_v60, %v1047_v56  ;;  %v2733_v60 = vld [vmem:[%s3224_s16 + $0x18] sm:$0xff]  }
 0x20f   :  { %v1029_v7 = vrot.slane %v1028_v3, 4 }
 0x210   :  { %v1037_v8 = vsel %vm993_vm14, %v1036_v4, 0.0  ;;  %v1015_v63 = vadd.f32 %v1014_v58, %v1013_v52  ;;  %v1062_v4 = vld [vmem:[%s3222_s12] sm:$0x1]  ;;  %v2732_v58 = vld [vmem:[%s3224_s16 + $0x10] sm:$0xff]  }
 0x211   :  { %v1030_v10 = vadd.f32 %v1029_v7, %v1028_v3  ;;  %v1038_v11 = vrot.slane %v1037_v8, 4  ;;  %v1057_v3 = vrot.slane %v1056_v61, 2  ;;  %v1024_v7 = vadd.f32 %v1023_v1, %v1022_v59  ;;  %v2730_v52 = vld [vmem:[%s3224_s16] sm:$0xff]   ;;  %v2735_v1 = vld [vmem:[%s3224_s16 + $0x28] sm:$0xff]  }
 0x212   :  { %v1016_v6 = vrot.slane %v1015_v63, 1 }
 0x213   :  { %v1031_v13 = vrot.slane %v1030_v10, 2  ;;  %v1039_v14 = vadd.f32 %v1038_v11, %v1037_v8  ;;  %v1050_v8 = vrot.slane %v1049_v2, 1  ;;  %v1058_v9 = vadd.f32 %v1057_v3, %v1056_v61  ;;  %v1063_v11 = vld [vmem:[%s3223_s13] sm:$0x1] }
 0x214   :  { %v2734_v61 = vld [vmem:[%s3224_s16 + $0x20] sm:$0xff]  }
 0x215   :  { %v1032_v18 = vadd.f32 %v1031_v13, %v1030_v10  ;;  %v1040_v19 = vrot.slane %v1039_v14, 2  ;;  %v1017_v13 = vadd.f32 %v1016_v6, %v1015_v63  ;;  %v1051_v17 = vadd.f32 %v1050_v8, %v1049_v2 }
 0x217   :  { %v1033_v21 = vrot.slane %v1032_v18, 1  ;;  %v1041_v22 = vadd.f32 %v1040_v19, %v1039_v14  ;;  %v1025_v14 = vrot.slane %v1024_v7, 1 }
 0x219   :  { %v1034_v24 = vadd.f32 %v1033_v21, %v1032_v18  ;;  %v1042_v25 = vrot.slane %v1041_v22, 1  ;;  %v1059_v18 = vrot.slane %v1058_v9, 1  ;;  %v1026_v20 = vadd.f32 %v1025_v14, %v1024_v7  ;;  %v2292_v14 = vld [vmem:[%s3227_s17] ss:$0 sm:$0xff] }
 0x21b   :  { %v1043_v27 = vadd.f32 %v1042_v25, %v1041_v22  ;;  %v1035_v28 = vadd.f32 %v1034_v24, %v1000_v23  ;;  %v1060_v21 = vadd.f32 %v1059_v18, %v1058_v9  ;;  %v1052_v22 = vadd.f32 %v1051_v17, %v1017_v13 }
 0x21d   :  { %2518 = vmatmul.mubr.msk.f32.vlgmr.msra.gmra.mrb[2].mxu0 %vm344_vm3, %v1035_v28  ;;  %v1044_v15 = vadd.f32 %v1043_v27, %v1009_v26  ;;  %v1061_v23 = vadd.f32 %v1060_v21, %v1026_v20 }
 0x21e   :  { %2533 = vmatprep.mubr.msk.f32.mxu0 %vm2743_vm1, %v2742_v0  ;;  %2532 = vmatpush3.msra.mxu0 %v3055_v29 }
 0x21f   :  { %2529 = vmatmul.mubr.msk.f32.vlgmr.msra.gmra.mrb[2].mxu1 %vm344_vm3, %v1044_v15  ;;  %2655 = vmatprep.subr.bf16.mxu0 %v2744_v35 }
 0x220   :  { %2538 = vmatprep.mubr.msk.f32.mxu1 %vm2743_vm1, %v2742_v0  ;;  %2537 = vmatpush3.msra.mxu1 %v3055_v29 }
 0x221   :  { %2661 = vmatprep.subr.bf16.mxu1 %v2744_v35 }
 0x2f0   :  { %v1133_v33 = vpop.f32.mrb[2].mxu0 }
 0x2f1   :  { %v1138_v41 = vmul.f32 0.03125, %v1133_v33  ;;  %v2519_v42 = vpop.f32.mrb[3].mxu0 }
 0x2f2   :  { %v1208_v44 = vpop.f32.mrb[2].mxu1 }
 0x2f3   :  { %v1213_v45 = vmul.f32 %v1138_v41, %v1138_v41  ;;  %v1212_v43 = vmul.f32 0.03125, %v1208_v44  ;;  %v2530_v46 = vpop.f32.mrb[3].mxu1 }
 0x2f5   :  { %v1214_v51 = vsub.f32 %v1212_v43, %v1213_v45 }
 0x2f7   :  { %v1215_v54 = vadd.f32 1e-05, %v1214_v51 }
 0x2f9   :  { %2738 = vrsqrt.f32 %v1215_v54 }
 0x303   :  { %v2739_v5 = vpop.eup %2738 }
 0x304   :  { %v1217_v10 = vmul.f32 %v2739_v5, %v1062_v4 }
 0x306   :  { %2534 = vmatmul.mubr.msk.f32.vlgmr.msra.gmra.mrb[12].mxu0 %vm1220_vm15, %v1217_v10  ;;  %v1218_v12 = vmul.f32 %v1217_v10, %v1138_v41 }
 0x307   :  { %2657 = vmatpush3.bf16.msra.mxu0 %v3007_v34  ;;  %2549 = vmatprep.mubr.msk.f32.mxu0 %vm2743_vm1, %v2742_v0 }
 0x308   :  { %2658 = vmatprep.subr.bf16.mxu0 %v2744_v35  ;;  %v1219_v19 = vsub.f32 %v1063_v11, %v1218_v12 }
 0x30a   :  { %2539 = vmatmul.mubr.msk.f32.vlgmr.msra.gmra.mrb[12].mxu1 %vm1220_vm15, %v1219_v19 }
 0x30b   :  { %2660 = vmatpush3.bf16.msra.mxu0 %v3021_v38  ;;  %2663 = vmatpush3.bf16.msra.mxu1 %v3007_v34 }
 0x30c   :  { %2664 = vmatprep.subr.bf16.mxu1 %v2744_v35  ;;  %2560 = vmatprep.mubr.msk.f32.mxu1 %vm2743_vm1, %v2742_v0 }
 0x30d   :  { %2563 = vmatprep.subr.mxu0 %v2742_v0 }
 0x30e   :  { %2550 = vmatmul.mubr.msk.f32.vlgmr.msra.gmra.mrb[14].mxu0 %vm344_vm3, %v1052_v22 }
 0x30f   :  { %2666 = vmatpush3.bf16.msra.mxu1 %v3021_v38  ;;  %2564 = vmatpush3.msra.mxu0 %v3055_v29 }
 0x310   :  { %2565 = vmatprep.mubr.msk.f32.mxu0 %vm2743_vm1, %v2742_v0  ;;  %2573 = vmatprep.subr.bf16.mxu0 %v2742_v0 }
 0x311   :  { %2568 = vmatprep.subr.mxu1 %v2742_v0 }
 0x312   :  { %2561 = vmatmul.mubr.msk.f32.vlgmr.msra.gmra.mrb[14].mxu1 %vm344_vm3, %v1061_v23 }
 0x313   :  { %2569 = vmatpush3.msra.mxu1 %v3055_v29  ;;  %2570 = vmatprep.mubr.msk.f32.mxu1 %vm2743_vm1, %v2742_v0 }
 0x314   :  { %2581 = vmatprep.subr.bf16.mxu1 %v2742_v0 }
 0x3d9   :  { %v1290_v24 = vpop.f32.mrb[12].mxu0 }
 0x3da   :  { %v1691_v25 = vrot.slane %v1290_v24, %v2948_v47  ;;  %v2535_v26 = vpop.f32.mrb[13].mxu0 }
 0x3dc   :  { %v1692_v28 = vmul.f32 %v3032_v53, %v1691_v25  ;;  %v1910_v15 = vmul.f32 %v3039_v62, %v1691_v25 }
 0x3dd   :  { %v1363_v27 = vpop.f32.mrb[12].mxu1 }
 0x3de   :  { %v1696_v29 = vrot.slane %v1363_v27, %v2948_v47  ;;  %v2540_v30 = vpop.f32.mrb[13].mxu1 }
 0x3e0   :  { %v1697_v32 = vadd.f32 %v1696_v29, %v1692_v28  ;;  %v1911_v33 = vadd.f32 %v1910_v15, %v1696_v29 }
 0x3e1   :  { %v1438_v36 = vpop.f32.mrb[14].mxu0 }
 0x3e2   :  { %v1698_v37 = vmax.f32 %v1697_v32, 0.0  ;;  %v1442_v40 = vmul.f32 0.03125, %v1438_v36  ;;  %v2551_v41 = vpop.f32.mrb[15].mxu0  ;;  %v1912_v46 = vmax.f32 %v1911_v33, 0.0 }
 0x3e4   :  { %1699 = vst.msk [vmem:[#allocation2 + $0x1] sm:$0xf] %vm993_vm14, %v1698_v37  ;;  %v1517_v44 = vmul.f32 %v1442_v40, %v1442_v40 }
 0x3e5   :  { %v1512_v42 = vpop.f32.mrb[14].mxu1 }
 0x3e6   :  { %v1516_v39 = vmul.f32 0.03125, %v1512_v42  ;;  %v2562_v45 = vpop.f32.mrb[15].mxu1 }
 0x3e8   :  { %v1518_v43 = vsub.f32 %v1516_v39, %v1517_v44 }
 0x3ea   :  { %v1519_v53 = vadd.f32 1e-05, %v1518_v43 }
 0x3eb   :  { %v1707_v48 = vld [vmem:[#allocation2] sm:$0xf] }
 0x3ec   :  { %v1765_v62 = vld [vmem:[#allocation2 + $0x1] sm:$0xf]  ;;  %2740 = vrsqrt.f32 %v1519_v53  ;;  %v1708_v63 = vpack.c.bf16 %v1707_v48, %v1707_v48 }
 0x3ed   :  { %v1823_v49 = vld [vmem:[#allocation2 + $0x2] sm:$0xf]  ;;  %v1766_v2 = vpack.c.bf16 %v1765_v62, %v1765_v62 }
 0x3ee   :  { %1913 = vst.msk [vmem:[#allocation2 + $0x1] sm:$0xf] %vm993_vm14, %v1912_v46  ;;  %v1824_v3 = vpack.c.bf16 %v1823_v49, %v1823_v49 }
 0x3f5   :  { %v1914_v4 = vld [vmem:[#allocation2] sm:$0xf] }
 0x3f6   :  { %v2741_v51 = vpop.eup %2740  ;;  %v1915_v5 = vpack.c.bf16 %v1914_v4, %v1914_v4  ;;  %v1960_v6 = vld [vmem:[#allocation2 + $0x1] sm:$0xf] }
 0x3f7   :  { %v1521_v54 = vmul.f32 %v2741_v51, %v1367_v50  ;;  %v1961_v7 = vpack.c.bf16 %v1960_v6, %v1960_v6  ;;  %v2006_v8 = vld [vmem:[#allocation2 + $0x2] sm:$0xf] }
 0x3f8   :  { %v2007_v9 = vpack.c.bf16 %v2006_v8, %v2006_v8 }
 0x3f9   :  { %2566 = vmatmul.mubr.msk.f32.vlgmr.msra.gmra.mrb[16].mxu0 %vm1220_vm15, %v1521_v54  ;;  %v1522_v56 = vmul.f32 %v1521_v54, %v1442_v40 }
 0x3fa   :  { %2574 = vmatpush3.bf16.msra.mxu0 %v2730_v52  ;;  %2577 = vmatprep.mubr.msk.bf16.mxu0 %vm2743_vm1, %v2742_v0 }
 0x3fb   :  { %2575 = vmatprep.subr.bf16.mxu0 %v2742_v0  ;;  %v1523_v59 = vsub.f32 %v1368_v55, %v1522_v56 }
 0x3fd   :  { %2571 = vmatmul.mubr.msk.f32.vlgmr.msra.gmra.mrb[16].mxu1 %vm1220_vm15, %v1523_v59 }
 0x3fe   :  { %2576 = vmatpush3.bf16.msra.mxu0 %v2731_v57  ;;  %2582 = vmatpush3.bf16.msra.mxu1 %v2732_v58 }
 0x3ff   :  { %2583 = vmatprep.subr.bf16.mxu1 %v2742_v0  ;;  %2589 = vmatprep.subr.bf16.mxu0 %v2742_v0 }
 0x400   :  { %2585 = vmatprep.mubr.msk.bf16.mxu1 %vm2743_vm1, %v2742_v0 }
 0x401   :  { %2578 = vmatmul.mubr.msk.bf16.vlgmr.msra.gmra.mrb[20].mxu0 %vm344_vm3, %v1708_v63 }
 0x402   :  { %2584 = vmatpush3.bf16.msra.mxu1 %v2733_v60  ;;  %2590 = vmatpush3.bf16.msra.mxu0 %v2734_v61 }
 0x403   :  { %2591 = vmatprep.subr.bf16.mxu0 %v2742_v0  ;;  %2597 = vmatprep.subr.bf16.mxu1 %v2742_v0 }
 0x404   :  { %2593 = vmatprep.mubr.msk.bf16.mxu0 %vm2743_vm1, %v2742_v0 }
 0x405   :  { %2586 = vmatmul.mubr.msk.bf16.vlgmr.msra.gmra.mrb[20].mxu1 %vm344_vm3, %v1766_v2 }
 0x406   :  { %2592 = vmatpush3.bf16.msra.mxu0 %v2735_v1  ;;  %2598 = vmatpush3.bf16.msra.mxu1 %v2730_v52 }
 0x407   :  { %2599 = vmatprep.subr.bf16.mxu1 %v2742_v0  ;;  %2605 = vmatprep.subr.bf16.mxu0 %v2742_v0 }
 0x408   :  { %2601 = vmatprep.mubr.msk.bf16.mxu1 %vm2743_vm1, %v2742_v0 }
 0x409   :  { %2594 = vmatmul.mubr.msk.bf16.vlgmr.msra.gmra.mrb[24].mxu0 %vm344_vm3, %v1824_v3 }
 0x40a   :  { %2600 = vmatpush3.bf16.msra.mxu1 %v2731_v57  ;;  %2606 = vmatpush3.bf16.msra.mxu0 %v2732_v58 }
 0x40b   :  { %2607 = vmatprep.subr.bf16.mxu0 %v2742_v0  ;;  %2613 = vmatprep.subr.bf16.mxu1 %v2742_v0 }
 0x40c   :  { %2609 = vmatprep.mubr.msk.bf16.mxu0 %vm2743_vm1, %v2742_v0 }
 0x40d   :  { %2602 = vmatmul.mubr.msk.bf16.vlgmr.msra.gmra.mrb[24].mxu1 %vm344_vm3, %v1915_v5 }
 0x40e   :  { %2608 = vmatpush3.bf16.msra.mxu0 %v2733_v60  ;;  %2614 = vmatpush3.bf16.msra.mxu1 %v2734_v61 }
 0x40f   :  { %2615 = vmatprep.subr.bf16.mxu1 %v2742_v0  ;;  %2617 = vmatprep.mubr.msk.bf16.mxu1 %vm2743_vm1, %v2742_v0 }
 0x410   :  { %2667 = vmatprep.subr.bf16.mxu0 %v2744_v35 }
 0x411   :  { %2610 = vmatmul.mubr.msk.bf16.vlgmr.msra.gmra.mrb[28].mxu0 %vm344_vm3, %v1961_v7 }
 0x412   :  { %2616 = vmatpush3.bf16.msra.mxu1 %v2735_v1  ;;  %2669 = vmatpush3.bf16.msra.mxu0 %v3007_v34 }
 0x413   :  { %2673 = vmatprep.subr.bf16.mxu1 %v2744_v35  ;;  %2670 = vmatprep.subr.bf16.mxu0 %v2744_v35 }
 0x414   :  { %2629 = vmatprep.mubr.msk.f32.mxu0 %vm2743_vm1, %v2742_v0 }
 0x415   :  { %2618 = vmatmul.mubr.msk.bf16.vlgmr.msra.gmra.mrb[28].mxu1 %vm344_vm3, %v2007_v9 }
 0x416   :  { %2675 = vmatpush3.bf16.msra.mxu1 %v3007_v34  ;;  %2672 = vmatpush3.bf16.msra.mxu0 %v3021_v38 }
 0x417   :  { %2676 = vmatprep.subr.bf16.mxu1 %v2744_v35  ;;  %2640 = vmatprep.mubr.msk.f32.mxu1 %vm2743_vm1, %v2742_v0  ;;  %vm2146_vm1 = vcmask 57344  }
 0x41a   :  { %2678 = vmatpush3.bf16.msra.mxu1 %v3021_v38 }
 0x4cc   :  { %v1593_v10 = vpop.f32.mrb[16].mxu0 }
 0x4cd   :  { %v2567_v11 = vpop.f32.mrb[17].mxu0  ;;  %v1884_v35 = vrot.slane %v1593_v10, %v2948_v47 }
 0x4cf   :  { %v1885_v25 = vmul.f32 %v3065_v31, %v1884_v35  ;;  %v2052_v49 = vmul.f32 %v3067_v16, %v1884_v35 }
 0x4d0   :  { %v1666_v12 = vpop.f32.mrb[16].mxu1 }
 0x4d1   :  { %v2572_v13 = vpop.f32.mrb[17].mxu1  ;;  %v1890_v15 = vrot.slane %v1666_v12, %v2948_v47 }
 0x4d4   :  { %v1758_v17 = vpop.f32.mrb[20].mxu0 }
 0x4d5   :  { %v2579_v18 = vpop.f32.mrb[21].mxu0  ;;  %v1764_v19 = vadd.f32 %v2292_v14, %v1758_v17 }
 0x4d6   :  { %v1761_v34 = vpop.f32.mrb[22].mxu0 }
 0x4d7   :  { %v2580_v20 = vpop.f32.mrb[23].mxu0 }
 0x4d8   :  { %v1816_v21 = vpop.f32.mrb[20].mxu1 }
 0x4d9   :  { %v1822_v22 = vadd.f32 %v1816_v21, %v1764_v19  ;;  %v2587_v0 = vpop.f32.mrb[21].mxu1 }
 0x4da   :  { %v1819_v23 = vpop.f32.mrb[22].mxu1 }
 0x4db   :  { %v2588_v38 = vpop.f32.mrb[23].mxu1 }
 0x4dc   :  { %v1874_v24 = vpop.f32.mrb[24].mxu0 }
 0x4dd   :  { %v1880_v26 = vadd.f32 %v1874_v24, %v1822_v22  ;;  %v2595_v27 = vpop.f32.mrb[25].mxu0 }
 0x4de   :  { %v1877_v28 = vpop.f32.mrb[26].mxu0 }
 0x4df   :  { %v1886_v29 = vadd.f32 %v1885_v25, %v1880_v26  ;;  %v2596_v30 = vpop.f32.mrb[27].mxu0 }
 0x4e0   :  { %v1953_v32 = vpop.f32.mrb[24].mxu1 }
 0x4e1   :  { %v1891_v33 = vadd.f32 %v1890_v15, %v1886_v29  ;;  %v2603_v36 = vpop.f32.mrb[25].mxu1  ;;  %v1959_v31 = vadd.f32 %v2292_v14, %v1953_v32 }
 0x4e2   :  { %v1956_v37 = vpop.f32.mrb[26].mxu1 }
 0x4e3   :  { %1892 = vst.msk [vmem:[%s3228_s18] sm:$0xf] %vm993_vm14, %v1891_v33  ;;  %v1893_v40 = vsel %vm993_vm14, %v1891_v33, 0.0  ;;  %v1901_v41 = vmul.f32 %v1891_v33, %v1891_v33  ;;  %v2604_v42 = vpop.f32.mrb[27].mxu1 }
 0x4e4   :  { %v1999_v44 = vpop.f32.mrb[28].mxu0  ;;  %v1894_v43 = vrot.slane %v1893_v40, 4 }
 0x4e5   :  { %v1902_v39 = vsel %vm993_vm14, %v1901_v41, 0.0  ;;  %v2005_v47 = vadd.f32 %v1999_v44, %v1959_v31  ;;  %v2611_v45 = vpop.f32.mrb[29].mxu0 }
 0x4e6   :  { %v2002_v46 = vpop.f32.mrb[30].mxu0  ;;  %v1903_v48 = vrot.slane %v1902_v39, 4  ;;  %v1895_v52 = vadd.f32 %v1894_v43, %v1893_v40 }
 0x4e7   :  { %v2612_v53 = vpop.f32.mrb[31].mxu0 }
 0x4e8   :  { %v2045_v62 = vpop.f32.mrb[28].mxu1  ;;  %v1904_v57 = vadd.f32 %v1903_v48, %v1902_v39  ;;  %v1896_v59 = vrot.slane %v1895_v52, 2 }
 0x4e9   :  { %v2051_v50 = vadd.f32 %v2045_v62, %v2005_v47  ;;  %v2619_v51 = vpop.f32.mrb[29].mxu1 }
 0x4ea   :  { %v2048_v54 = vpop.f32.mrb[30].mxu1  ;;  %v1905_v63 = vrot.slane %v1904_v57, 2  ;;  %v1897_v2 = vadd.f32 %v1896_v59, %v1895_v52 }
 0x4eb   :  { %v2053_v55 = vadd.f32 %v2052_v49, %v2051_v50  ;;  %v2620_v56 = vpop.f32.mrb[31].mxu1 }
 0x4ec   :  { %v1906_v5 = vadd.f32 %v1905_v63, %v1904_v57  ;;  %v1898_v8 = vrot.slane %v1897_v2, 1 }
 0x4ed   :  { %v2054_v58 = vadd.f32 %v2053_v55, %v1890_v15 }
 0x4ee   :  { %v1907_v13 = vrot.slane %v1906_v5, 1  ;;  %v1899_v14 = vadd.f32 %v1898_v8, %v1897_v2 }
 0x4ef   :  { %2055 = vst.msk [vmem:[%s3228_s18 + $0x4] sm:$0xf] %vm993_vm14, %v2054_v58  ;;  %v2056_v60 = vsel %vm993_vm14, %v2054_v58, 0.0  ;;  %v2064_v61 = vmul.f32 %v2054_v58, %v2054_v58 }
 0x4f0   :  { %v2057_v1 = vrot.slane %v2056_v60, 4  ;;  %v1908_v19 = vadd.f32 %v1907_v13, %v1906_v5 }
 0x4f1   :  { %v2065_v16 = vsel %vm993_vm14, %v2064_v61, 0.0 }
 0x4f2   :  { %v2058_v3 = vadd.f32 %v2057_v1, %v2056_v60  ;;  %v2066_v4 = vrot.slane %v2065_v16, 4 }
 0x4f4   :  { %v2059_v6 = vrot.slane %v2058_v3, 2  ;;  %v2067_v7 = vadd.f32 %v2066_v4, %v2065_v16 }
 0x4f6   :  { %v2060_v9 = vadd.f32 %v2059_v6, %v2058_v3  ;;  %v2068_v10 = vrot.slane %v2067_v7, 2 }
 0x4f8   :  { %v2061_v11 = vrot.slane %v2060_v9, 1  ;;  %v2069_v12 = vadd.f32 %v2068_v10, %v2067_v7 }
 0x4fa   :  { %v2062_v17 = vadd.f32 %v2061_v11, %v2060_v9  ;;  %v2070_v18 = vrot.slane %v2069_v12, 1 }
 0x4fc   :  { %v2063_v34 = vadd.f32 %v2062_v17, %v1899_v14  ;;  %v2071_v20 = vadd.f32 %v2070_v18, %v2069_v12 }
 0x4fe   :  { %2630 = vmatmul.mubr.msk.f32.vlgmr.msra.gmra.mrb[18].mxu0 %vm344_vm3, %v2063_v34  ;;  %v2072_v21 = vadd.f32 %v2071_v20, %v1908_v19 }
 0x500   :  { %2641 = vmatmul.mubr.msk.f32.vlgmr.msra.gmra.mrb[18].mxu1 %vm344_vm3, %v2072_v21 }
 0x5d1   :  { %v2142_v35 = vpop.f32.mrb[18].mxu0 }
 0x5d2   :  { %2147 = vst.msk [vmem:[%s3229_s19] sm:$0x1] %vm2146_vm1, %v2142_v35  ;;  %v2631_v22 = vpop.f32.mrb[19].mxu0 }
 0x5d3   :  { %v2217_v0 = vpop.f32.mrb[18].mxu1 }
 0x5d4   :  { %2221 = vst.msk [vmem:[%s3229_s19 + $0x1] sm:$0x1] %vm2146_vm1, %v2217_v0  ;;  %v2642_v23 = vpop.f32.mrb[19].mxu1 }

// kernel: tile.48
= control target key start
LH: loop header
LB: loop body
LE: loop exit
PB: predicated region body
PF: predicated region fallthrough
CT: control target
= control target key end

     0   :  { %s22_s0 = inlined_call_operand.vmem [shape: f32[16], index: 0, kind: input, shape index: {}]   ;;  %s23_s1 = inlined_call_operand.vmem [shape: f32[2,16], index: 1, kind: output, shape index: {}]  }
   0x1   :  { %v4_v0 = vld [vmem:[%s22_s0] ss:$0 sm:$0xff] }
   0x2   :  { %5 = vst [vmem:[%s23_s1] sm:$0x3] %v4_v0 }

// kernel: tile.49
= control target key start
LH: loop header
LB: loop body
LE: loop exit
PB: predicated region body
PF: predicated region fallthrough
CT: control target
= control target key end

     0   :  { %vm7_vm0 = vcmask 130048   ;;  %vm13_vm1 = vcmask 261248   ;;  %s39_s0 = inlined_call_operand.vmem [shape: f32[2,16], index: 0, kind: input, shape index: {}]   ;;  %s40_s1 = inlined_call_operand.vmem [shape: f32[1,32], index: 1, kind: output, shape index: {}]  }
   0x1   :  { %v4_v0 = vld [vmem:[%s39_s0] sm:$0x3]  ;;  %s22_s0 = smov 16  }
   0x2   :  { %5 = vst [vmem:[#allocation1] sm:$0x3] %v4_v0 }
   0x9   :  { %v10_v1 = vld [vmem:[#allocation1 + $0x1] sm:$0x1]   ;;  %v6_v2 = vld [vmem:[#allocation1] sm:$0x1]  }
   0xa   :  { %11 = vrot.lane.b32.xlu0 %v10_v1, %s22_s0  ;;  %8 = vst.msk [vmem:[#allocation0] sm:$0x1] %vm7_vm0, %v6_v2  }
  0x7c   :  { %v12_v3 = vpop.permute.xlu0 %11  }
  0x7d   :  { %14 = vst.msk [vmem:[#allocation0] sm:$0x1] %vm13_vm1, %v12_v3  }
  0x84   :  { %v18_v4 = vld [vmem:[#allocation0] sm:$0x1] }
  0x85   :  { %20 = vst [vmem:[%s40_s1] sm:$0x1] %v18_v4 }

// kernel: res_u_body_forward.5
= control target key start
LH: loop header
LB: loop body
LE: loop exit
PB: predicated region body
PF: predicated region fallthrough
CT: control target
= control target key end

     0   :  { %s3223_s0 = inlined_call_operand.vmem [shape: f32[6,32], index: 0, kind: input, shape index: {}]   ;;  %s3224_s1 = inlined_call_operand.vmem [shape: f32[6,32], index: 1, kind: input, shape index: {}]   ;;  %s3225_s2 = inlined_call_operand.vmem [shape: f32[2,8], index: 2, kind: input, shape index: {}]   ;;  %s3226_s3 = inlined_call_operand.vmem [shape: f32[1,8], index: 3, kind: input, shape index: {}]   ;;  %s3227_s4 = inlined_call_operand.vmem [shape: f32[1,8], index: 4, kind: input, shape index: {}]   ;;  %s3228_s5 = inlined_call_operand.vmem [shape: f32[8,32], index: 5, kind: input, shape index: {}]   ;;  %s3229_s6 = inlined_call_operand.vmem [shape: bf16[3,32,32], index: 6, kind: input, shape index: {}]   ;;  %s3230_s7 = inlined_call_operand.vmem [shape: f32[1,32], index: 7, kind: input, shape index: {}]   ;;  %s3231_s8 = inlined_call_operand.vmem [shape: bf16[3,32,32], index: 8, kind: input, shape index: {}]   ;;  %s3232_s9 = inlined_call_operand.vmem [shape: f32[1,32], index: 9, kind: input, shape index: {}]   ;;  %s3233_s10 = inlined_call_operand.vmem [shape: f32[32,16], index: 10, kind: input, shape index: {}]   ;;  %s3234_s11 = inlined_call_operand.vmem [shape: f32[16,32], index: 11, kind: input, shape index: {}]   ;;  %s3235_s12 = inlined_call_operand.vmem [shape: f32[1,16], index: 12, kind: input, shape index: {}]   ;;  %s3236_s13 = inlined_call_operand.vmem [shape: f32[1,16], index: 13, kind: input, shape index: {}]   ;;  %s3237_s14 = inlined_call_operand.vmem [shape: f32[1,16], index: 14, kind: input, shape index: {}]   ;;  %s3238_s15 = inlined_call_operand.vmem [shape: f32[1,16], index: 15, kind: input, shape index: {}]   ;;  %s3239_s16 = inlined_call_operand.vmem [shape: bf16[3,32,32], index: 16, kind: input, shape index: {}]   ;;  %s3240_s17 = inlined_call_operand.vmem [shape: f32[1,32], index: 17, kind: input, shape index: {}]   ;;  %s3241_s18 = inlined_call_operand.vmem [shape: f32[4,32], index: 18, kind: output, shape index: {0}]   ;;  %s3242_s19 = inlined_call_operand.hbm [shape: f32[2,16], index: 19, kind: output, shape index: {1}]  }
   0x1   :  { %3244 = sst [smem:[#allocation6_spill]] %s3223_s0 }
   0x2   :  { %3245 = sst [smem:[#allocation7_spill]] %s3224_s1 }
   0x3   :  { %3246 = sst [smem:[#allocation8_spill]] %s3225_s2 }
   0x4   :  { %3247 = sst [smem:[#allocation9_spill]] %s3226_s3 }
   0x5   :  { %v79_v0 = vld [vmem:[%s3228_s5] sm:$0xff]  ;;  %s3248_s1 = sld [smem:[#allocation8_spill]]  ;;  %v2756_v2 = vmov 0.0   ;;  %vm2757_vm0 = vmmov 0  }
   0x6   :  { %2372 = vmatprep.subr.mxu0 %v2756_v2  ;;  %2374 = vmatprep.mubr.msk.f32.mxu0 %vm2757_vm0, %v2756_v2 }
   0x7   :  { %2373 = vmatpush3.msra.mxu0 %v79_v0  ;;  %2377 = vmatprep.subr.mxu1 %v2756_v2 }
   0x8   :  { %2378 = vmatpush3.msra.mxu1 %v79_v0  ;;  %2379 = vmatprep.mubr.msk.f32.mxu1 %vm2757_vm0, %v2756_v2 }
   0x9   :  { %2382 = vmatprep.subr.bf16.mxu0 %v2756_v2  ;;  %2390 = vmatprep.subr.bf16.mxu1 %v2756_v2 }
   0xb   :  { %v65_v1 = vld [vmem:[%s3248_s1] sm:$0x1]  ;;  %v68_v4 = vld [vmem:[%s3248_s1 + $0x1] sm:$0x1] }
   0xc   :  { %v67_v3 = vmul.f32 0.03125, %v65_v1  ;;  %v69_v5 = vmul.f32 0.03125, %v68_v4 }
   0xe   :  { %v70_v6 = vmul.f32 %v67_v3, %v67_v3 }
  0x10   :  { %v71_v7 = vsub.f32 %v69_v5, %v70_v6 }
  0x12   :  { %v73_v8 = vadd.f32 1e-05, %v71_v7 }
  0x14   :  { %2726 = vrsqrt.f32 %v73_v8 }
  0x15   :  { %25 = vsyncpa [#allocation4], 0  ;;  %s3249_s24 = sld [smem:[#allocation9_spill]]  ;;  %vm80_vm1 = vcmask 64512   ;;  %v76_v12 = vld [vmem:[%s3227_s4] sm:$0x1]  ;;  %v227_v38 = vlaneseq }
  0x16   :  { %v2890_v15 = vld [vmem:[%s3229_s6] sm:$0xff]   ;;  %v2897_v16 = vld [vmem:[%s3229_s6 + $0x8] sm:$0xff]   ;;  %s3250_s22 = sld [smem:[#allocation6_spill]]  ;;  %v2716_v21 = vld [vmem:[%s3231_s8 + $0x10] sm:$0xff]   ;;  %vm316_vm2 = vcmask 261120   ;;  %s3251_s26 = sld [smem:[#allocation7_spill]] }
  0x17   :  { %v2714_v17 = vld [vmem:[%s3231_s8] sm:$0xff]   ;;  %v2715_v18 = vld [vmem:[%s3231_s8 + $0x8] sm:$0xff]   ;;  %v2717_v22 = vld [vmem:[%s3231_s8 + $0x18] sm:$0xff]   ;;  %v228_v40 = vshrl.u32 %v227_v38, 7  ;;  %vm950_vm15 = vcmask 254976  }
  0x18   :  { %v2718_v25 = vld [vmem:[%s3231_s8 + $0x20] sm:$0xff]   ;;  %v2719_v27 = vld [vmem:[%s3231_s8 + $0x28] sm:$0xff]   ;;  %v2710_v55 = vld [vmem:[%s3229_s6 + $0x10] sm:$0xff]  }
  0x19   :  { %v2955_v41 = vsub.s32 0, %v228_v40  ;;  %vm240_vm3 = vcmp.ge.s32.totalorder %v228_v40, 1  ;;  %vm241_vm4 = vcmp.lt.s32.totalorder %v228_v40, 3  ;;  %vm243_vm5 = vcmp.ge.s32.totalorder %v228_v40, 4  ;;  %v2711_v57 = vld [vmem:[%s3229_s6 + $0x18] sm:$0xff]   ;;  %v2712_v60 = vld [vmem:[%s3229_s6 + $0x20] sm:$0xff]  }
  0x1a   :  { %vm244_vm6 = vcmp.lt.s32.totalorder %v228_v40, 6  ;;  %vm242_vm7 = vmand %vm240_vm3, %vm241_vm4  ;;  %vm254_vm10 = vcmp.ge.s32.totalorder %v228_v40, 3  ;;  %vm255_vm11 = vcmp.lt.s32.totalorder %v228_v40, 5  ;;  %vm252_vm12 = vcmp.lt.s32.totalorder %v228_v40, 2  ;;  %v2713_v62 = vld [vmem:[%s3229_s6 + $0x28] sm:$0xff]  }
  0x1b   :  { %v72_v9 = vld [vmem:[%s3249_s24] sm:$0x1]  ;;  %vm245_vm8 = vmand %vm243_vm5, %vm244_vm6  ;;  %vm1642_vm3 = vcmask 253952  }
  0x1c   :  { %v63_v19 = vld [vmem:[%s3250_s22] sm:$0x3f]  ;;  %vm246_vm9 = vmor %vm242_vm7, %vm245_vm8  ;;  %1643 = vst.msk [vmem:[#allocation2] sm:$0x1] %vm1642_vm3, %v2756_v2 }
  0x1d   :  { %v2911_v20 = vpack.c.bf16 %v63_v19, %v63_v19  ;;  %v64_v23 = vld [vmem:[%s3251_s26] sm:$0x3f]  ;;  %vm256_vm13 = vmand %vm254_vm10, %vm255_vm11  ;;  %1644 = vst.msk [vmem:[#allocation2 + $0x3] sm:$0x1] %vm1642_vm3, %v2756_v2 }
  0x1e   :  { %v2727_v10 = vpop.eup %2726  ;;  %v475_v24 = vpack.c.bf16 %v64_v23, %v64_v23  ;;  %vm257_vm14 = vmor %vm252_vm12, %vm256_vm13 }
  0x1f   :  { %v75_v11 = vmul.f32 %v2727_v10, %v72_v9  ;;  %v596_v26 = vshll.u32 %v2911_v20, 16  ;;  %v594_v28 = vshrl.u32 %v2911_v20, 16  ;;  %v899_v47 = vrot.slane %v2911_v20, 2 }
  0x20   :  { %v801_v34 = vshrl.u32 %v475_v24, 16  ;;  %v804_v35 = vshll.u32 %v475_v24, 16 }
  0x21   :  { %2375 = vmatmul.mubr.msk.f32.vlgmr.msra.gmra.mrb[0].mxu0 %vm80_vm1, %v75_v11  ;;  %v77_v13 = vmul.f32 %v75_v11, %v67_v3  ;;  %v598_v29 = vrot.slane %v596_v26, 1  ;;  %v703_v31 = vrot.slane %v594_v28, 1  ;;  %v704_v32 = vrot.slane %v596_v26, 2 }
  0x22   :  { %2386 = vmatprep.mubr.msk.bf16.mxu0 %vm2757_vm0, %v2756_v2  ;;  %2383 = vmatpush3.bf16.msra.mxu0 %v2890_v15  ;;  %v803_v36 = vrot.slane %v801_v34, 1  ;;  %v806_v37 = vrot.slane %v804_v35, 2 }
  0x23   :  { %v78_v14 = vsub.f32 %v76_v12, %v77_v13  ;;  %2384 = vmatprep.subr.bf16.mxu0 %v2756_v2  ;;  %v599_v30 = vor.u32 %v598_v29, %v594_v28  ;;  %v705_v33 = vor.u32 %v704_v32, %v703_v31  ;;  %v944_v13 = vld [vmem:[%s3233_s10] sm:$0xff] }
  0x24   :  { %v807_v39 = vor.u32 %v806_v37, %v803_v36  ;;  %v2215_v32 = vld [vmem:[%s3230_s7] ss:$0 sm:$0xff] }
  0x25   :  { %2380 = vmatmul.mubr.msk.f32.vlgmr.msra.gmra.mrb[0].mxu1 %vm80_vm1, %v78_v14  ;;  %v945_v14 = vld [vmem:[%s3233_s10 + $0x8] sm:$0xff]  ;;  %vm1177_vm1 = vcmask 130048  }
  0x26   :  { %2394 = vmatprep.mubr.msk.bf16.mxu1 %vm2757_vm0, %v2756_v2  ;;  %2385 = vmatpush3.bf16.msra.mxu0 %v2897_v16 }
  0x27   :  { %2398 = vmatprep.subr.bf16.mxu0 %v2756_v2  ;;  %2391 = vmatpush3.bf16.msra.mxu1 %v2714_v17 }
  0x28   :  { %2392 = vmatprep.subr.bf16.mxu1 %v2756_v2 }
  0x2b   :  { %2393 = vmatpush3.bf16.msra.mxu1 %v2715_v18 }
  0x2c   :  { %2406 = vmatprep.subr.bf16.mxu1 %v2756_v2 }
  0x2e   :  { %2395 = vmatmul.mubr.msk.bf16.vlgmr.msra.gmra.mrb[4].mxu1 %vm316_vm2, %v2911_v20 }
  0x2f   :  { %2407 = vmatpush3.bf16.msra.mxu1 %v2716_v21  ;;  %2410 = vmatprep.mubr.msk.bf16.mxu1 %vm2757_vm0, %v2756_v2 }
  0x30   :  { %2408 = vmatprep.subr.bf16.mxu1 %v2756_v2 }
  0x33   :  { %2409 = vmatpush3.bf16.msra.mxu1 %v2717_v22 }
  0x34   :  { %2422 = vmatprep.subr.bf16.mxu1 %v2756_v2 }
  0x3a   :  { %2411 = vmatmul.mubr.msk.bf16.vlgmr.msra.gmra.mrb[4].mxu1 %vm316_vm2, %v475_v24 }
  0x3b   :  { %2423 = vmatpush3.bf16.msra.mxu1 %v2718_v25  ;;  %2426 = vmatprep.mubr.msk.bf16.mxu1 %vm2757_vm0, %v2756_v2 }
  0x3c   :  { %2424 = vmatprep.subr.bf16.mxu1 %v2756_v2 }
  0x3f   :  { %2425 = vmatpush3.bf16.msra.mxu1 %v2719_v27 }
  0x40   :  { %2438 = vmatprep.subr.bf16.mxu1 %v2756_v2 }
  0x46   :  { %2427 = vmatmul.mubr.msk.bf16.vlgmr.msra.gmra.mrb[4].mxu1 %vm316_vm2, %v599_v30 }
  0x47   :  { %2439 = vmatpush3.bf16.msra.mxu1 %v2714_v17  ;;  %2442 = vmatprep.mubr.msk.bf16.mxu1 %vm2757_vm0, %v2756_v2  ;;  %v946_v17 = vld [vmem:[%s3233_s10 + $0x10] sm:$0xff] }
  0x48   :  { %2440 = vmatprep.subr.bf16.mxu1 %v2756_v2 }
  0x4b   :  { %2441 = vmatpush3.bf16.msra.mxu1 %v2715_v18  ;;  %v947_v18 = vld [vmem:[%s3233_s10 + $0x18] sm:$0xff] }
  0x4c   :  { %2454 = vmatprep.subr.bf16.mxu1 %v2756_v2 }
  0x4e   :  { %2443 = vmatmul.mubr.msk.bf16.vlgmr.msra.gmra.mrb[8].mxu1 %vm316_vm2, %v705_v33 }
  0x4f   :  { %2455 = vmatpush3.bf16.msra.mxu1 %v2716_v21  ;;  %2458 = vmatprep.mubr.msk.bf16.mxu1 %vm2757_vm0, %v2756_v2 }
  0x50   :  { %2456 = vmatprep.subr.bf16.mxu1 %v2756_v2 }
  0x53   :  { %2457 = vmatpush3.bf16.msra.mxu1 %v2717_v22 }
  0x54   :  { %2470 = vmatprep.subr.bf16.mxu1 %v2756_v2 }
  0x5a   :  { %2459 = vmatmul.mubr.msk.bf16.vlgmr.msra.gmra.mrb[8].mxu1 %vm316_vm2, %v807_v39 }
  0x5b   :  { %2471 = vmatpush3.bf16.msra.mxu1 %v2718_v25  ;;  %2474 = vmatprep.mubr.msk.bf16.mxu1 %vm2757_vm0, %v2756_v2 }
  0x5c   :  { %2472 = vmatprep.subr.bf16.mxu1 %v2756_v2 }
  0x5f   :  { %2473 = vmatpush3.bf16.msra.mxu1 %v2719_v27 }
  0x66   :  { %2475 = vmatmul.mubr.msk.bf16.vlgmr.msra.gmra.mrb[8].mxu1 %vm316_vm2, %v899_v47 }
  0x67   :  { %2497 = vmatprep.mubr.msk.f32.mxu1 %vm2757_vm0, %v2756_v2 }
  0xf4   :  { %v150_v42 = vpop.f32.mrb[0].mxu0 }
  0xf5   :  { %v230_v43 = vrot.slane %v150_v42, %v2955_v41  ;;  %v2376_v44 = vpop.f32.mrb[1].mxu0 }
  0xf7   :  { %v231_v45 = vmul.f32 %v230_v43, %v63_v19  ;;  %v248_v46 = vmul.f32 %v230_v43, %v64_v23  ;;  %v3025_v19 = vpack.c.bf16 %v947_v18, %v946_v17 }
  0xf8   :  { %v223_v48 = vpop.f32.mrb[0].mxu1 }
  0xf9   :  { %v235_v49 = vrot.slane %v223_v48, %v2955_v41  ;;  %v2381_v50 = vpop.f32.mrb[1].mxu1 }
  0xfb   :  { %v236_v51 = vadd.f32 %v235_v49, %v231_v45  ;;  %v249_v52 = vadd.f32 %v248_v46, %v235_v49 }
  0xfd   :  { %v237_v53 = vmax.f32 %v236_v51, 0.0  ;;  %v250_v58 = vmax.f32 %v249_v52, 0.0 }
  0xff   :  { %v247_v54 = vsel %vm246_vm9, %v237_v53, 0.0  ;;  %v258_v59 = vsel %vm257_vm14, %v250_v58, 0.0 }
 0x100   :  { %v303_v56 = vpack.c.bf16 %v247_v54, %v247_v54  ;;  %v418_v61 = vpack.c.bf16 %v258_v59, %v258_v59 }
 0x102   :  { %2387 = vmatmul.mubr.msk.bf16.vlgmr.msra.gmra.mrb[4].mxu0 %vm316_vm2, %v303_v56  ;;  %v534_v63 = vshll.u32 %v303_v56, 16  ;;  %v532_v1 = vshrl.u32 %v303_v56, 16  ;;  %v750_v7 = vshrl.u32 %v418_v61, 16  ;;  %v753_v8 = vshll.u32 %v418_v61, 16 }
 0x103   :  { %2399 = vmatpush3.bf16.msra.mxu0 %v2710_v55  ;;  %2402 = vmatprep.mubr.msk.bf16.mxu0 %vm2757_vm0, %v2756_v2  ;;  %v853_v12 = vrot.slane %v303_v56, 2 }
 0x104   :  { %2400 = vmatprep.subr.bf16.mxu0 %v2756_v2  ;;  %v536_v0 = vrot.slane %v534_v63, 1  ;;  %v656_v4 = vrot.slane %v532_v1, 1  ;;  %v657_v5 = vrot.slane %v534_v63, 2  ;;  %v752_v9 = vrot.slane %v750_v7, 1 }
 0x105   :  { %v755_v10 = vrot.slane %v753_v8, 2 }
 0x106   :  { %v537_v3 = vor.u32 %v536_v0, %v532_v1  ;;  %v658_v6 = vor.u32 %v657_v5, %v656_v4 }
 0x107   :  { %2401 = vmatpush3.bf16.msra.mxu0 %v2711_v57  ;;  %v756_v11 = vor.u32 %v755_v10, %v752_v9  ;;  %v948_v9 = vld [vmem:[%s3234_s11] sm:$0xff]  ;;  %v949_v10 = vld [vmem:[%s3234_s11 + $0x8] sm:$0xff] }
 0x108   :  { %2414 = vmatprep.subr.bf16.mxu0 %v2756_v2 }
 0x10e   :  { %2403 = vmatmul.mubr.msk.bf16.vlgmr.msra.gmra.mrb[4].mxu0 %vm316_vm2, %v418_v61 }
 0x10f   :  { %2415 = vmatpush3.bf16.msra.mxu0 %v2712_v60  ;;  %2418 = vmatprep.mubr.msk.bf16.mxu0 %vm2757_vm0, %v2756_v2 }
 0x110   :  { %2416 = vmatprep.subr.bf16.mxu0 %v2756_v2 }
 0x113   :  { %2417 = vmatpush3.bf16.msra.mxu0 %v2713_v62 }
 0x114   :  { %2430 = vmatprep.subr.bf16.mxu0 %v2756_v2 }
 0x119   :  { %v3031_v20 = vpop.f32.mrb[4].mxu1 }
 0x11a   :  { %2419 = vmatmul.mubr.msk.bf16.vlgmr.msra.gmra.mrb[4].mxu0 %vm316_vm2, %v537_v3  ;;  %v2428_v21 = vpop.f32.mrb[5].mxu1 }
 0x11b   :  { %2431 = vmatpush3.bf16.msra.mxu0 %v2890_v15  ;;  %2434 = vmatprep.mubr.msk.bf16.mxu0 %vm2757_vm0, %v2756_v2  ;;  %v3011_v15 = vpack.c.bf16 %v945_v14, %v944_v13  ;;  %v652_v22 = vpop.f32.mrb[6].mxu1 }
 0x11c   :  { %2432 = vmatprep.subr.bf16.mxu0 %v2756_v2  ;;  %v2429_v23 = vpop.f32.mrb[7].mxu1 }
 0x11f   :  { %2433 = vmatpush3.bf16.msra.mxu0 %v2897_v16  ;;  %v2758_v16 = vmov 0.0|0.0  }
 0x120   :  { %2446 = vmatprep.subr.bf16.mxu0 %v2756_v2  ;;  %2626 = vmatprep.subr.bf16.mxu1 %v2758_v16 }
 0x121   :  { %2628 = vmatpush3.bf16.msra.mxu1 %v3011_v15 }
 0x122   :  { %2435 = vmatmul.mubr.msk.bf16.vlgmr.msra.gmra.mrb[8].mxu0 %vm316_vm2, %v658_v6  ;;  %2629 = vmatprep.subr.bf16.mxu1 %v2758_v16 }
 0x123   :  { %2447 = vmatpush3.bf16.msra.mxu0 %v2710_v55  ;;  %2450 = vmatprep.mubr.msk.bf16.mxu0 %vm2757_vm0, %v2756_v2 }
 0x124   :  { %2448 = vmatprep.subr.bf16.mxu0 %v2756_v2 }
 0x125   :  { %2631 = vmatpush3.bf16.msra.mxu1 %v3025_v19 }
 0x126   :  { %2635 = vmatprep.subr.bf16.mxu1 %v2758_v16 }
 0x127   :  { %2449 = vmatpush3.bf16.msra.mxu0 %v2711_v57 }
 0x128   :  { %2462 = vmatprep.subr.bf16.mxu0 %v2756_v2 }
 0x12e   :  { %2451 = vmatmul.mubr.msk.bf16.vlgmr.msra.gmra.mrb[8].mxu0 %vm316_vm2, %v756_v11  ;;  %v3062_v11 = vpack.c.bf16 %v949_v10, %v948_v9 }
 0x12f   :  { %2463 = vmatpush3.bf16.msra.mxu0 %v2712_v60  ;;  %2466 = vmatprep.mubr.msk.bf16.mxu0 %vm2757_vm0, %v2756_v2 }
 0x130   :  { %2464 = vmatprep.subr.bf16.mxu0 %v2756_v2 }
 0x133   :  { %2465 = vmatpush3.bf16.msra.mxu0 %v2713_v62 }
 0x134   :  { %2620 = vmatprep.subr.bf16.mxu0 %v2758_v16 }
 0x139   :  { %v937_v24 = vpop.f32.mrb[8].mxu1 }
 0x13a   :  { %2467 = vmatmul.mubr.msk.bf16.vlgmr.msra.gmra.mrb[8].mxu0 %vm316_vm2, %v853_v12  ;;  %v2476_v25 = vpop.f32.mrb[9].mxu1  ;;  %v2216_v12 = vld [vmem:[%s3232_s9] ss:$0 sm:$0xff] }
 0x13b   :  { %2486 = vmatprep.mubr.msk.f32.mxu0 %vm2757_vm0, %v2756_v2  ;;  %2622 = vmatpush3.bf16.msra.mxu0 %v3011_v15  ;;  %v940_v26 = vpop.f32.mrb[10].mxu1  ;;  %v3072_v13 = vadd.f32 %v2216_v12, %v3031_v20  ;;  %v3074_v14 = vadd.f32 %v2216_v12, %v937_v24 }
 0x13c   :  { %2623 = vmatprep.subr.bf16.mxu0 %v2758_v16  ;;  %v2477_v27 = vpop.f32.mrb[11].mxu1 }
 0x13d   :  { %v968_v17 = vsel %vm950_vm15, %v3072_v13, 0.0  ;;  %v976_v21 = vmul.f32 %v3072_v13, %v3072_v13  ;;  %v1002_v22 = vsel %vm950_vm15, %v3074_v14, 0.0  ;;  %v1010_v23 = vmul.f32 %v3074_v14, %v3074_v14 }
 0x13e   :  { %v969_v20 = vrot.slane %v968_v17, 4 }
 0x13f   :  { %2625 = vmatpush3.bf16.msra.mxu0 %v3025_v19 }
 0x140   :  { %2632 = vmatprep.subr.bf16.mxu0 %v2758_v16 }
 0x1ed   :  { %v587_v28 = vpop.f32.mrb[4].mxu0 }
 0x1ee   :  { %v2420_v29 = vpop.f32.mrb[5].mxu0  ;;  %v3036_v33 = vadd.f32 %v2215_v32, %v587_v28 }
 0x1ef   :  { %v590_v30 = vpop.f32.mrb[6].mxu0 }
 0x1f0   :  { %v2421_v31 = vpop.f32.mrb[7].mxu0  ;;  %v959_v34 = vmul.f32 %v3036_v33, %v3036_v33  ;;  %v951_v35 = vsel %vm950_vm15, %v3036_v33, 0.0  ;;  %v1003_v30 = vrot.slane %v1002_v22, 4 }
 0x1f1   :  { %v952_v37 = vrot.slane %v951_v35, 4  ;;  %v977_v31 = vsel %vm950_vm15, %v976_v21, 0.0 }
 0x1f2   :  { %v960_v36 = vsel %vm950_vm15, %v959_v34, 0.0 }
 0x1f3   :  { %v961_v38 = vrot.slane %v960_v36, 4  ;;  %v953_v39 = vadd.f32 %v952_v37, %v951_v35  ;;  %v970_v35 = vadd.f32 %v969_v20, %v968_v17  ;;  %v978_v37 = vrot.slane %v977_v31, 4 }
 0x1f5   :  { %v962_v40 = vadd.f32 %v961_v38, %v960_v36  ;;  %v954_v45 = vrot.slane %v953_v39, 2  ;;  %v1004_v38 = vadd.f32 %v1003_v30, %v1002_v22 }
 0x1f7   :  { %v963_v50 = vrot.slane %v962_v40, 2  ;;  %v955_v53 = vadd.f32 %v954_v45, %v953_v39 }
 0x1f9   :  { %v964_v56 = vadd.f32 %v963_v50, %v962_v40  ;;  %v956_v59 = vrot.slane %v955_v53, 1  ;;  %v971_v40 = vrot.slane %v970_v35, 2  ;;  %v1019_v50 = vld [vmem:[%s3235_s12] sm:$0x1] }
 0x1fb   :  { %v965_v62 = vrot.slane %v964_v56, 1  ;;  %v957_v1 = vadd.f32 %v956_v59, %v955_v53 }
 0x1fd   :  { %v966_v5 = vadd.f32 %v965_v62, %v964_v56 }
 0x20d   :  { %v891_v42 = vpop.f32.mrb[8].mxu0 }
 0x20e   :  { %v3043_v43 = vadd.f32 %v2215_v32, %v891_v42  ;;  %v2468_v44 = vpop.f32.mrb[9].mxu0  ;;  %v1011_v32 = vsel %vm950_vm15, %v1010_v23, 0.0  ;;  %v979_v42 = vadd.f32 %v978_v37, %v977_v31  ;;  %v1325_v37 = vld [vmem:[%s3238_s15] sm:$0x1] }
 0x20f   :  { %v894_v46 = vpop.f32.mrb[10].mxu0  ;;  %v1012_v39 = vrot.slane %v1011_v32, 4  ;;  %v1005_v44 = vrot.slane %v1004_v38, 2 }
 0x210   :  { %v985_v47 = vsel %vm950_vm15, %v3043_v43, 0.0  ;;  %v993_v48 = vmul.f32 %v3043_v43, %v3043_v43  ;;  %v2469_v49 = vpop.f32.mrb[11].mxu0  ;;  %v972_v46 = vadd.f32 %v971_v40, %v970_v35  ;;  %v2720_v35 = vld [vmem:[%s3239_s16] sm:$0xff]   ;;  %v2722_v40 = vld [vmem:[%s3239_s16 + $0x10] sm:$0xff]  }
 0x211   :  { %v986_v51 = vrot.slane %v985_v47, 4  ;;  %v1013_v45 = vadd.f32 %v1012_v39, %v1011_v32  ;;  %v1324_v32 = vld [vmem:[%s3237_s14] sm:$0x1]  ;;  %v2721_v39 = vld [vmem:[%s3239_s16 + $0x8] sm:$0xff]  }
 0x212   :  { %v994_v52 = vsel %vm950_vm15, %v993_v48, 0.0  ;;  %v1006_v48 = vadd.f32 %v1005_v44, %v1004_v38  ;;  %v2723_v44 = vld [vmem:[%s3239_s16 + $0x18] sm:$0xff]  }
 0x213   :  { %v987_v54 = vadd.f32 %v986_v51, %v985_v47  ;;  %v995_v55 = vrot.slane %v994_v52, 4  ;;  %v980_v47 = vrot.slane %v979_v42, 2  ;;  %v1014_v49 = vrot.slane %v1013_v45, 2 }
 0x215   :  { %v988_v57 = vrot.slane %v987_v54, 2  ;;  %v996_v58 = vadd.f32 %v995_v55, %v994_v52  ;;  %v973_v52 = vrot.slane %v972_v46, 1  ;;  %v981_v53 = vadd.f32 %v980_v47, %v979_v42  ;;  %v2725_v47 = vld [vmem:[%s3239_s16 + $0x28] sm:$0xff]  }
 0x216   :  { %v1015_v55 = vadd.f32 %v1014_v49, %v1013_v45  ;;  %v2724_v45 = vld [vmem:[%s3239_s16 + $0x20] sm:$0xff]  }
 0x217   :  { %v989_v60 = vadd.f32 %v988_v57, %v987_v54  ;;  %v997_v61 = vrot.slane %v996_v58, 2  ;;  %v1007_v54 = vrot.slane %v1006_v48, 1  ;;  %v1020_v57 = vld [vmem:[%s3236_s13] sm:$0x1]  ;;  %v974_v59 = vadd.f32 %v973_v52, %v972_v46 }
 0x218   :  { %v1016_v62 = vrot.slane %v1015_v55, 1 }
 0x219   :  { %v990_v63 = vrot.slane %v989_v60, 1  ;;  %v998_v0 = vadd.f32 %v997_v61, %v996_v58  ;;  %v1008_v61 = vadd.f32 %v1007_v54, %v1006_v48 }
 0x21b   :  { %v991_v3 = vadd.f32 %v990_v63, %v989_v60  ;;  %v999_v4 = vrot.slane %v998_v0, 1  ;;  %v982_v60 = vrot.slane %v981_v53, 1 }
 0x21d   :  { %v1000_v6 = vadd.f32 %v999_v4, %v998_v0  ;;  %v992_v7 = vadd.f32 %v991_v3, %v957_v1  ;;  %v983_v0 = vadd.f32 %v982_v60, %v981_v53  ;;  %v1017_v1 = vadd.f32 %v1016_v62, %v1015_v55  ;;  %v2257_v60 = vld [vmem:[%s3240_s17] ss:$0 sm:$0xff] }
 0x21e   :  { %v1009_v3 = vadd.f32 %v1008_v61, %v974_v59 }
 0x21f   :  { %2487 = vmatmul.mubr.msk.f32.vlgmr.msra.gmra.mrb[2].mxu0 %vm316_vm2, %v992_v7  ;;  %v1001_v8 = vadd.f32 %v1000_v6, %v966_v5  ;;  %v1018_v4 = vadd.f32 %v1017_v1, %v983_v0 }
 0x220   :  { %2504 = vmatprep.mubr.msk.f32.mxu0 %vm2757_vm0, %v2756_v2  ;;  %2634 = vmatpush3.bf16.msra.mxu0 %v3062_v11 }
 0x221   :  { %2498 = vmatmul.mubr.msk.f32.vlgmr.msra.gmra.mrb[2].mxu1 %vm316_vm2, %v1001_v8  ;;  %2638 = vmatprep.subr.bf16.mxu0 %v2758_v16 }
 0x222   :  { %2511 = vmatprep.mubr.msk.f32.mxu1 %vm2757_vm0, %v2756_v2  ;;  %2637 = vmatpush3.bf16.msra.mxu1 %v3062_v11 }
 0x223   :  { %2644 = vmatprep.subr.bf16.mxu1 %v2758_v16 }
 0x2f2   :  { %v1090_v18 = vpop.f32.mrb[2].mxu0 }
 0x2f3   :  { %v1095_v25 = vmul.f32 0.125, %v1090_v18  ;;  %v2488_v26 = vpop.f32.mrb[3].mxu0 }
 0x2f4   :  { %v1165_v27 = vpop.f32.mrb[2].mxu1 }
 0x2f5   :  { %v1170_v28 = vmul.f32 %v1095_v25, %v1095_v25  ;;  %v1169_v24 = vmul.f32 0.125, %v1165_v27  ;;  %v2499_v29 = vpop.f32.mrb[3].mxu1 }
 0x2f7   :  { %v1171_v34 = vsub.f32 %v1169_v24, %v1170_v28 }
 0x2f9   :  { %v1172_v36 = vadd.f32 1e-05, %v1171_v34 }
 0x2fb   :  { %2728 = vrsqrt.f32 %v1172_v36 }
 0x305   :  { %v2729_v51 = vpop.eup %2728 }
 0x306   :  { %v1174_v56 = vmul.f32 %v2729_v51, %v1019_v50 }
 0x308   :  { %2505 = vmatmul.mubr.msk.f32.vlgmr.msra.gmra.mrb[12].mxu0 %vm1177_vm1, %v1174_v56  ;;  %v1175_v58 = vmul.f32 %v1174_v56, %v1095_v25 }
 0x309   :  { %2640 = vmatpush3.bf16.msra.mxu0 %v3011_v15  ;;  %2522 = vmatprep.mubr.msk.f32.mxu0 %vm2757_vm0, %v2756_v2 }
 0x30a   :  { %2641 = vmatprep.subr.bf16.mxu0 %v2758_v16  ;;  %v1176_v63 = vsub.f32 %v1020_v57, %v1175_v58 }
 0x30c   :  { %2512 = vmatmul.mubr.msk.f32.vlgmr.msra.gmra.mrb[12].mxu1 %vm1177_vm1, %v1176_v63 }
 0x30d   :  { %2643 = vmatpush3.bf16.msra.mxu0 %v3025_v19  ;;  %2646 = vmatpush3.bf16.msra.mxu1 %v3011_v15 }
 0x30e   :  { %2647 = vmatprep.subr.bf16.mxu1 %v2758_v16  ;;  %2533 = vmatprep.mubr.msk.f32.mxu1 %vm2757_vm0, %v2756_v2 }
 0x30f   :  { %2650 = vmatprep.subr.bf16.mxu0 %v2758_v16 }
 0x310   :  { %2523 = vmatmul.mubr.msk.f32.vlgmr.msra.gmra.mrb[14].mxu0 %vm316_vm2, %v1009_v3 }
 0x311   :  { %2649 = vmatpush3.bf16.msra.mxu1 %v3025_v19  ;;  %2652 = vmatpush3.bf16.msra.mxu0 %v3062_v11 }
 0x312   :  { %2540 = vmatprep.mubr.msk.f32.mxu0 %vm2757_vm0, %v2756_v2  ;;  %2653 = vmatprep.subr.bf16.mxu1 %v2758_v16 }
 0x313   :  { %2550 = vmatprep.subr.bf16.mxu0 %v2756_v2 }
 0x314   :  { %2534 = vmatmul.mubr.msk.f32.vlgmr.msra.gmra.mrb[14].mxu1 %vm316_vm2, %v1018_v4 }
 0x315   :  { %2655 = vmatpush3.bf16.msra.mxu1 %v3062_v11  ;;  %2547 = vmatprep.mubr.msk.f32.mxu1 %vm2757_vm0, %v2756_v2 }
 0x316   :  { %2558 = vmatprep.subr.bf16.mxu1 %v2756_v2 }
 0x3db   :  { %v1247_v5 = vpop.f32.mrb[12].mxu0 }
 0x3dc   :  { %v1648_v6 = vrot.slane %v1247_v5, %v2955_v41  ;;  %v2506_v7 = vpop.f32.mrb[13].mxu0 }
 0x3de   :  { %v1649_v9 = vmul.f32 %v3036_v33, %v1648_v6  ;;  %v1867_v10 = vmul.f32 %v3043_v43, %v1648_v6 }
 0x3df   :  { %v1320_v8 = vpop.f32.mrb[12].mxu1 }
 0x3e0   :  { %v1653_v11 = vrot.slane %v1320_v8, %v2955_v41  ;;  %v2513_v12 = vpop.f32.mrb[13].mxu1 }
 0x3e2   :  { %v1654_v17 = vadd.f32 %v1653_v11, %v1649_v9  ;;  %v1868_v18 = vadd.f32 %v1867_v10, %v1653_v11 }
 0x3e3   :  { %v1395_v21 = vpop.f32.mrb[14].mxu0 }
 0x3e4   :  { %v1655_v22 = vmax.f32 %v1654_v17, 0.0  ;;  %v1399_v23 = vmul.f32 0.125, %v1395_v21  ;;  %v2524_v25 = vpop.f32.mrb[15].mxu0  ;;  %v1869_v29 = vmax.f32 %v1868_v18, 0.0 }
 0x3e6   :  { %1656 = vst.msk [vmem:[#allocation2 + $0x1] sm:$0x3] %vm950_vm15, %v1655_v22  ;;  %v1474_v27 = vmul.f32 %v1399_v23, %v1399_v23 }
 0x3e7   :  { %v1469_v26 = vpop.f32.mrb[14].mxu1 }
 0x3e8   :  { %v1473_v20 = vmul.f32 0.125, %v1469_v26  ;;  %v2535_v28 = vpop.f32.mrb[15].mxu1 }
 0x3ea   :  { %v1475_v24 = vsub.f32 %v1473_v20, %v1474_v27 }
 0x3ec   :  { %v1476_v33 = vadd.f32 1e-05, %v1475_v24 }
 0x3ed   :  { %v1664_v30 = vld [vmem:[#allocation2] sm:$0x3]  ;;  %v1780_v31 = vld [vmem:[#allocation2 + $0x2] sm:$0x3] }
 0x3ee   :  { %v1722_v43 = vld [vmem:[#allocation2 + $0x1] sm:$0x3]  ;;  %2730 = vrsqrt.f32 %v1476_v33  ;;  %v1665_v46 = vpack.c.bf16 %v1664_v30, %v1664_v30  ;;  %v1781_v49 = vpack.c.bf16 %v1780_v31, %v1780_v31 }
 0x3ef   :  { %1870 = vst.msk [vmem:[#allocation2 + $0x1] sm:$0x3] %vm950_vm15, %v1869_v29  ;;  %v1723_v48 = vpack.c.bf16 %v1722_v43, %v1722_v43 }
 0x3f6   :  { %v1871_v50 = vld [vmem:[#allocation2] sm:$0x3]  ;;  %v1963_v54 = vld [vmem:[#allocation2 + $0x2] sm:$0x3] }
 0x3f7   :  { %v1872_v51 = vpack.c.bf16 %v1871_v50, %v1871_v50  ;;  %v1917_v52 = vld [vmem:[#allocation2 + $0x1] sm:$0x3]  ;;  %v1964_v55 = vpack.c.bf16 %v1963_v54, %v1963_v54 }
 0x3f8   :  { %v2731_v34 = vpop.eup %2730  ;;  %v1918_v53 = vpack.c.bf16 %v1917_v52, %v1917_v52 }
 0x3f9   :  { %v1478_v36 = vmul.f32 %v2731_v34, %v1324_v32 }
 0x3fb   :  { %2541 = vmatmul.mubr.msk.f32.vlgmr.msra.gmra.mrb[16].mxu0 %vm1177_vm1, %v1478_v36  ;;  %v1479_v38 = vmul.f32 %v1478_v36, %v1399_v23 }
 0x3fc   :  { %2551 = vmatpush3.bf16.msra.mxu0 %v2720_v35  ;;  %2554 = vmatprep.mubr.msk.bf16.mxu0 %vm2757_vm0, %v2756_v2 }
 0x3fd   :  { %2552 = vmatprep.subr.bf16.mxu0 %v2756_v2  ;;  %v1480_v42 = vsub.f32 %v1325_v37, %v1479_v38 }
 0x3ff   :  { %2548 = vmatmul.mubr.msk.f32.vlgmr.msra.gmra.mrb[16].mxu1 %vm1177_vm1, %v1480_v42 }
 0x400   :  { %2553 = vmatpush3.bf16.msra.mxu0 %v2721_v39  ;;  %2559 = vmatpush3.bf16.msra.mxu1 %v2722_v40 }
 0x401   :  { %2560 = vmatprep.subr.bf16.mxu1 %v2756_v2  ;;  %2566 = vmatprep.subr.bf16.mxu0 %v2756_v2 }
 0x402   :  { %2562 = vmatprep.mubr.msk.bf16.mxu1 %vm2757_vm0, %v2756_v2 }
 0x403   :  { %2555 = vmatmul.mubr.msk.bf16.vlgmr.msra.gmra.mrb[20].mxu0 %vm316_vm2, %v1665_v46 }
 0x404   :  { %2561 = vmatpush3.bf16.msra.mxu1 %v2723_v44  ;;  %2567 = vmatpush3.bf16.msra.mxu0 %v2724_v45 }
 0x405   :  { %2568 = vmatprep.subr.bf16.mxu0 %v2756_v2  ;;  %2574 = vmatprep.subr.bf16.mxu1 %v2756_v2 }
 0x406   :  { %2570 = vmatprep.mubr.msk.bf16.mxu0 %vm2757_vm0, %v2756_v2 }
 0x407   :  { %2563 = vmatmul.mubr.msk.bf16.vlgmr.msra.gmra.mrb[20].mxu1 %vm316_vm2, %v1723_v48 }
 0x408   :  { %2569 = vmatpush3.bf16.msra.mxu0 %v2725_v47  ;;  %2575 = vmatpush3.bf16.msra.mxu1 %v2720_v35 }
 0x409   :  { %2576 = vmatprep.subr.bf16.mxu1 %v2756_v2  ;;  %2582 = vmatprep.subr.bf16.mxu0 %v2756_v2 }
 0x40a   :  { %2578 = vmatprep.mubr.msk.bf16.mxu1 %vm2757_vm0, %v2756_v2 }
 0x40b   :  { %2571 = vmatmul.mubr.msk.bf16.vlgmr.msra.gmra.mrb[24].mxu0 %vm316_vm2, %v1781_v49 }
 0x40c   :  { %2577 = vmatpush3.bf16.msra.mxu1 %v2721_v39  ;;  %2583 = vmatpush3.bf16.msra.mxu0 %v2722_v40 }
 0x40d   :  { %2584 = vmatprep.subr.bf16.mxu0 %v2756_v2  ;;  %2590 = vmatprep.subr.bf16.mxu1 %v2756_v2 }
 0x40e   :  { %2586 = vmatprep.mubr.msk.bf16.mxu0 %vm2757_vm0, %v2756_v2 }
 0x40f   :  { %2579 = vmatmul.mubr.msk.bf16.vlgmr.msra.gmra.mrb[24].mxu1 %vm316_vm2, %v1872_v51 }
 0x410   :  { %2585 = vmatpush3.bf16.msra.mxu0 %v2723_v44  ;;  %2591 = vmatpush3.bf16.msra.mxu1 %v2724_v45 }
 0x411   :  { %2592 = vmatprep.subr.bf16.mxu1 %v2756_v2  ;;  %2594 = vmatprep.mubr.msk.bf16.mxu1 %vm2757_vm0, %v2756_v2 }
 0x412   :  { %2656 = vmatprep.subr.bf16.mxu0 %v2758_v16 }
 0x413   :  { %2587 = vmatmul.mubr.msk.bf16.vlgmr.msra.gmra.mrb[28].mxu0 %vm316_vm2, %v1918_v53 }
 0x414   :  { %2593 = vmatpush3.bf16.msra.mxu1 %v2725_v47  ;;  %2658 = vmatpush3.bf16.msra.mxu0 %v3011_v15 }
 0x415   :  { %2662 = vmatprep.subr.bf16.mxu1 %v2758_v16  ;;  %2659 = vmatprep.subr.bf16.mxu0 %v2758_v16 }
 0x416   :  { %2606 = vmatprep.mubr.msk.f32.mxu0 %vm2757_vm0, %v2756_v2 }
 0x417   :  { %2595 = vmatmul.mubr.msk.bf16.vlgmr.msra.gmra.mrb[28].mxu1 %vm316_vm2, %v1964_v55 }
 0x418   :  { %2664 = vmatpush3.bf16.msra.mxu1 %v3011_v15  ;;  %2661 = vmatpush3.bf16.msra.mxu0 %v3025_v19 }
 0x419   :  { %2665 = vmatprep.subr.bf16.mxu1 %v2758_v16  ;;  %2617 = vmatprep.mubr.msk.f32.mxu1 %vm2757_vm0, %v2756_v2  ;;  %vm2103_vm0 = vcmask 122880  }
 0x41c   :  { %2667 = vmatpush3.bf16.msra.mxu1 %v3025_v19 }
 0x4ce   :  { %v1550_v56 = vpop.f32.mrb[16].mxu0 }
 0x4cf   :  { %v2542_v57 = vpop.f32.mrb[17].mxu0  ;;  %v1841_v16 = vrot.slane %v1550_v56, %v2955_v41 }
 0x4d1   :  { %v1842_v6 = vmul.f32 %v3072_v13, %v1841_v16  ;;  %v2009_v31 = vmul.f32 %v3074_v14, %v1841_v16 }
 0x4d2   :  { %v1623_v58 = vpop.f32.mrb[16].mxu1 }
 0x4d3   :  { %v2549_v59 = vpop.f32.mrb[17].mxu1  ;;  %v1847_v10 = vrot.slane %v1623_v58, %v2955_v41 }
 0x4d6   :  { %v1715_v61 = vpop.f32.mrb[20].mxu0 }
 0x4d7   :  { %v2556_v62 = vpop.f32.mrb[21].mxu0  ;;  %v1721_v63 = vadd.f32 %v2257_v60, %v1715_v61 }
 0x4d8   :  { %v1718_v15 = vpop.f32.mrb[22].mxu0 }
 0x4d9   :  { %v2557_v0 = vpop.f32.mrb[23].mxu0 }
 0x4da   :  { %v1773_v1 = vpop.f32.mrb[20].mxu1 }
 0x4db   :  { %v1779_v3 = vadd.f32 %v1773_v1, %v1721_v63  ;;  %v2564_v2 = vpop.f32.mrb[21].mxu1 }
 0x4dc   :  { %v1776_v4 = vpop.f32.mrb[22].mxu1 }
 0x4dd   :  { %v2565_v19 = vpop.f32.mrb[23].mxu1 }
 0x4de   :  { %v1831_v5 = vpop.f32.mrb[24].mxu0 }
 0x4df   :  { %v1837_v7 = vadd.f32 %v1831_v5, %v1779_v3  ;;  %v2572_v8 = vpop.f32.mrb[25].mxu0 }
 0x4e0   :  { %v1834_v9 = vpop.f32.mrb[26].mxu0 }
 0x4e1   :  { %v1843_v11 = vadd.f32 %v1842_v6, %v1837_v7  ;;  %v2573_v12 = vpop.f32.mrb[27].mxu0 }
 0x4e2   :  { %v1910_v17 = vpop.f32.mrb[24].mxu1 }
 0x4e3   :  { %v1848_v18 = vadd.f32 %v1847_v10, %v1843_v11  ;;  %v2580_v21 = vpop.f32.mrb[25].mxu1  ;;  %v1916_v13 = vadd.f32 %v2257_v60, %v1910_v17 }
 0x4e4   :  { %v1913_v22 = vpop.f32.mrb[26].mxu1 }
 0x4e5   :  { %1849 = vst.msk [vmem:[%s3241_s18] sm:$0x3] %vm950_vm15, %v1848_v18  ;;  %v1850_v23 = vsel %vm950_vm15, %v1848_v18, 0.0  ;;  %v1858_v25 = vmul.f32 %v1848_v18, %v1848_v18  ;;  %v2581_v26 = vpop.f32.mrb[27].mxu1 }
 0x4e6   :  { %v1956_v27 = vpop.f32.mrb[28].mxu0  ;;  %v1851_v24 = vrot.slane %v1850_v23, 4 }
 0x4e7   :  { %v1859_v20 = vsel %vm950_vm15, %v1858_v25, 0.0  ;;  %v1962_v41 = vadd.f32 %v1956_v27, %v1916_v13  ;;  %v2588_v28 = vpop.f32.mrb[29].mxu0 }
 0x4e8   :  { %v1959_v29 = vpop.f32.mrb[30].mxu0  ;;  %v1860_v30 = vrot.slane %v1859_v20, 4  ;;  %v1852_v35 = vadd.f32 %v1851_v24, %v1850_v23 }
 0x4e9   :  { %v2589_v33 = vpop.f32.mrb[31].mxu0 }
 0x4ea   :  { %v2002_v43 = vpop.f32.mrb[28].mxu1  ;;  %v1861_v39 = vadd.f32 %v1860_v30, %v1859_v20  ;;  %v1853_v42 = vrot.slane %v1852_v35, 2 }
 0x4eb   :  { %v2008_v32 = vadd.f32 %v2002_v43, %v1962_v41  ;;  %v2596_v34 = vpop.f32.mrb[29].mxu1 }
 0x4ec   :  { %v2005_v36 = vpop.f32.mrb[30].mxu1  ;;  %v1862_v46 = vrot.slane %v1861_v39, 2  ;;  %v1854_v48 = vadd.f32 %v1853_v42, %v1852_v35 }
 0x4ed   :  { %v2010_v37 = vadd.f32 %v2009_v31, %v2008_v32  ;;  %v2597_v38 = vpop.f32.mrb[31].mxu1 }
 0x4ee   :  { %v1863_v51 = vadd.f32 %v1862_v46, %v1861_v39  ;;  %v1855_v54 = vrot.slane %v1854_v48, 1 }
 0x4ef   :  { %v2011_v40 = vadd.f32 %v2010_v37, %v1847_v10 }
 0x4f0   :  { %v1864_v59 = vrot.slane %v1863_v51, 1  ;;  %v1856_v60 = vadd.f32 %v1855_v54, %v1854_v48 }
 0x4f1   :  { %2012 = vst.msk [vmem:[%s3241_s18 + $0x2] sm:$0x3] %vm950_vm15, %v2011_v40  ;;  %v2013_v44 = vsel %vm950_vm15, %v2011_v40, 0.0  ;;  %v2021_v45 = vmul.f32 %v2011_v40, %v2011_v40  ;;  %s2759_s18 = smov [#allocation3]  }
 0x4f2   :  { %v2014_v47 = vrot.slane %v2013_v44, 4  ;;  %v1865_v63 = vadd.f32 %v1864_v59, %v1863_v51  ;;  %s2187_s8 = sshll.u32 %s2759_s18, 4  ;;  %s2188_s8 = int_to_ptr.vmem [resolvable:$true] %s2187_s8 }
 0x4f3   :  { %v2022_v14 = vsel %vm950_vm15, %v2021_v45, 0.0  ;;  %s2732_s0 = scalar_lea.vmem %s2188_s8, 32  ;;  %p2737_p1 = scmp.lt.s32.totalorder %s2188_s8, %s2188_s8 }
 0x4f4   :  { %v2015_v49 = vadd.f32 %v2014_v47, %v2013_v44  ;;  %v2023_v50 = vrot.slane %v2022_v14, 4  ;;  %p2733_p0 = scmp.ne.s32.totalorder %s2188_s8, %s2732_s0  ;;  %p2738_p2 = scmp.lt.s32.totalorder %s2732_s0, %s2732_s0 }
 0x4f6   :  { %v2016_v52 = vrot.slane %v2015_v49, 2  ;;  %v2024_v53 = vadd.f32 %v2023_v50, %v2022_v14  ;;  %p2739_p3 = por %p2738_p2, %p2737_p1 }
 0x4f8   :  { %v2017_v55 = vadd.f32 %v2016_v52, %v2015_v49  ;;  %v2025_v56 = vrot.slane %v2024_v53, 2  ;;  %p2740_p4 = pnand %p2739_p3, %p2733_p0 }
 0x4fa   :  { %v2018_v57 = vrot.slane %v2017_v55, 1  ;;  %v2026_v58 = vadd.f32 %v2025_v56, %v2024_v53 }
 0x4fc   :  { %v2019_v61 = vadd.f32 %v2018_v57, %v2017_v55  ;;  %v2027_v62 = vrot.slane %v2026_v58, 1 }
 0x4fe   :  { %v2020_v15 = vadd.f32 %v2019_v61, %v1856_v60  ;;  %v2028_v0 = vadd.f32 %v2027_v62, %v2026_v58 }
 0x500   :  { %2607 = vmatmul.mubr.msk.f32.vlgmr.msra.gmra.mrb[18].mxu0 %vm316_vm2, %v2020_v15  ;;  %v2029_v1 = vadd.f32 %v2028_v0, %v1865_v63 }
 0x502   :  { %2618 = vmatmul.mubr.msk.f32.vlgmr.msra.gmra.mrb[18].mxu1 %vm316_vm2, %v2029_v1 }
 0x5d3   :  { %v2099_v16 = vpop.f32.mrb[18].mxu0 }
 0x5d4   :  { %2104 = vst.msk [vmem:[#allocation3] sm:$0x1] %vm2103_vm0, %v2099_v16  ;;  %v2608_v3 = vpop.f32.mrb[19].mxu0 }
 0x5d5   :  { %v2174_v2 = vpop.f32.mrb[18].mxu1 }
 0x5d6   :  { %2178 = vst.msk [vmem:[#allocation3 + $0x1] sm:$0x1] %vm2103_vm0, %v2174_v2  ;;  %v2619_v4 = vpop.f32.mrb[19].mxu1 }
 0x5d7   :  { %2743 = shalt.err (!%p2740_p4)
}
 0x5d8   :  { %s2744_s11 = scalar_lea.hbm %s3242_s19, 32 }
 0x5d9   :  { %p2745_p5 = scmp.ne.s32.totalorder %s3242_s19, %s2744_s11  ;;  %p2748_p6 = scmp.lt.u32.totalorder %s2744_s11, %s3242_s19 }
 0x5db   :  { %p2750_p7 = pnand %p2748_p6, %p2745_p5 }
 0x5dd   :  { %2753 = shalt.err (!%p2750_p7)
}
 0x5de   :  { %2190 = dma.vmem_to_hbm [thread:$0]  %s2188_s8, 32, %s3242_s19, [#allocation4]  }
 0x5df   :  { %2754 = dma.done.wait [#allocation4], 32  }
 0x5e0   :  { %2755 = vsyncadd [#allocation4], 4294967264 }
 0x5e1   :  { %2196 = vsyncpa [#allocation4], 1 }

</bundles_post_ra>
